<compile_context>
chip_gen: v6e
topology: v6e:2x2x1
jax: 0.10.0
libtpu: 0.0.40
codegen_flags: <defaults>
</compile_context>

<pallas_src>
import functools

import jax
import jax.numpy as jnp
from jax.experimental import pallas as pl
from jax.experimental.pallas import tpu as pltpu

_VMEM_LIMIT = 32 * 1024 * 1024  # safe on v5e/v6e/v7x; blocks below use <~10 MiB


# ---------------------------------------------------------------------------
# Pallas kernels
# ---------------------------------------------------------------------------

def _conv_relu_pool_kernel(x0_ref, x1_ref, w_ref, b_ref, o_ref, *,
                           valid_rows, half_cols):
    """Fused 5x5 conv + bias + ReLU + 2x2 max-pool for one block of images.

    x0_ref : [bm, WC]         bf16  even input rows (h = 2*hh)   of the block
    x1_ref : [bm, WC]         bf16  odd  input rows (h = 2*hh+1) of the block
    w_ref  : [5, WC, 2*PW*OC] bf16  banded conv weights, cols = (dw, pw, oc)
    b_ref  : [1, PW*OC]       f32   bias tiled over pw
    o_ref  : [bm, PW*OC]      bf16  pooled output rows (row = (n, ph))
    """
    m = valid_rows
    # Conv output row 2*ph + dh needs input rows 2*ph + dh + i, i.e. input
    # phase (dh+i) % 2 shifted down by (dh+i)//2 rows  ->  slice s[dh+i].
    s = (x0_ref[pl.ds(0, m), :], x1_ref[pl.ds(0, m), :],
         x0_ref[pl.ds(1, m), :], x1_ref[pl.ds(1, m), :],
         x0_ref[pl.ds(2, m), :], x1_ref[pl.ds(2, m), :])

    def mm(xs, i):
        return jnp.dot(xs, w_ref[i], preferred_element_type=jnp.float32)

    even = mm(s[0], 0) + mm(s[1], 1) + mm(s[2], 2) + mm(s[3], 3) + mm(s[4], 4)
    odd = mm(s[1], 0) + mm(s[2], 1) + mm(s[3], 2) + mm(s[4], 3) + mm(s[5], 4)

    rowmax = jnp.maximum(even, odd)                              # pool over dh
    pooled = jnp.maximum(rowmax[:, :half_cols],                  # pool over dw
                         rowmax[:, half_cols:])                  # (128-aligned)
    out = jnp.maximum(pooled + b_ref[...], 0.0)                  # bias + ReLU
    o_ref[pl.ds(0, m), :] = out.astype(o_ref.dtype)


def _fc_softmax_kernel(x_ref, w_ref, b_ref, o_ref):
    """softmax(x @ w + b) for one row block; classes padded to 128 lanes."""
    logits = jnp.dot(x_ref[...], w_ref[...],
                     preferred_element_type=jnp.float32) + b_ref[...]
    m = jnp.max(logits, axis=1, keepdims=True)
    e = jnp.exp(logits - m)
    ssum = jnp.sum(e, axis=1, keepdims=True)
    o_ref[...] = e * pl.reciprocal(ssum, approx=True)


# ---------------------------------------------------------------------------
# pallas_call wrappers
# ---------------------------------------------------------------------------

def _pick_block_images(n_images, cap):
    """Images per grid step: divides n, <= cap, >=2 grid steps when n >= 2."""
    target = min(cap, max(1, n_images // 2)) if n_images >= 2 else 1
    for d in range(target, 0, -1):
        if n_images % d == 0:
            return d
    return 1


def conv_relu_pool(x0, x1, w_banded, bias_tiled, *, n_images, rows_per_image,
                   images_per_block):
    rows, wc = x0.shape
    k5, _, n2 = w_banded.shape
    half = n2 // 2
    bm = images_per_block * rows_per_image
    kernel = functools.partial(_conv_relu_pool_kernel,
                               valid_rows=bm - 2, half_cols=half)
    row_spec = pl.BlockSpec((bm, wc), lambda i: (i, 0))
    return pl.pallas_call(
        kernel,
        out_shape=jax.ShapeDtypeStruct((rows, half), jnp.bfloat16),
        grid=(n_images // images_per_block,),
        in_specs=[row_spec, row_spec,
                  pl.BlockSpec((k5, wc, n2), lambda i: (0, 0, 0)),
                  pl.BlockSpec((1, half), lambda i: (0, 0))],
        out_specs=pl.BlockSpec((bm, half), lambda i: (i, 0)),
        compiler_params=pltpu.CompilerParams(
            dimension_semantics=("parallel",),
            vmem_limit_bytes=_VMEM_LIMIT),
    )(x0, x1, w_banded, bias_tiled)


def _pick_fc_rows(n):
    if n < 16:
        return n
    target = min(512, n // 2)
    target -= target % 8
    for d in range(target, 7, -8):
        if n % d == 0:
            return d
    return n


def fc_softmax(x, w_t_padded, b_padded):
    m, k = x.shape
    n_out = w_t_padded.shape[1]
    bm = _pick_fc_rows(m)
    return pl.pallas_call(
        _fc_softmax_kernel,
        out_shape=jax.ShapeDtypeStruct((m, n_out), jnp.float32),
        grid=(m // bm,),
        in_specs=[pl.BlockSpec((bm, k), lambda i: (i, 0)),
                  pl.BlockSpec((k, n_out), lambda i: (0, 0)),
                  pl.BlockSpec((1, n_out), lambda i: (0, 0))],
        out_specs=pl.BlockSpec((bm, n_out), lambda i: (i, 0)),
        compiler_params=pltpu.CompilerParams(
            dimension_semantics=("parallel",),
            vmem_limit_bytes=_VMEM_LIMIT),
    )(x, w_t_padded, b_padded)


# ---------------------------------------------------------------------------
# Parameter / activation layout prep (tiny, layout-only)
# ---------------------------------------------------------------------------

def _banded_conv_weight(w_oihw, in_width):
    """OIHW [OC,C,5,5] conv weight -> [5, W*C, 2*PW*OC] banded matmul weights.

    Row index = p*C + c (input column p, input channel c).  Column index
    = dw*(PW*OC) + pw*OC + oc with output column ow = 2*pw + dw, so the pool's
    column pairing becomes a max of two 128-aligned lane halves.
    """
    oc_dim, c_dim, k, _ = w_oihw.shape
    ow_dim = in_width - k + 1
    pw_dim = ow_dim // 2
    wt = jnp.transpose(w_oihw, (2, 3, 1, 0))                 # [i, j, c, oc]
    p = jnp.arange(in_width)[:, None]
    ow = jnp.arange(ow_dim)[None, :]
    j = p - ow
    mask = ((j >= 0) & (j < k)).astype(wt.dtype)
    band = wt[:, jnp.clip(j, 0, k - 1)]                      # [i, p, ow, c, oc]
    band = band * mask[None, :, :, None, None]
    band = band.reshape(k, in_width, pw_dim, 2, c_dim, oc_dim)
    band = band.transpose(0, 1, 4, 3, 2, 5)                  # (i, p, c, dw, pw, oc)
    return band.reshape(k, in_width * c_dim, 2 * pw_dim * oc_dim)


def _phase_split_rows(x, rows_padded):
    """[N, H, WC] -> (even-row, odd-row) arrays of shape [N*rows_padded, WC]."""
    n, h, wc = x.shape
    h2 = h // 2
    x2 = x.reshape(n, h2, 2, wc)
    pad = rows_padded - h2
    out = []
    for a in range(2):
        xa = x2[:, :, a, :]
        if pad:
            xa = jnp.pad(xa, ((0, 0), (0, pad), (0, 0)))
        out.append(xa.reshape(n * rows_padded, wc))
    return out[0], out[1]


# ---------------------------------------------------------------------------
# Full forward pass
# ---------------------------------------------------------------------------

def cnn_forward(x, params):
    """x: [N, 1, 28, 28] float32 (NCHW like PyTorch).  Returns [N, 10] f32."""
    w1, b1, w2, b2, wf, bf = params
    n = x.shape[0]

    # ---- one-time weight layout prep (tiny; folds all permutations) ----
    wb1 = _banded_conv_weight(w1, 28).astype(jnp.bfloat16)      # [5, 28, 768]
    bt1 = jnp.tile(b1, 12)[None, :].astype(jnp.float32)         # [1, 384]
    wb2 = _banded_conv_weight(w2, 12).astype(jnp.bfloat16)      # [5, 384, 512]
    bt2 = jnp.tile(b2, 4)[None, :].astype(jnp.float32)          # [1, 256]
    # FC: fold PyTorch (C,H,W) flatten order into the weight, transpose to
    # [1024, 128] with zero-padded classes; bias pad -1e30 => softmax ignores.
    wf_hwc = wf.reshape(10, 64, 4, 4).transpose(0, 2, 3, 1).reshape(10, 1024)
    wf_pad = jnp.zeros((1024, 128), jnp.bfloat16).at[:, :10].set(
        wf_hwc.T.astype(jnp.bfloat16))
    bf_pad = jnp.full((1, 128), -1e30, jnp.float32).at[0, :10].set(bf)

    # ---- layer 1: conv5x5 (1->32) + ReLU + 2x2 max-pool, fused ----
    xh = x.reshape(n, 28, 28).astype(jnp.bfloat16)               # NHWC, C=1
    x0a, x0b = _phase_split_rows(xh, 16)                         # [n*16, 28]
    bn1 = _pick_block_images(n, 32)
    y1 = conv_relu_pool(x0a, x0b, wb1, bt1, n_images=n, rows_per_image=16,
                        images_per_block=bn1)                    # [n*16, 384]

    # ---- layer 2: conv5x5 (32->64) + ReLU + 2x2 max-pool, fused ----
    y1v = y1.reshape(n, 16, 384)[:, :12, :]                      # drop pad rows
    x1a, x1b = _phase_split_rows(y1v, 8)                         # [n*8, 384]
    bn2 = _pick_block_images(n, 64)
    y2 = conv_relu_pool(x1a, x1b, wb2, bt2, n_images=n, rows_per_image=8,
                        images_per_block=bn2)                    # [n*8, 256]

    # ---- FC (1024 -> 10) + softmax, classes padded to 128 lanes ----
    feats = y2.reshape(n, 8, 256)[:, :4, :].reshape(n, 1024)     # (h, w, c)
    probs = fc_softmax(feats, wf_pad, bf_pad)                    # [n, 128]
    return probs[:, :10]


def cnn_forward_reference(x, params):
    """Pure-JAX float32 reference matching the PyTorch module."""
    w1, b1, w2, b2, wf, bf = params
    dn = ("NCHW", "OIHW", "NCHW")
    y = jax.lax.conv_general_dilated(x, w1, (1, 1), "VALID", dimension_numbers=dn)
    y = jax.nn.relu(y + b1[None, :, None, None])
    y = jax.lax.reduce_window(y, -jnp.inf, jax.lax.max, (1, 1, 2, 2),
                              (1, 1, 2, 2), "VALID")
    y = jax.lax.conv_general_dilated(y, w2, (1, 1), "VALID", dimension_numbers=dn)
    y = jax.nn.relu(y + b2[None, :, None, None])
    y = jax.lax.reduce_window(y, -jnp.inf, jax.lax.max, (1, 1, 2, 2),
                              (1, 1, 2, 2), "VALID")
    y = y.reshape(y.shape[0], -1)
    return jax.nn.softmax(y @ wf.T + bf, axis=1)


def init_params(key):
    """Deterministic init mimicking PyTorch default U(-1/sqrt(fan_in), +...)."""
    def uniform(k, shape, fan_in):
        bound = 1.0 / jnp.sqrt(float(fan_in))
        return jax.random.uniform(k, shape, jnp.float32, -bound, bound)

    k1w, k1b, k2w, k2b, kfw, kfb = jax.random.split(key, 6)
    w1 = uniform(k1w, (32, 1, 5, 5), 1 * 5 * 5)
    b1 = uniform(k1b, (32,), 1 * 5 * 5)
    w2 = uniform(k2w, (64, 32, 5, 5), 32 * 5 * 5)
    b2 = uniform(k2b, (64,), 32 * 5 * 5)
    wf = uniform(kfw, (10, 1024), 1024)
    bf = uniform(kfb, (10,), 1024)
    return (w1, b1, w2, b2, wf, bf)


if __name__ == "__main__":
    key = jax.random.PRNGKey(0)
    kx, kp = jax.random.split(key)
    # fc expects 64*4*4 = 1024 features, which forces 28x28 inputs (MNIST).
    x = jax.random.normal(kx, (2, 1, 28, 28), jnp.float32)
    params = init_params(kp)

    fwd = jax.jit(cnn_forward)
    y = jax.block_until_ready(fwd(x, params))

    assert y.shape == (2, 10)
    # Rows sum to ~1 (approx EUP reciprocal in the softmax => loose tolerance).
    assert jnp.allclose(jnp.sum(y, axis=1), 1.0, atol=2e-3)
    # Match the pure-JAX f32 reference (bf16 MXU inputs => loose tolerance).
    y_ref = jax.block_until_ready(jax.jit(cnn_forward_reference)(x, params))
    assert jnp.allclose(y, y_ref, atol=5e-2), float(jnp.max(jnp.abs(y - y_ref)))
    print("KERNEL_OK")
</pallas_src>

<mosaic_0001>
module attributes {stable_mosaic.version = 11 : i64} {
  func.func @_conv_relu_pool_kernel(%arg0: i32, %arg1: memref<16x28xbf16, #tpu.memory_space<vmem>>, %arg2: memref<16x28xbf16, #tpu.memory_space<vmem>>, %arg3: memref<5x28x768xbf16, #tpu.memory_space<vmem>>, %arg4: memref<1x384xf32, #tpu.memory_space<vmem>>, %arg5: memref<16x384xbf16, #tpu.memory_space<vmem>>) attributes {dimension_semantics = [#tpu.dimension_semantics<parallel>], iteration_bounds = array<i64: 2>, scalar_prefetch = 0 : i64, scratch_operands = 0 : i64, tpu.core_type = #tpu.core_type<tc>, window_params = [{transform_indices = @transform_0, window_bounds = array<i64: 16, 28>}, {transform_indices = @transform_1, window_bounds = array<i64: 16, 28>}, {pipeline_mode = #tpu.pipeline_mode<synchronous>, transform_indices = @transform_2, window_bounds = array<i64: 5, 28, 768>}, {pipeline_mode = #tpu.pipeline_mode<synchronous>, transform_indices = @transform_3, window_bounds = array<i64: 1, 384>}, {transform_indices = @transform_4, window_bounds = array<i64: 16, 384>}]} {
    %c0 = arith.constant 0 : index
    %c0_0 = arith.constant 0 : index
    %0 = vector.load %arg1[%c0, %c0_0] : memref<16x28xbf16, #tpu.memory_space<vmem>>, vector<14x28xbf16>
    %c0_1 = arith.constant 0 : index
    %c0_2 = arith.constant 0 : index
    %1 = vector.load %arg2[%c0_1, %c0_2] : memref<16x28xbf16, #tpu.memory_space<vmem>>, vector<14x28xbf16>
    %c1 = arith.constant 1 : index
    %c0_3 = arith.constant 0 : index
    %2 = vector.load %arg1[%c1, %c0_3] : memref<16x28xbf16, #tpu.memory_space<vmem>>, vector<14x28xbf16>
    %c1_4 = arith.constant 1 : index
    %c0_5 = arith.constant 0 : index
    %3 = vector.load %arg2[%c1_4, %c0_5] : memref<16x28xbf16, #tpu.memory_space<vmem>>, vector<14x28xbf16>
    %c2 = arith.constant 2 : index
    %c0_6 = arith.constant 0 : index
    %4 = vector.load %arg1[%c2, %c0_6] : memref<16x28xbf16, #tpu.memory_space<vmem>>, vector<14x28xbf16>
    %c2_7 = arith.constant 2 : index
    %c0_8 = arith.constant 0 : index
    %5 = vector.load %arg2[%c2_7, %c0_8] : memref<16x28xbf16, #tpu.memory_space<vmem>>, vector<14x28xbf16>
    %c0_9 = arith.constant 0 : index
    %c0_10 = arith.constant 0 : index
    %c0_11 = arith.constant 0 : index
    %6 = vector.load %arg3[%c0_9, %c0_10, %c0_11] : memref<5x28x768xbf16, #tpu.memory_space<vmem>>, vector<1x28x768xbf16>
    %7 = vector.shape_cast %6 : vector<1x28x768xbf16> to vector<28x768xbf16>
    %cst = arith.constant dense<0.000000e+00> : vector<14x768xf32>
    %8 = tpu.matmul %0, %7, %cst {dimension_numbers = #tpu.dot_dimension_numbers<[1], [0], [0], [1], [0, 0, 1, 1], [], []>} : vector<14x28xbf16>, vector<28x768xbf16>, vector<14x768xf32> -> vector<14x768xf32>
    %c1_12 = arith.constant 1 : index
    %c0_13 = arith.constant 0 : index
    %c0_14 = arith.constant 0 : index
    %9 = vector.load %arg3[%c1_12, %c0_13, %c0_14] : memref<5x28x768xbf16, #tpu.memory_space<vmem>>, vector<1x28x768xbf16>
    %10 = vector.shape_cast %9 : vector<1x28x768xbf16> to vector<28x768xbf16>
    %cst_15 = arith.constant dense<0.000000e+00> : vector<14x768xf32>
    %11 = tpu.matmul %1, %10, %cst_15 {dimension_numbers = #tpu.dot_dimension_numbers<[1], [0], [0], [1], [0, 0, 1, 1], [], []>} : vector<14x28xbf16>, vector<28x768xbf16>, vector<14x768xf32> -> vector<14x768xf32>
    %12 = arith.addf %8, %11 : vector<14x768xf32>
    %c2_16 = arith.constant 2 : index
    %c0_17 = arith.constant 0 : index
    %c0_18 = arith.constant 0 : index
    %13 = vector.load %arg3[%c2_16, %c0_17, %c0_18] : memref<5x28x768xbf16, #tpu.memory_space<vmem>>, vector<1x28x768xbf16>
    %14 = vector.shape_cast %13 : vector<1x28x768xbf16> to vector<28x768xbf16>
    %cst_19 = arith.constant dense<0.000000e+00> : vector<14x768xf32>
    %15 = tpu.matmul %2, %14, %cst_19 {dimension_numbers = #tpu.dot_dimension_numbers<[1], [0], [0], [1], [0, 0, 1, 1], [], []>} : vector<14x28xbf16>, vector<28x768xbf16>, vector<14x768xf32> -> vector<14x768xf32>
    %16 = arith.addf %12, %15 : vector<14x768xf32>
    %c3 = arith.constant 3 : index
    %c0_20 = arith.constant 0 : index
    %c0_21 = arith.constant 0 : index
    %17 = vector.load %arg3[%c3, %c0_20, %c0_21] : memref<5x28x768xbf16, #tpu.memory_space<vmem>>, vector<1x28x768xbf16>
    %18 = vector.shape_cast %17 : vector<1x28x768xbf16> to vector<28x768xbf16>
    %cst_22 = arith.constant dense<0.000000e+00> : vector<14x768xf32>
    %19 = tpu.matmul %3, %18, %cst_22 {dimension_numbers = #tpu.dot_dimension_numbers<[1], [0], [0], [1], [0, 0, 1, 1], [], []>} : vector<14x28xbf16>, vector<28x768xbf16>, vector<14x768xf32> -> vector<14x768xf32>
    %20 = arith.addf %16, %19 : vector<14x768xf32>
    %c4 = arith.constant 4 : index
    %c0_23 = arith.constant 0 : index
    %c0_24 = arith.constant 0 : index
    %21 = vector.load %arg3[%c4, %c0_23, %c0_24] : memref<5x28x768xbf16, #tpu.memory_space<vmem>>, vector<1x28x768xbf16>
    %22 = vector.shape_cast %21 : vector<1x28x768xbf16> to vector<28x768xbf16>
    %cst_25 = arith.constant dense<0.000000e+00> : vector<14x768xf32>
    %23 = tpu.matmul %4, %22, %cst_25 {dimension_numbers = #tpu.dot_dimension_numbers<[1], [0], [0], [1], [0, 0, 1, 1], [], []>} : vector<14x28xbf16>, vector<28x768xbf16>, vector<14x768xf32> -> vector<14x768xf32>
    %24 = arith.addf %20, %23 : vector<14x768xf32>
    %c0_26 = arith.constant 0 : index
    %c0_27 = arith.constant 0 : index
    %c0_28 = arith.constant 0 : index
    %25 = vector.load %arg3[%c0_26, %c0_27, %c0_28] : memref<5x28x768xbf16, #tpu.memory_space<vmem>>, vector<1x28x768xbf16>
    %26 = vector.shape_cast %25 : vector<1x28x768xbf16> to vector<28x768xbf16>
    %cst_29 = arith.constant dense<0.000000e+00> : vector<14x768xf32>
    %27 = tpu.matmul %1, %26, %cst_29 {dimension_numbers = #tpu.dot_dimension_numbers<[1], [0], [0], [1], [0, 0, 1, 1], [], []>} : vector<14x28xbf16>, vector<28x768xbf16>, vector<14x768xf32> -> vector<14x768xf32>
    %c1_30 = arith.constant 1 : index
    %c0_31 = arith.constant 0 : index
    %c0_32 = arith.constant 0 : index
    %28 = vector.load %arg3[%c1_30, %c0_31, %c0_32] : memref<5x28x768xbf16, #tpu.memory_space<vmem>>, vector<1x28x768xbf16>
    %29 = vector.shape_cast %28 : vector<1x28x768xbf16> to vector<28x768xbf16>
    %cst_33 = arith.constant dense<0.000000e+00> : vector<14x768xf32>
    %30 = tpu.matmul %2, %29, %cst_33 {dimension_numbers = #tpu.dot_dimension_numbers<[1], [0], [0], [1], [0, 0, 1, 1], [], []>} : vector<14x28xbf16>, vector<28x768xbf16>, vector<14x768xf32> -> vector<14x768xf32>
    %31 = arith.addf %27, %30 : vector<14x768xf32>
    %c2_34 = arith.constant 2 : index
    %c0_35 = arith.constant 0 : index
    %c0_36 = arith.constant 0 : index
    %32 = vector.load %arg3[%c2_34, %c0_35, %c0_36] : memref<5x28x768xbf16, #tpu.memory_space<vmem>>, vector<1x28x768xbf16>
    %33 = vector.shape_cast %32 : vector<1x28x768xbf16> to vector<28x768xbf16>
    %cst_37 = arith.constant dense<0.000000e+00> : vector<14x768xf32>
    %34 = tpu.matmul %3, %33, %cst_37 {dimension_numbers = #tpu.dot_dimension_numbers<[1], [0], [0], [1], [0, 0, 1, 1], [], []>} : vector<14x28xbf16>, vector<28x768xbf16>, vector<14x768xf32> -> vector<14x768xf32>
    %35 = arith.addf %31, %34 : vector<14x768xf32>
    %c3_38 = arith.constant 3 : index
    %c0_39 = arith.constant 0 : index
    %c0_40 = arith.constant 0 : index
    %36 = vector.load %arg3[%c3_38, %c0_39, %c0_40] : memref<5x28x768xbf16, #tpu.memory_space<vmem>>, vector<1x28x768xbf16>
    %37 = vector.shape_cast %36 : vector<1x28x768xbf16> to vector<28x768xbf16>
    %cst_41 = arith.constant dense<0.000000e+00> : vector<14x768xf32>
    %38 = tpu.matmul %4, %37, %cst_41 {dimension_numbers = #tpu.dot_dimension_numbers<[1], [0], [0], [1], [0, 0, 1, 1], [], []>} : vector<14x28xbf16>, vector<28x768xbf16>, vector<14x768xf32> -> vector<14x768xf32>
    %39 = arith.addf %35, %38 : vector<14x768xf32>
    %c4_42 = arith.constant 4 : index
    %c0_43 = arith.constant 0 : index
    %c0_44 = arith.constant 0 : index
    %40 = vector.load %arg3[%c4_42, %c0_43, %c0_44] : memref<5x28x768xbf16, #tpu.memory_space<vmem>>, vector<1x28x768xbf16>
    %41 = vector.shape_cast %40 : vector<1x28x768xbf16> to vector<28x768xbf16>
    %cst_45 = arith.constant dense<0.000000e+00> : vector<14x768xf32>
    %42 = tpu.matmul %5, %41, %cst_45 {dimension_numbers = #tpu.dot_dimension_numbers<[1], [0], [0], [1], [0, 0, 1, 1], [], []>} : vector<14x28xbf16>, vector<28x768xbf16>, vector<14x768xf32> -> vector<14x768xf32>
    %43 = arith.addf %39, %42 : vector<14x768xf32>
    %44 = arith.maximumf %24, %43 : vector<14x768xf32>
    %45 = vector.extract_strided_slice %44 {offsets = [0, 0], sizes = [14, 384], strides = [1, 1]} : vector<14x768xf32> to vector<14x384xf32>
    %46 = vector.extract_strided_slice %44 {offsets = [0, 384], sizes = [14, 384], strides = [1, 1]} : vector<14x768xf32> to vector<14x384xf32>
    %47 = arith.maximumf %45, %46 : vector<14x384xf32>
    %c0_46 = arith.constant 0 : index
    %c0_47 = arith.constant 0 : index
    %48 = vector.load %arg4[%c0_46, %c0_47] : memref<1x384xf32, #tpu.memory_space<vmem>>, vector<1x384xf32>
    %49 = vector.broadcast %48 : vector<1x384xf32> to vector<14x384xf32>
    %50 = arith.addf %47, %49 : vector<14x384xf32>
    %cst_48 = arith.constant 0.000000e+00 : f32
    %51 = vector.broadcast %cst_48 : f32 to vector<14x384xf32>
    %52 = arith.maximumf %50, %51 : vector<14x384xf32>
    %53 = arith.truncf %52 : vector<14x384xf32> to vector<14x384xbf16>
    %c0_49 = arith.constant 0 : index
    %c0_50 = arith.constant 0 : index
    %54 = vector.load %arg5[%c0_49, %c0_50] : memref<16x384xbf16, #tpu.memory_space<vmem>>, vector<14x384xbf16>
    tpu.vector_store %arg5[%c0_49, %c0_50], %53 {strides = array<i32>} : memref<16x384xbf16, #tpu.memory_space<vmem>>, vector<14x384xbf16>,
    return
  }
  func.func @transform_0(%arg0: i32) -> (i32, i32) {
    %c0_i32 = arith.constant 0 : i32
    %c0_i32_0 = arith.constant 0 : i32
    return %arg0, %c0_i32 : i32, i32
  }
  func.func @transform_1(%arg0: i32) -> (i32, i32) {
    %c0_i32 = arith.constant 0 : i32
    %c0_i32_0 = arith.constant 0 : i32
    return %arg0, %c0_i32 : i32, i32
  }
  func.func @transform_2(%arg0: i32) -> (i32, i32, i32) {
    %c0_i32 = arith.constant 0 : i32
    %c0_i32_0 = arith.constant 0 : i32
    %c0_i32_1 = arith.constant 0 : i32
    %c0_i32_2 = arith.constant 0 : i32
    return %c0_i32, %c0_i32_0, %c0_i32_1 : i32, i32, i32
  }
  func.func @transform_3(%arg0: i32) -> (i32, i32) {
    %c0_i32 = arith.constant 0 : i32
    %c0_i32_0 = arith.constant 0 : i32
    %c0_i32_1 = arith.constant 0 : i32
    return %c0_i32, %c0_i32_0 : i32, i32
  }
  func.func @transform_4(%arg0: i32) -> (i32, i32) {
    %c0_i32 = arith.constant 0 : i32
    %c0_i32_0 = arith.constant 0 : i32
    return %arg0, %c0_i32 : i32, i32
  }
}

module attributes {stable_mosaic.version = 11 : i64} {
  func.func @_conv_relu_pool_kernel(%arg0: i32, %arg1: memref<8x384xbf16, #tpu.memory_space<vmem>>, %arg2: memref<8x384xbf16, #tpu.memory_space<vmem>>, %arg3: memref<5x384x512xbf16, #tpu.memory_space<vmem>>, %arg4: memref<1x256xf32, #tpu.memory_space<vmem>>, %arg5: memref<8x256xbf16, #tpu.memory_space<vmem>>) attributes {dimension_semantics = [#tpu.dimension_semantics<parallel>], iteration_bounds = array<i64: 2>, scalar_prefetch = 0 : i64, scratch_operands = 0 : i64, tpu.core_type = #tpu.core_type<tc>, window_params = [{transform_indices = @transform_0, window_bounds = array<i64: 8, 384>}, {transform_indices = @transform_1, window_bounds = array<i64: 8, 384>}, {pipeline_mode = #tpu.pipeline_mode<synchronous>, transform_indices = @transform_2, window_bounds = array<i64: 5, 384, 512>}, {pipeline_mode = #tpu.pipeline_mode<synchronous>, transform_indices = @transform_3, window_bounds = array<i64: 1, 256>}, {transform_indices = @transform_4, window_bounds = array<i64: 8, 256>}]} {
    %c0 = arith.constant 0 : index
    %c0_0 = arith.constant 0 : index
    %0 = vector.load %arg1[%c0, %c0_0] : memref<8x384xbf16, #tpu.memory_space<vmem>>, vector<6x384xbf16>
    %c0_1 = arith.constant 0 : index
    %c0_2 = arith.constant 0 : index
    %1 = vector.load %arg2[%c0_1, %c0_2] : memref<8x384xbf16, #tpu.memory_space<vmem>>, vector<6x384xbf16>
    %c1 = arith.constant 1 : index
    %c0_3 = arith.constant 0 : index
    %2 = vector.load %arg1[%c1, %c0_3] : memref<8x384xbf16, #tpu.memory_space<vmem>>, vector<6x384xbf16>
    %c1_4 = arith.constant 1 : index
    %c0_5 = arith.constant 0 : index
    %3 = vector.load %arg2[%c1_4, %c0_5] : memref<8x384xbf16, #tpu.memory_space<vmem>>, vector<6x384xbf16>
    %c2 = arith.constant 2 : index
    %c0_6 = arith.constant 0 : index
    %4 = vector.load %arg1[%c2, %c0_6] : memref<8x384xbf16, #tpu.memory_space<vmem>>, vector<6x384xbf16>
    %c2_7 = arith.constant 2 : index
    %c0_8 = arith.constant 0 : index
    %5 = vector.load %arg2[%c2_7, %c0_8] : memref<8x384xbf16, #tpu.memory_space<vmem>>, vector<6x384xbf16>
    %c0_9 = arith.constant 0 : index
    %c0_10 = arith.constant 0 : index
    %c0_11 = arith.constant 0 : index
    %6 = vector.load %arg3[%c0_9, %c0_10, %c0_11] : memref<5x384x512xbf16, #tpu.memory_space<vmem>>, vector<1x384x512xbf16>
    %7 = vector.shape_cast %6 : vector<1x384x512xbf16> to vector<384x512xbf16>
    %cst = arith.constant dense<0.000000e+00> : vector<6x512xf32>
    %8 = tpu.matmul %0, %7, %cst {dimension_numbers = #tpu.dot_dimension_numbers<[1], [0], [0], [1], [0, 0, 1, 1], [], []>} : vector<6x384xbf16>, vector<384x512xbf16>, vector<6x512xf32> -> vector<6x512xf32>
    %c1_12 = arith.constant 1 : index
    %c0_13 = arith.constant 0 : index
    %c0_14 = arith.constant 0 : index
    %9 = vector.load %arg3[%c1_12, %c0_13, %c0_14] : memref<5x384x512xbf16, #tpu.memory_space<vmem>>, vector<1x384x512xbf16>
    %10 = vector.shape_cast %9 : vector<1x384x512xbf16> to vector<384x512xbf16>
    %cst_15 = arith.constant dense<0.000000e+00> : vector<6x512xf32>
    %11 = tpu.matmul %1, %10, %cst_15 {dimension_numbers = #tpu.dot_dimension_numbers<[1], [0], [0], [1], [0, 0, 1, 1], [], []>} : vector<6x384xbf16>, vector<384x512xbf16>, vector<6x512xf32> -> vector<6x512xf32>
    %12 = arith.addf %8, %11 : vector<6x512xf32>
    %c2_16 = arith.constant 2 : index
    %c0_17 = arith.constant 0 : index
    %c0_18 = arith.constant 0 : index
    %13 = vector.load %arg3[%c2_16, %c0_17, %c0_18] : memref<5x384x512xbf16, #tpu.memory_space<vmem>>, vector<1x384x512xbf16>
    %14 = vector.shape_cast %13 : vector<1x384x512xbf16> to vector<384x512xbf16>
    %cst_19 = arith.constant dense<0.000000e+00> : vector<6x512xf32>
    %15 = tpu.matmul %2, %14, %cst_19 {dimension_numbers = #tpu.dot_dimension_numbers<[1], [0], [0], [1], [0, 0, 1, 1], [], []>} : vector<6x384xbf16>, vector<384x512xbf16>, vector<6x512xf32> -> vector<6x512xf32>
    %16 = arith.addf %12, %15 : vector<6x512xf32>
    %c3 = arith.constant 3 : index
    %c0_20 = arith.constant 0 : index
    %c0_21 = arith.constant 0 : index
    %17 = vector.load %arg3[%c3, %c0_20, %c0_21] : memref<5x384x512xbf16, #tpu.memory_space<vmem>>, vector<1x384x512xbf16>
    %18 = vector.shape_cast %17 : vector<1x384x512xbf16> to vector<384x512xbf16>
    %cst_22 = arith.constant dense<0.000000e+00> : vector<6x512xf32>
    %19 = tpu.matmul %3, %18, %cst_22 {dimension_numbers = #tpu.dot_dimension_numbers<[1], [0], [0], [1], [0, 0, 1, 1], [], []>} : vector<6x384xbf16>, vector<384x512xbf16>, vector<6x512xf32> -> vector<6x512xf32>
    %20 = arith.addf %16, %19 : vector<6x512xf32>
    %c4 = arith.constant 4 : index
    %c0_23 = arith.constant 0 : index
    %c0_24 = arith.constant 0 : index
    %21 = vector.load %arg3[%c4, %c0_23, %c0_24] : memref<5x384x512xbf16, #tpu.memory_space<vmem>>, vector<1x384x512xbf16>
    %22 = vector.shape_cast %21 : vector<1x384x512xbf16> to vector<384x512xbf16>
    %cst_25 = arith.constant dense<0.000000e+00> : vector<6x512xf32>
    %23 = tpu.matmul %4, %22, %cst_25 {dimension_numbers = #tpu.dot_dimension_numbers<[1], [0], [0], [1], [0, 0, 1, 1], [], []>} : vector<6x384xbf16>, vector<384x512xbf16>, vector<6x512xf32> -> vector<6x512xf32>
    %24 = arith.addf %20, %23 : vector<6x512xf32>
    %c0_26 = arith.constant 0 : index
    %c0_27 = arith.constant 0 : index
    %c0_28 = arith.constant 0 : index
    %25 = vector.load %arg3[%c0_26, %c0_27, %c0_28] : memref<5x384x512xbf16, #tpu.memory_space<vmem>>, vector<1x384x512xbf16>
    %26 = vector.shape_cast %25 : vector<1x384x512xbf16> to vector<384x512xbf16>
    %cst_29 = arith.constant dense<0.000000e+00> : vector<6x512xf32>
    %27 = tpu.matmul %1, %26, %cst_29 {dimension_numbers = #tpu.dot_dimension_numbers<[1], [0], [0], [1], [0, 0, 1, 1], [], []>} : vector<6x384xbf16>, vector<384x512xbf16>, vector<6x512xf32> -> vector<6x512xf32>
    %c1_30 = arith.constant 1 : index
    %c0_31 = arith.constant 0 : index
    %c0_32 = arith.constant 0 : index
    %28 = vector.load %arg3[%c1_30, %c0_31, %c0_32] : memref<5x384x512xbf16, #tpu.memory_space<vmem>>, vector<1x384x512xbf16>
    %29 = vector.shape_cast %28 : vector<1x384x512xbf16> to vector<384x512xbf16>
    %cst_33 = arith.constant dense<0.000000e+00> : vector<6x512xf32>
    %30 = tpu.matmul %2, %29, %cst_33 {dimension_numbers = #tpu.dot_dimension_numbers<[1], [0], [0], [1], [0, 0, 1, 1], [], []>} : vector<6x384xbf16>, vector<384x512xbf16>, vector<6x512xf32> -> vector<6x512xf32>
    %31 = arith.addf %27, %30 : vector<6x512xf32>
    %c2_34 = arith.constant 2 : index
    %c0_35 = arith.constant 0 : index
    %c0_36 = arith.constant 0 : index
    %32 = vector.load %arg3[%c2_34, %c0_35, %c0_36] : memref<5x384x512xbf16, #tpu.memory_space<vmem>>, vector<1x384x512xbf16>
    %33 = vector.shape_cast %32 : vector<1x384x512xbf16> to vector<384x512xbf16>
    %cst_37 = arith.constant dense<0.000000e+00> : vector<6x512xf32>
    %34 = tpu.matmul %3, %33, %cst_37 {dimension_numbers = #tpu.dot_dimension_numbers<[1], [0], [0], [1], [0, 0, 1, 1], [], []>} : vector<6x384xbf16>, vector<384x512xbf16>, vector<6x512xf32> -> vector<6x512xf32>
    %35 = arith.addf %31, %34 : vector<6x512xf32>
    %c3_38 = arith.constant 3 : index
    %c0_39 = arith.constant 0 : index
    %c0_40 = arith.constant 0 : index
    %36 = vector.load %arg3[%c3_38, %c0_39, %c0_40] : memref<5x384x512xbf16, #tpu.memory_space<vmem>>, vector<1x384x512xbf16>
    %37 = vector.shape_cast %36 : vector<1x384x512xbf16> to vector<384x512xbf16>
    %cst_41 = arith.constant dense<0.000000e+00> : vector<6x512xf32>
    %38 = tpu.matmul %4, %37, %cst_41 {dimension_numbers = #tpu.dot_dimension_numbers<[1], [0], [0], [1], [0, 0, 1, 1], [], []>} : vector<6x384xbf16>, vector<384x512xbf16>, vector<6x512xf32> -> vector<6x512xf32>
    %39 = arith.addf %35, %38 : vector<6x512xf32>
    %c4_42 = arith.constant 4 : index
    %c0_43 = arith.constant 0 : index
    %c0_44 = arith.constant 0 : index
    %40 = vector.load %arg3[%c4_42, %c0_43, %c0_44] : memref<5x384x512xbf16, #tpu.memory_space<vmem>>, vector<1x384x512xbf16>
    %41 = vector.shape_cast %40 : vector<1x384x512xbf16> to vector<384x512xbf16>
    %cst_45 = arith.constant dense<0.000000e+00> : vector<6x512xf32>
    %42 = tpu.matmul %5, %41, %cst_45 {dimension_numbers = #tpu.dot_dimension_numbers<[1], [0], [0], [1], [0, 0, 1, 1], [], []>} : vector<6x384xbf16>, vector<384x512xbf16>, vector<6x512xf32> -> vector<6x512xf32>
    %43 = arith.addf %39, %42 : vector<6x512xf32>
    %44 = arith.maximumf %24, %43 : vector<6x512xf32>
    %45 = vector.extract_strided_slice %44 {offsets = [0, 0], sizes = [6, 256], strides = [1, 1]} : vector<6x512xf32> to vector<6x256xf32>
    %46 = vector.extract_strided_slice %44 {offsets = [0, 256], sizes = [6, 256], strides = [1, 1]} : vector<6x512xf32> to vector<6x256xf32>
    %47 = arith.maximumf %45, %46 : vector<6x256xf32>
    %c0_46 = arith.constant 0 : index
    %c0_47 = arith.constant 0 : index
    %48 = vector.load %arg4[%c0_46, %c0_47] : memref<1x256xf32, #tpu.memory_space<vmem>>, vector<1x256xf32>
    %49 = vector.broadcast %48 : vector<1x256xf32> to vector<6x256xf32>
    %50 = arith.addf %47, %49 : vector<6x256xf32>
    %cst_48 = arith.constant 0.000000e+00 : f32
    %51 = vector.broadcast %cst_48 : f32 to vector<6x256xf32>
    %52 = arith.maximumf %50, %51 : vector<6x256xf32>
    %53 = arith.truncf %52 : vector<6x256xf32> to vector<6x256xbf16>
    %c0_49 = arith.constant 0 : index
    %c0_50 = arith.constant 0 : index
    %54 = vector.load %arg5[%c0_49, %c0_50] : memref<8x256xbf16, #tpu.memory_space<vmem>>, vector<6x256xbf16>
    tpu.vector_store %arg5[%c0_49, %c0_50], %53 {strides = array<i32>} : memref<8x256xbf16, #tpu.memory_space<vmem>>, vector<6x256xbf16>,
    return
  }
  func.func @transform_0(%arg0: i32) -> (i32, i32) {
    %c0_i32 = arith.constant 0 : i32
    %c0_i32_0 = arith.constant 0 : i32
    return %arg0, %c0_i32 : i32, i32
  }
  func.func @transform_1(%arg0: i32) -> (i32, i32) {
    %c0_i32 = arith.constant 0 : i32
    %c0_i32_0 = arith.constant 0 : i32
    return %arg0, %c0_i32 : i32, i32
  }
  func.func @transform_2(%arg0: i32) -> (i32, i32, i32) {
    %c0_i32 = arith.constant 0 : i32
    %c0_i32_0 = arith.constant 0 : i32
    %c0_i32_1 = arith.constant 0 : i32
    %c0_i32_2 = arith.constant 0 : i32
    return %c0_i32, %c0_i32_0, %c0_i32_1 : i32, i32, i32
  }
  func.func @transform_3(%arg0: i32) -> (i32, i32) {
    %c0_i32 = arith.constant 0 : i32
    %c0_i32_0 = arith.constant 0 : i32
    %c0_i32_1 = arith.constant 0 : i32
    return %c0_i32, %c0_i32_0 : i32, i32
  }
  func.func @transform_4(%arg0: i32) -> (i32, i32) {
    %c0_i32 = arith.constant 0 : i32
    %c0_i32_0 = arith.constant 0 : i32
    return %arg0, %c0_i32 : i32, i32
  }
}

module attributes {stable_mosaic.version = 11 : i64} {
  func.func @_fc_softmax_kernel(%arg0: i32, %arg1: memref<2x1024xbf16, #tpu.memory_space<vmem>>, %arg2: memref<1024x128xbf16, #tpu.memory_space<vmem>>, %arg3: memref<1x128xf32, #tpu.memory_space<vmem>>, %arg4: memref<2x128xf32, #tpu.memory_space<vmem>>) attributes {dimension_semantics = [#tpu.dimension_semantics<parallel>], iteration_bounds = array<i64: 1>, scalar_prefetch = 0 : i64, scratch_operands = 0 : i64, tpu.core_type = #tpu.core_type<tc>, window_params = [{transform_indices = @transform_0, window_bounds = array<i64: 2, 1024>}, {pipeline_mode = #tpu.pipeline_mode<synchronous>, transform_indices = @transform_1, window_bounds = array<i64: 1024, 128>}, {pipeline_mode = #tpu.pipeline_mode<synchronous>, transform_indices = @transform_2, window_bounds = array<i64: 1, 128>}, {transform_indices = @transform_3, window_bounds = array<i64: 2, 128>}]} {
    %c0 = arith.constant 0 : index
    %c0_0 = arith.constant 0 : index
    %0 = vector.load %arg1[%c0, %c0_0] : memref<2x1024xbf16, #tpu.memory_space<vmem>>, vector<2x1024xbf16>
    %c0_1 = arith.constant 0 : index
    %c0_2 = arith.constant 0 : index
    %1 = vector.load %arg2[%c0_1, %c0_2] : memref<1024x128xbf16, #tpu.memory_space<vmem>>, vector<1024x128xbf16>
    %cst = arith.constant dense<0.000000e+00> : vector<2x128xf32>
    %2 = tpu.matmul %0, %1, %cst {dimension_numbers = #tpu.dot_dimension_numbers<[1], [0], [0], [1], [0, 0, 1, 1], [], []>} : vector<2x1024xbf16>, vector<1024x128xbf16>, vector<2x128xf32> -> vector<2x128xf32>
    %c0_3 = arith.constant 0 : index
    %c0_4 = arith.constant 0 : index
    %3 = vector.load %arg3[%c0_3, %c0_4] : memref<1x128xf32, #tpu.memory_space<vmem>>, vector<1x128xf32>
    %4 = vector.broadcast %3 : vector<1x128xf32> to vector<2x128xf32>
    %5 = arith.addf %2, %4 : vector<2x128xf32>
    %cst_5 = arith.constant dense<0xFF800000> : vector<2xf32>
    %6 = vector.multi_reduction <maximumf>, %5, %cst_5 [1] : vector<2x128xf32> to vector<2xf32>
    %7 = vector.shape_cast %6 : vector<2xf32> to vector<2x1xf32>
    %8 = vector.broadcast %7 : vector<2x1xf32> to vector<2x128xf32>
    %9 = arith.subf %5, %8 : vector<2x128xf32>
    %10 = math.exp %9 : vector<2x128xf32>
    %cst_6 = arith.constant dense<0.000000e+00> : vector<2xf32>
    %11 = vector.multi_reduction <add>, %10, %cst_6 [1] : vector<2x128xf32> to vector<2xf32>
    %12 = vector.shape_cast %11 : vector<2xf32> to vector<2x1xf32>
    %13 = tpu.reciprocal %12 {approx = true} : vector<2x1xf32> -> vector<2x1xf32>
    %14 = vector.broadcast %13 : vector<2x1xf32> to vector<2x128xf32>
    %15 = arith.mulf %10, %14 : vector<2x128xf32>
    %c0_7 = arith.constant 0 : index
    %c0_8 = arith.constant 0 : index
    %16 = vector.load %arg4[%c0_7, %c0_8] : memref<2x128xf32, #tpu.memory_space<vmem>>, vector<2x128xf32>
    tpu.vector_store %arg4[%c0_7, %c0_8], %15 {strides = array<i32>} : memref<2x128xf32, #tpu.memory_space<vmem>>, vector<2x128xf32>,
    return
  }
  func.func @transform_0(%arg0: i32) -> (i32, i32) {
    %c0_i32 = arith.constant 0 : i32
    %c0_i32_0 = arith.constant 0 : i32
    return %arg0, %c0_i32 : i32, i32
  }
  func.func @transform_1(%arg0: i32) -> (i32, i32) {
    %c0_i32 = arith.constant 0 : i32
    %c0_i32_0 = arith.constant 0 : i32
    %c0_i32_1 = arith.constant 0 : i32
    return %c0_i32, %c0_i32_0 : i32, i32
  }
  func.func @transform_2(%arg0: i32) -> (i32, i32) {
    %c0_i32 = arith.constant 0 : i32
    %c0_i32_0 = arith.constant 0 : i32
    %c0_i32_1 = arith.constant 0 : i32
    return %c0_i32, %c0_i32_0 : i32, i32
  }
  func.func @transform_3(%arg0: i32) -> (i32, i32) {
    %c0_i32 = arith.constant 0 : i32
    %c0_i32_0 = arith.constant 0 : i32
    return %arg0, %c0_i32 : i32, i32
  }
}

</mosaic_0001>

<bundles_post_ra>
// kernel: tile.13
= control target key start
LH: loop header
LB: loop body
LE: loop exit
PB: predicated region body
PF: predicated region fallthrough
CT: control target
= control target key end

     0   :  { %s28_s0 = inlined_call_operand.vmem [shape: f32[32], index: 0, kind: input, shape index: {}]   ;;  %s29_s1 = inlined_call_operand.vmem [shape: f32[12,32], index: 1, kind: output, shape index: {}]  }
   0x1   :  { %v4_v0 = vld [vmem:[%s28_s0] ss:$0 sm:$0xff] }
   0x2   :  { %5 = vst [vmem:[%s29_s1] sm:$0xff] %v4_v0  ;;  %8 = vst [vmem:[%s29_s1 + $0x8] sm:$0xff] %v4_v0 }

// kernel: tile.14
= control target key start
LH: loop header
LB: loop body
LE: loop exit
PB: predicated region body
PF: predicated region fallthrough
CT: control target
= control target key end

     0   :  { %s53_s8 = smov 96   ;;  %vm3_vm0 = vcmask 261120   ;;  %s55_s15 = smov 64   ;;  %vm9_vm1 = vcmask 1048320   ;;  %vm15_vm2 = vcmask 785920   ;;  %vm21_vm3 = vcmask 523520   ;;  %s87_s0 = inlined_call_operand.vmem [shape: f32[12,32], index: 0, kind: input, shape index: {}]   ;;  %s88_s1 = inlined_call_operand.vmem [shape: f32[1,384], index: 1, kind: output, shape index: {}]  }
   0x1   :  { %v45_v0 = vld [vmem:[%s87_s0 + $0x3] ss:$4 sm:$0x7]   ;;  %v46_v1 = vld [vmem:[%s87_s0 + $0x2] ss:$4 sm:$0x7]  }
   0x2   :  { %7 = vrot.lane.b32.xlu0 %v45_v0, %s53_s8  ;;  %v47_v2 = vld [vmem:[%s87_s0 + $0x1] ss:$4 sm:$0x7]   ;;  %v2_v3 = vld [vmem:[%s87_s0] ss:$4 sm:$0x7]  }
   0x3   :  { %s54_s0 = smov 32   ;;  %4 = vst.msk [vmem:[#allocation0] ss:$8 sm:$0x7] %vm3_vm0, %v2_v3  }
   0x4   :  { %19 = vrot.lane.b32.xlu1 %v47_v2, %s54_s0 }
   0x6   :  { %13 = vrot.lane.b32.xlu0 %v46_v1, %s55_s15 }
  0x74   :  { %v8_v4 = vpop.permute.xlu0 %7  }
  0x75   :  { %10 = vst.msk [vmem:[#allocation0] ss:$8 sm:$0x7] %vm9_vm1, %v8_v4  }
  0x76   :  { %v20_v5 = vpop.permute.xlu1 %19  }
  0x78   :  { %v14_v6 = vpop.permute.xlu0 %13  }
  0x79   :  { %16 = vst.msk [vmem:[#allocation0] ss:$8 sm:$0x7] %vm15_vm2, %v14_v6  }
  0x7a   :  { %22 = vst.msk [vmem:[#allocation0] ss:$8 sm:$0x7] %vm21_vm3, %v20_v5  }
  0x81   :  { %v27_v7 = vld [vmem:[#allocation0] sm:$0x1]  ;;  %v32_v8 = vld [vmem:[#allocation0 + $0x8] sm:$0x1]  ;;  %v38_v9 = vld [vmem:[#allocation0 + $0x10] sm:$0x1] }
  0x82   :  { %30 = vst [vmem:[%s88_s1] sm:$0x1] %v27_v7  ;;  %48 = vst [vmem:[%s88_s1 + $0x1] sm:$0x1] %v32_v8 }
  0x83   :  { %49 = vst [vmem:[%s88_s1 + $0x2] sm:$0x1] %v38_v9 }

// kernel: cnn_forward.3
= control target key start
LH: loop header
LB: loop body
LE: loop exit
PB: predicated region body
PF: predicated region fallthrough
CT: control target
= control target key end

     0   :  { %s2554_s15 = smov 0   ;;  %s3239_s0 = inlined_call_operand.vmem [shape: bf16[32,28], index: 0, kind: input, shape index: {}]   ;;  %s3240_s1 = inlined_call_operand.vmem [shape: bf16[32,28], index: 1, kind: input, shape index: {}]   ;;  %s3241_s2 = inlined_call_operand.vmem [shape: bf16[5,28,768], index: 2, kind: input, shape index: {}]   ;;  %s3242_s3 = inlined_call_operand.vmem [shape: f32[1,384], index: 3, kind: input, shape index: {}]   ;;  %s3243_s4 = inlined_call_operand.vmem [shape: bf16[32,384], index: 4, kind: output, shape index: {}]  }
   0x1 LB: > { %s2219_s16 = sadd.s32 4294967295, %s2526_s15   ;;  %p2223_p0 = scmp.ge.s32.totalorder %s2526_s15, 1  ;;  %s2526_s15 = sphi %s2554_s15, %s14_s15  }
   0x2   : > { %p174_p1 = scmp.lt.s32.totalorder %s2526_s15, 3 }
   0x4   : > { %p175_p2 = pnand %p2223_p0, %p174_p1 }
   0x6   : > { %178 = sbr.rel (%p175_p2) target bundleno = 347 (0x15b), region = 36 }
   0xb   : > { %v2565_v0 = vld [vmem:[%s3241_s2 + $0x94] ss:$24 sps:$4 sm:$0x3f]   ;;  %vm322_vm0 = vcmask 1045504   ;;  %v3244_v3 = vmov 0   ;;  %s2224_s29 = sshll.u32 %s2219_s16, 1 }
   0xc   : > { %2255 = vmatprep.subr.msk.bf16.mxu0 %vm322_vm0, %v2565_v0  ;;  %v2572_v1 = vld [vmem:[%s3241_s2 + $0x9c] ss:$24 sps:$4 sm:$0x3f]   ;;  %v2428_v2 = vld [vmem:[%s3241_s2 + $0x90] ss:$24 sps:$4 sm:$0x3f]   ;;  %373 = vmatprep.mubr.bf16.mxu0 %v3244_v3 }
   0xd   : > { %v2429_v4 = vld [vmem:[%s3241_s2 + $0x98] ss:$24 sps:$4 sm:$0x3f]   ;;  %v2584_v5 = vld [vmem:[%s3241_s2 + $0x64] ss:$24 sps:$4 sm:$0xff]   ;;  %416 = vmatprep.mubr.bf16.mxu1 %v3244_v3  ;;  %2257 = vmatprep.subr.msk.bf16.mxu1 %vm322_vm0, %v2572_v1  ;;  %v2590_v6 = vsel %vm322_vm0, %v2428_v2, 0 }
   0xe   : > { %v2595_v7 = vld [vmem:[%s3241_s2 + $0x6c] ss:$24 sps:$4 sm:$0xff]   ;;  %354 = vmatpush1.bf16.msra.mxu0 %v2590_v6  ;;  %v2599_v8 = vsel %vm322_vm0, %v2429_v4, 0  ;;  %v2604_v9 = vld [vmem:[%s3241_s2 + $0x60] ss:$24 sps:$4 sm:$0xff]   ;;  %p207_p3 = scmp.lt.s32.totalorder %s2224_s29, 3 }
   0xf   : > { %v2609_v10 = vld [vmem:[%s3241_s2 + $0x68] ss:$24 sps:$4 sm:$0xff]   ;;  %397 = vmatpush1.bf16.msra.mxu1 %v2599_v8  ;;  %355 = vmatprep.subr.bf16.mxu0 %v2584_v5  ;;  %v2619_v11 = vld [vmem:[%s3241_s2 + $0xa4] ss:$24 sps:$4 sm:$0x3f]   ;;  %vm318_vm1 = vcmask 228352  }
  0x10   : > { %398 = vmatprep.subr.bf16.mxu1 %v2595_v7  ;;  %s3295_s29 = smov (!%p207_p3, %s2224_s29), 3  ;;  %v2624_v12 = vld [vmem:[%s3241_s2 + $0x34] ss:$24 sps:$4 sm:$0x3f]   ;;  %v2667_v21 = vld [vmem:[%s3241_s2 + $0x4] ss:$24 sps:$4 sm:$0xff]  }
  0x11   : > { %v2442_v13 = vld [vmem:[%s3241_s2 + $0xa0] ss:$24 sps:$4 sm:$0x3f]   ;;  %s2225_s14 = sshll.u32 %s3295_s29, 2  ;;  %v2662_v20 = vld [vmem:[%s3241_s2 + $0x74] ss:$24 sps:$4 sm:$0xff]  }
  0x12   : > { %356 = vmatpush1.bf16.msra.mxu0 %v2604_v9  ;;  %v2443_v14 = vld [vmem:[%s3241_s2 + $0x30] ss:$24 sps:$4 sm:$0x3f]   ;;  %s2638_s20 = scalar_lea.vmem %s3240_s1, %s2225_s14  ;;  %s2645_s23 = scalar_lea.vmem %s3239_s0, %s2225_s14  ;;  %v2652_v17 = vsel %vm322_vm0, %v2442_v13, 0  ;;  %v2677_v23 = vld [vmem:[%s3241_s2] ss:$24 sps:$4 sm:$0xff]  }
  0x13   : > { %399 = vmatpush1.bf16.msra.mxu1 %v2609_v10  ;;  %2259 = vmatprep.subr.msk.bf16.mxu0 %vm322_vm0, %v2619_v11  ;;  %v228_v15 = vld [vmem:[%s2638_s20] sm:$0xf]  ;;  %v229_v16 = vld [vmem:[%s2638_s20 + $0x4] sm:$0x7]  ;;  %v2657_v19 = vsel %vm322_vm0, %v2443_v14, 0  ;;  %s2414_s6 = smul.u32 12, %s3295_s29 }
  0x14   : > { %2274 = vmatprep.subr.msk.bf16.mxu1 %vm322_vm0, %v2624_v12  ;;  %v2654_v18 = vcombine.low %v228_v15, %v229_v16  ;;  %v2672_v22 = vld [vmem:[%s3241_s2 + $0x70] ss:$24 sps:$4 sm:$0xff]   ;;  %v226_v24 = vld [vmem:[%s2645_s23] sm:$0xf]  ;;  %v227_v25 = vld [vmem:[%s2645_s23 + $0x4] sm:$0x7] }
  0x15   : > { %v2690_v26 = vld [vmem:[%s3241_s2 + $0x3c] ss:$24 sps:$4 sm:$0x3f]   ;;  %v2457_v28 = vld [vmem:[%s3241_s2 + $0x38] ss:$24 sps:$4 sm:$0x3f]   ;;  %v2261_v29 = vcombine.low %v226_v24, %v227_v25  ;;  %s223_s8 = scalar_lea.vmem %s3243_s4, %s2414_s6 }
  0x16   : > { %2256 = vmatmul.mubr.msk.bf16.vlgmr.msra.gmra.mxu0 %vm318_vm1, %v2654_v18  ;;  %2258 = vmatmul.mubr.msk.bf16.vlgmr.msra.gmra.mxu1 %vm318_vm1, %v2654_v18  ;;  %v2697_v27 = vld [vmem:[%s3241_s2 + $0x44] ss:$24 sps:$4 sm:$0x3f]   ;;  %v2458_v30 = vld [vmem:[%s3241_s2 + $0x40] ss:$24 sps:$4 sm:$0x3f]  }
  0x17   : > { %440 = vmatpush1.bf16.msra.mxu0 %v2652_v17  ;;  %563 = vmatpush1.bf16.msra.mxu1 %v2657_v19  ;;  %v2710_v31 = vld [vmem:[%s2645_s23 + $0x4] sm:$0xf]  ;;  %v2713_v32 = vsel %vm322_vm0, %v2457_v28, 0  ;;  %v2725_v34 = vsel %vm322_vm0, %v2458_v30, 0  ;;  %v2730_v35 = vld [vmem:[%s3241_s2 + $0x14] ss:$24 sps:$4 sm:$0xff]  }
  0x18   : > { %441 = vmatprep.subr.bf16.mxu0 %v2662_v20  ;;  %564 = vmatprep.subr.bf16.mxu1 %v2667_v21  ;;  %v2718_v33 = vld [vmem:[%s3241_s2 + $0xc] ss:$24 sps:$4 sm:$0xff]   ;;  %v2735_v36 = vld [vmem:[%s3241_s2 + $0x8] ss:$24 sps:$4 sm:$0xff]   ;;  %v2292_v38 = vcombine.low %v226_v24, %v2710_v31 }
  0x19   : > { %459 = vmatprep.mubr.bf16.mxu0 %v3244_v3  ;;  %582 = vmatprep.mubr.bf16.mxu1 %v3244_v3  ;;  %v2740_v37 = vld [vmem:[%s3241_s2 + $0x10] ss:$24 sps:$4 sm:$0xff]   ;;  %v2749_v39 = vld [vmem:[%s3241_s2 + $0xf4] ss:$24 sps:$4 sm:$0x3f]  }
  0x1a   : > { %v2754_v40 = vld [vmem:[%s3241_s2 + $0xfc] ss:$24 sps:$4 sm:$0x3f]   ;;  %v2469_v41 = vld [vmem:[%s3241_s2 + $0xf0] ss:$24 sps:$4 sm:$0x3f]  }
  0x1b   : > { %442 = vmatpush1.bf16.msra.mxu0 %v2672_v22  ;;  %565 = vmatpush1.bf16.msra.mxu1 %v2677_v23  ;;  %v2470_v42 = vld [vmem:[%s3241_s2 + $0xf8] ss:$24 sps:$4 sm:$0x3f]   ;;  %v2769_v43 = vld [vmem:[%s2638_s20 + $0x4] sm:$0xf]  ;;  %v698_v44 = vshll.u32 %v2292_v38, 16 }
  0x1c   : > { %2276 = vmatprep.subr.msk.bf16.mxu0 %vm322_vm0, %v2690_v26  ;;  %2278 = vmatprep.subr.msk.bf16.mxu1 %vm322_vm0, %v2697_v27  ;;  %v2778_v45 = vsel %vm322_vm0, %v2469_v41, 0  ;;  %v2781_v46 = vsel %vm322_vm0, %v2470_v42, 0  ;;  %v2786_v47 = vld [vmem:[%s3241_s2 + $0xc4] ss:$24 sps:$4 sm:$0xff]   ;;  %v2323_v49 = vcombine.low %v228_v15, %v2769_v43  ;;  %v696_v50 = vshrl.u32 %v2292_v38, 16 }
  0x1d   : > { %v2791_v48 = vld [vmem:[%s3241_s2 + $0xcc] ss:$24 sps:$4 sm:$0xff]   ;;  %v2797_v51 = vld [vmem:[%s3241_s2 + $0xc0] ss:$24 sps:$4 sm:$0xff]   ;;  %v700_v52 = vrot.slane %v698_v44, 1 }
  0x1e   : > { %2260 = vmatmul.mubr.msk.bf16.vlgmr.msra.gmra.mxu0 %vm318_vm1, %v2654_v18  ;;  %2275 = vmatmul.mubr.msk.bf16.vlgmr.msra.gmra.mxu1 %vm318_vm1, %v2261_v29  ;;  %v2804_v53 = vld [vmem:[%s3241_s2 + $0x104] ss:$24 sps:$4 sm:$0x3f]   ;;  %v2809_v54 = vld [vmem:[%s3241_s2 + $0x154] ss:$24 sps:$4 sm:$0x3f]  }
  0x1f   : > { %606 = vmatpush1.bf16.msra.mxu0 %v2713_v32  ;;  %649 = vmatpush1.bf16.msra.mxu1 %v2725_v34  ;;  %v2816_v55 = vld [vmem:[%s3241_s2 + $0xc8] ss:$24 sps:$4 sm:$0xff]   ;;  %v937_v58 = vshll.u32 %v2323_v49, 16  ;;  %v2828_v59 = vor.u32 %v700_v52, %v696_v50  ;;  %v2835_v60 = vld [vmem:[%s3241_s2 + $0xd4] ss:$24 sps:$4 sm:$0xff]   ;;  %v935_v61 = vshrl.u32 %v2323_v49, 16 }
  0x20   : > { %607 = vmatprep.subr.bf16.mxu0 %v2718_v33  ;;  %650 = vmatprep.subr.bf16.mxu1 %v2730_v35  ;;  %v2481_v56 = vld [vmem:[%s3241_s2 + $0x100] ss:$24 sps:$4 sm:$0x3f]   ;;  %v2482_v57 = vld [vmem:[%s3241_s2 + $0x150] ss:$24 sps:$4 sm:$0x3f]  }
  0x21   : > { %625 = vmatprep.mubr.bf16.mxu0 %v3244_v3  ;;  %668 = vmatprep.mubr.bf16.mxu1 %v3244_v3  ;;  %v2842_v62 = vsel %vm322_vm0, %v2481_v56, 0  ;;  %v2845_v63 = vsel %vm322_vm0, %v2482_v57, 0  ;;  %v2850_v2 = vld [vmem:[%s3241_s2 + $0x124] ss:$24 sps:$4 sm:$0xff]   ;;  %v2855_v4 = vld [vmem:[%s3241_s2 + $0xd0] ss:$24 sps:$4 sm:$0xff]  }
  0x22   : > { %v2860_v13 = vld [vmem:[%s3241_s2 + $0x120] ss:$24 sps:$4 sm:$0xff]   ;;  %v939_v14 = vrot.slane %v937_v58, 1  ;;  %v2869_v15 = vld [vmem:[%s3241_s2 + $0x15c] ss:$24 sps:$4 sm:$0x3f]  }
  0x23   : > { %608 = vmatpush1.bf16.msra.mxu0 %v2735_v36  ;;  %651 = vmatpush1.bf16.msra.mxu1 %v2740_v37  ;;  %v2876_v16 = vld [vmem:[%s3241_s2 + $0x164] ss:$24 sps:$4 sm:$0x3f]   ;;  %v2493_v24 = vld [vmem:[%s3241_s2 + $0x158] ss:$24 sps:$4 sm:$0x3f]  }
  0x24   : > { %2305 = vmatprep.subr.msk.bf16.mxu0 %vm322_vm0, %v2749_v39  ;;  %2307 = vmatprep.subr.msk.bf16.mxu1 %vm322_vm0, %v2754_v40  ;;  %v2494_v25 = vld [vmem:[%s3241_s2 + $0x160] ss:$24 sps:$4 sm:$0x3f]   ;;  %v2888_v28 = vor.u32 %v939_v14, %v935_v61  ;;  %v2902_v30 = vsel %vm322_vm0, %v2493_v24, 0  ;;  %v2910_v41 = vld [vmem:[%s3241_s2 + $0x134] ss:$24 sps:$4 sm:$0xff]  }
  0x25   : > { %v2905_v38 = vsel %vm322_vm0, %v2494_v25, 0  ;;  %v2913_v42 = vld [vmem:[%s2638_s20] sm:$0xe]  ;;  %v2927_v49 = vld [vmem:[%s3241_s2 + $0x130] ss:$24 sps:$4 sm:$0xff]  }
  0x26   : > { %2277 = vmatmul.mubr.msk.bf16.vlgmr.msra.gmra.mxu0 %vm318_vm1, %v2261_v29  ;;  %2279 = vmatmul.mubr.msk.bf16.vlgmr.msra.gmra.mxu1 %vm318_vm1, %v2261_v29  ;;  %v2895_v29 = vld [vmem:[%s3241_s2 + $0x12c] ss:$24 sps:$4 sm:$0xff]   ;;  %v2922_v44 = vld [vmem:[%s3241_s2 + $0x128] ss:$24 sps:$4 sm:$0xff]   ;;  %3252 = vst [vmem:[#allocation2_spill] sm:$0xff] %v2927_v49 }
  0x27   : > { %790 = vmatpush1.bf16.msra.mxu0 %v2778_v45  ;;  %833 = vmatpush1.bf16.msra.mxu1 %v2781_v46  ;;  %v2936_v52 = vld [vmem:[%s3241_s2 + $0x1b4] ss:$24 sps:$4 sm:$0x3f]   ;;  %v2505_v57 = vld [vmem:[%s3241_s2 + $0x1b0] ss:$24 sps:$4 sm:$0x3f]  }
  0x28   : > { %791 = vmatprep.subr.bf16.mxu0 %v2786_v47  ;;  %834 = vmatprep.subr.bf16.mxu1 %v2791_v48  ;;  %v2941_v56 = vld [vmem:[%s3241_s2 + $0x1bc] ss:$24 sps:$4 sm:$0x3f]   ;;  %v2506_v58 = vld [vmem:[%s3241_s2 + $0x1b8] ss:$24 sps:$4 sm:$0x3f]  }
  0x29   : > { %809 = vmatprep.mubr.bf16.mxu0 %v3244_v3  ;;  %852 = vmatprep.mubr.bf16.mxu1 %v3244_v3  ;;  %3253 = vst [vmem:[#allocation3_spill] sm:$0xff] %v2941_v56  ;;  %v232_v61 = vld [vmem:[%s2645_s23] sm:$0xe]  ;;  %v2961_v14 = vsel %vm322_vm0, %v2505_v57, 0  ;;  %v2964_v24 = vsel %vm322_vm0, %v2506_v58, 0 }
  0x2a   : > { %3254 = vst [vmem:[#allocation4_spill] sm:$0xff] %v2964_v24  ;;  %v2969_v25 = vld [vmem:[%s3241_s2 + $0x184] ss:$24 sps:$4 sm:$0xff]   ;;  %v2986_v57 = vld [vmem:[%s3241_s2 + $0x180] ss:$24 sps:$4 sm:$0xff]  }
  0x2b   : > { %792 = vmatpush1.bf16.msra.mxu0 %v2797_v51  ;;  %835 = vmatpush1.bf16.msra.mxu1 %v2816_v55  ;;  %v2974_v50 = vld [vmem:[%s3241_s2 + $0x18c] ss:$24 sps:$4 sm:$0xff]   ;;  %v2991_v58 = vld [vmem:[%s3241_s2 + $0x188] ss:$24 sps:$4 sm:$0xff]  }
  0x2c   : > { %2309 = vmatprep.subr.msk.bf16.mxu0 %vm322_vm0, %v2804_v53  ;;  %2336 = vmatprep.subr.msk.bf16.mxu1 %vm322_vm0, %v2809_v54  ;;  %3255 = vst [vmem:[#allocation5_spill] sm:$0xff] %v2974_v50 }
  0x2e   : > { %2306 = vmatmul.mubr.msk.bf16.vlgmr.msra.gmra.mxu0 %vm318_vm1, %v2828_v59  ;;  %2308 = vmatmul.mubr.msk.bf16.vlgmr.msra.gmra.mxu1 %vm318_vm1, %v2828_v59 }
  0x2f   : > { %876 = vmatpush1.bf16.msra.mxu0 %v2842_v62  ;;  %1029 = vmatpush1.bf16.msra.mxu1 %v2845_v63 }
  0x30   : > { %877 = vmatprep.subr.bf16.mxu0 %v2835_v60  ;;  %1030 = vmatprep.subr.bf16.mxu1 %v2850_v2 }
  0x31   : > { %895 = vmatprep.mubr.bf16.mxu0 %v3244_v3  ;;  %1048 = vmatprep.mubr.bf16.mxu1 %v3244_v3 }
  0x33   : > { %878 = vmatpush1.bf16.msra.mxu0 %v2855_v4  ;;  %1031 = vmatpush1.bf16.msra.mxu1 %v2860_v13 }
  0x34   : > { %2338 = vmatprep.subr.msk.bf16.mxu0 %vm322_vm0, %v2869_v15  ;;  %2340 = vmatprep.subr.msk.bf16.mxu1 %vm322_vm0, %v2876_v16 }
  0x36   : > { %2310 = vmatmul.mubr.msk.bf16.vlgmr.msra.gmra.mxu0 %vm318_vm1, %v2828_v59  ;;  %2337 = vmatmul.mubr.msk.bf16.vlgmr.msra.gmra.mxu1 %vm318_vm1, %v2888_v28 }
  0x37   : > { %1072 = vmatpush1.bf16.msra.mxu0 %v2902_v30  ;;  %1115 = vmatpush1.bf16.msra.mxu1 %v2905_v38 }
  0x38   : > { %1073 = vmatprep.subr.bf16.mxu0 %v2895_v29  ;;  %1116 = vmatprep.subr.bf16.mxu1 %v2910_v41 }
  0x39   : > { %1091 = vmatprep.mubr.bf16.mxu0 %v3244_v3  ;;  %1134 = vmatprep.mubr.bf16.mxu1 %v3244_v3  ;;  %v2354_v3 = vcombine.low %v232_v61, %v2710_v31  ;;  %v2998_v31 = vld [vmem:[%s3241_s2 + $0x1c4] ss:$24 sps:$4 sm:$0x3f]   ;;  %v2515_v61 = vld [vmem:[%s3241_s2 + $0x1c0] ss:$24 sps:$4 sm:$0x3f]  }
  0x3b   : > { %1074 = vmatpush1.bf16.msra.mxu0 %v2922_v44  ;;  %1117 = vmatpush1.bf16.msra.mxu1 %v2927_v49  ;;  %v3019_v49 = vld [vmem:[%s3241_s2 + $0x194] ss:$24 sps:$4 sm:$0xff]  }
  0x3c   : > { %2367 = vmatprep.subr.msk.bf16.mxu0 %vm322_vm0, %v2936_v52  ;;  %2369 = vmatprep.subr.msk.bf16.mxu1 %vm322_vm0, %v2941_v56  ;;  %v3005_v56 = vrot.slane %v2354_v3, 1 }
  0x3e   : > { %2339 = vmatmul.mubr.msk.bf16.vlgmr.msra.gmra.mxu0 %vm318_vm1, %v2888_v28  ;;  %2341 = vmatmul.mubr.msk.bf16.vlgmr.msra.gmra.mxu1 %vm318_vm1, %v2888_v28 }
  0x3f   : > { %1262 = vmatpush1.bf16.msra.mxu0 %v2961_v14  ;;  %1305 = vmatpush1.bf16.msra.mxu1 %v2964_v24  ;;  %v3256_v24 = vmov 0  }
  0x40   : > { %1263 = vmatprep.subr.bf16.mxu0 %v2969_v25  ;;  %1306 = vmatprep.subr.bf16.mxu1 %v2974_v50  ;;  %v3014_v50 = vsel %vm322_vm0, %v2515_v61, 0 }
  0x41   : > { %1281 = vmatprep.mubr.bf16.mxu0 %v3256_v24  ;;  %1324 = vmatprep.mubr.bf16.mxu1 %v3256_v24 }
  0x43   : > { %1264 = vmatpush1.bf16.msra.mxu0 %v2986_v57  ;;  %1307 = vmatpush1.bf16.msra.mxu1 %v2991_v58 }
  0x44   : > { %2371 = vmatprep.subr.msk.bf16.mxu0 %vm322_vm0, %v2998_v31  ;;  %2373 = vmatprep.subr.msk.bf16.mxu1 %vm322_vm0, %v2565_v0  ;;  %v3030_v0 = vld [vmem:[%s3241_s2 + $0x190] ss:$24 sps:$4 sm:$0xff]  }
  0x46   : > { %2368 = vmatmul.mubr.msk.bf16.vlgmr.msra.gmra.mxu0 %vm318_vm1, %v3005_v56  ;;  %2370 = vmatmul.mubr.msk.bf16.vlgmr.msra.gmra.mxu1 %vm318_vm1, %v3005_v56 }
  0x47   : > { %1348 = vmatpush1.bf16.msra.mxu0 %v3014_v50  ;;  %1403 = vmatpush1.bf16.msra.mxu1 %v2590_v6  ;;  %v3259_v6 = vld [vmem:[#allocation3_spill] sm:$0xff] }
  0x48   : > { %1349 = vmatprep.subr.bf16.mxu0 %v3019_v49  ;;  %1404 = vmatprep.subr.bf16.mxu1 %v2584_v5  ;;  %v3258_v5 = vld [vmem:[#allocation2_spill] sm:$0xff] }
  0x49   : > { %1367 = vmatprep.mubr.bf16.mxu0 %v3256_v24  ;;  %1422 = vmatprep.mubr.bf16.mxu1 %v3256_v24 }
  0x4b   : > { %1350 = vmatpush1.bf16.msra.mxu0 %v3030_v0  ;;  %1405 = vmatpush1.bf16.msra.mxu1 %v2604_v9 }
  0x4c   : > { %2375 = vmatprep.subr.msk.bf16.mxu0 %vm322_vm0, %v2572_v1  ;;  %2377 = vmatprep.subr.msk.bf16.mxu1 %vm322_vm0, %v2619_v11  ;;  %v3257_v1 = vcombine.low %v2913_v42, %v2769_v43 }
  0x4e   : > { %2372 = vmatmul.mubr.msk.bf16.vlgmr.msra.gmra.mxu0 %vm318_vm1, %v3005_v56  ;;  %2374 = vmatmul.mubr.msk.bf16.vlgmr.msra.gmra.mxu1 %vm318_vm1, %v2828_v59  ;;  %v1933_v3 = vrot.slane %v3257_v1, 1 }
  0x4f   : > { %1446 = vmatpush1.bf16.msra.mxu0 %v2599_v8  ;;  %1489 = vmatpush1.bf16.msra.mxu1 %v2652_v17  ;;  %v3261_v8 = vld [vmem:[#allocation5_spill] sm:$0xff] }
  0x50   : > { %1447 = vmatprep.subr.bf16.mxu0 %v2595_v7  ;;  %1490 = vmatprep.subr.bf16.mxu1 %v2662_v20  ;;  %v3260_v7 = vld [vmem:[#allocation4_spill] sm:$0xff] }
  0x51   : > { %1465 = vmatprep.mubr.bf16.mxu0 %v3256_v24  ;;  %1508 = vmatprep.mubr.bf16.mxu1 %v3256_v24 }
  0x53   : > { %1448 = vmatpush1.bf16.msra.mxu0 %v2609_v10  ;;  %1491 = vmatpush1.bf16.msra.mxu1 %v2672_v22 }
  0x54   : > { %2379 = vmatprep.subr.msk.bf16.mxu0 %vm322_vm0, %v2624_v12  ;;  %2381 = vmatprep.subr.msk.bf16.mxu1 %vm322_vm0, %v2690_v26 }
  0x56   : > { %2376 = vmatmul.mubr.msk.bf16.vlgmr.msra.gmra.mxu0 %vm318_vm1, %v2828_v59  ;;  %2378 = vmatmul.mubr.msk.bf16.vlgmr.msra.gmra.mxu1 %vm318_vm1, %v2828_v59 }
  0x57   : > { %1532 = vmatpush1.bf16.msra.mxu0 %v2657_v19  ;;  %1575 = vmatpush1.bf16.msra.mxu1 %v2713_v32 }
  0x58   : > { %1533 = vmatprep.subr.bf16.mxu0 %v2667_v21  ;;  %1576 = vmatprep.subr.bf16.mxu1 %v2718_v33 }
  0x59   : > { %1551 = vmatprep.mubr.bf16.mxu0 %v3256_v24  ;;  %1594 = vmatprep.mubr.bf16.mxu1 %v3256_v24 }
  0x5b   : > { %1534 = vmatpush1.bf16.msra.mxu0 %v2677_v23  ;;  %1577 = vmatpush1.bf16.msra.mxu1 %v2735_v36 }
  0x5c   : > { %2383 = vmatprep.subr.msk.bf16.mxu0 %vm322_vm0, %v2697_v27  ;;  %2385 = vmatprep.subr.msk.bf16.mxu1 %vm322_vm0, %v2749_v39 }
  0x5e   : > { %2380 = vmatmul.mubr.msk.bf16.vlgmr.msra.gmra.mxu0 %vm318_vm1, %v2654_v18  ;;  %2382 = vmatmul.mubr.msk.bf16.vlgmr.msra.gmra.mxu1 %vm318_vm1, %v2654_v18 }
  0x5f   : > { %1618 = vmatpush1.bf16.msra.mxu0 %v2725_v34  ;;  %1661 = vmatpush1.bf16.msra.mxu1 %v2778_v45 }
  0x60   : > { %1619 = vmatprep.subr.bf16.mxu0 %v2730_v35  ;;  %1662 = vmatprep.subr.bf16.mxu1 %v2786_v47 }
  0x61   : > { %1637 = vmatprep.mubr.bf16.mxu0 %v3256_v24  ;;  %1680 = vmatprep.mubr.bf16.mxu1 %v3256_v24 }
  0x63   : > { %1620 = vmatpush1.bf16.msra.mxu0 %v2740_v37  ;;  %1663 = vmatpush1.bf16.msra.mxu1 %v2797_v51 }
  0x64   : > { %2387 = vmatprep.subr.msk.bf16.mxu0 %vm322_vm0, %v2754_v40  ;;  %2389 = vmatprep.subr.msk.bf16.mxu1 %vm322_vm0, %v2804_v53 }
  0x66   : > { %2384 = vmatmul.mubr.msk.bf16.vlgmr.msra.gmra.mxu0 %vm318_vm1, %v2654_v18  ;;  %2386 = vmatmul.mubr.msk.bf16.vlgmr.msra.gmra.mxu1 %vm318_vm1, %v2888_v28 }
  0x67   : > { %1704 = vmatpush1.bf16.msra.mxu0 %v2781_v46  ;;  %1747 = vmatpush1.bf16.msra.mxu1 %v2842_v62 }
  0x68   : > { %1705 = vmatprep.subr.bf16.mxu0 %v2791_v48  ;;  %1748 = vmatprep.subr.bf16.mxu1 %v2835_v60 }
  0x69   : > { %1723 = vmatprep.mubr.bf16.mxu0 %v3256_v24  ;;  %1766 = vmatprep.mubr.bf16.mxu1 %v3256_v24 }
  0x6b   : > { %1706 = vmatpush1.bf16.msra.mxu0 %v2816_v55  ;;  %1749 = vmatpush1.bf16.msra.mxu1 %v2855_v4 }
  0x6c   : > { %2391 = vmatprep.subr.msk.bf16.mxu0 %vm322_vm0, %v2809_v54  ;;  %2393 = vmatprep.subr.msk.bf16.mxu1 %vm322_vm0, %v2869_v15 }
  0x6e   : > { %2388 = vmatmul.mubr.msk.bf16.vlgmr.msra.gmra.mxu0 %vm318_vm1, %v2888_v28  ;;  %2390 = vmatmul.mubr.msk.bf16.vlgmr.msra.gmra.mxu1 %vm318_vm1, %v2888_v28 }
  0x6f   : > { %1802 = vmatpush1.bf16.msra.mxu0 %v2845_v63  ;;  %1845 = vmatpush1.bf16.msra.mxu1 %v2902_v30 }
  0x70   : > { %1803 = vmatprep.subr.bf16.mxu0 %v2850_v2  ;;  %1846 = vmatprep.subr.bf16.mxu1 %v2895_v29 }
  0x71   : > { %1821 = vmatprep.mubr.bf16.mxu0 %v3256_v24  ;;  %1864 = vmatprep.mubr.bf16.mxu1 %v3256_v24 }
  0x73   : > { %1804 = vmatpush1.bf16.msra.mxu0 %v2860_v13  ;;  %1847 = vmatpush1.bf16.msra.mxu1 %v2922_v44 }
  0x74   : > { %2395 = vmatprep.subr.msk.bf16.mxu0 %vm322_vm0, %v2876_v16  ;;  %2398 = vmatprep.subr.msk.bf16.mxu1 %vm322_vm0, %v2936_v52 }
  0x76   : > { %2392 = vmatmul.mubr.msk.bf16.vlgmr.msra.gmra.mxu0 %vm318_vm1, %v3005_v56  ;;  %2394 = vmatmul.mubr.msk.bf16.vlgmr.msra.gmra.mxu1 %vm318_vm1, %v3005_v56 }
  0x77   : > { %1888 = vmatpush1.bf16.msra.mxu0 %v2905_v38  ;;  %1950 = vmatpush1.bf16.msra.mxu1 %v2961_v14 }
  0x78   : > { %1889 = vmatprep.subr.bf16.mxu0 %v2910_v41  ;;  %1951 = vmatprep.subr.bf16.mxu1 %v2969_v25 }
  0x79   : > { %1907 = vmatprep.mubr.bf16.mxu0 %v3256_v24  ;;  %1969 = vmatprep.mubr.bf16.mxu1 %v3256_v24 }
  0x7b   : > { %1890 = vmatpush1.bf16.msra.mxu0 %v3258_v5  ;;  %1952 = vmatpush1.bf16.msra.mxu1 %v2986_v57 }
  0x7c   : > { %2400 = vmatprep.subr.msk.bf16.mxu0 %vm322_vm0, %v3259_v6  ;;  %2402 = vmatprep.subr.msk.bf16.mxu1 %vm322_vm0, %v2998_v31 }
  0x7e   : > { %2396 = vmatmul.mubr.msk.bf16.vlgmr.msra.gmra.mxu0 %vm318_vm1, %v3005_v56  ;;  %2399 = vmatmul.mubr.msk.bf16.vlgmr.msra.gmra.mxu1 %vm318_vm1, %v1933_v3 }
  0x7f   : > { %1993 = vmatpush1.bf16.msra.mxu0 %v3260_v7  ;;  %2036 = vmatpush1.bf16.msra.mxu1 %v3014_v50 }
  0x80   : > { %1994 = vmatprep.subr.bf16.mxu0 %v3261_v8  ;;  %2037 = vmatprep.subr.bf16.mxu1 %v3019_v49 }
  0x81   : > { %2012 = vmatprep.mubr.bf16.mxu0 %v3256_v24  ;;  %2055 = vmatprep.mubr.bf16.mxu1 %v3256_v24 }
  0x83   : > { %1995 = vmatpush1.bf16.msra.mxu0 %v2991_v58  ;;  %2038 = vmatpush1.bf16.msra.mxu1 %v3030_v0 }
  0x86   : > { %2401 = vmatmul.mubr.msk.bf16.vlgmr.msra.gmra.mxu0 %vm318_vm1, %v1933_v3  ;;  %2403 = vmatmul.mubr.msk.bf16.vlgmr.msra.gmra.mxu1 %vm318_vm1, %v1933_v3 }
  0xd6   : > { %v375_v9 = vpop.f32.mrf.mxu0  ;;  %v418_v10 = vpop.f32.mrf.mxu1 }
  0xd8   : > { %v377_v11 = vpop.f32.mrf.mxu0  ;;  %v420_v12 = vpop.f32.mrf.mxu1 }
  0xda   : > { %v379_v17 = vpop.f32.mrf.mxu0  ;;  %v422_v18 = vpop.f32.mrf.mxu1 }
  0xdc   : > { %v381_v19 = vpop.f32.mrf.mxu0  ;;  %v424_v20 = vpop.f32.mrf.mxu1 }
  0xde   : > { %v461_v21 = vpop.f32.mrf.mxu0  ;;  %v584_v22 = vpop.f32.mrf.mxu1 }
  0xdf   : > { %v585_v23 = vadd.f32 %v584_v22, %v375_v9 }
  0xe0   : > { %v463_v26 = vpop.f32.mrf.mxu0  ;;  %v586_v27 = vpop.f32.mrf.mxu1 }
  0xe1   : > { %v587_v32 = vadd.f32 %v586_v27, %v377_v11 }
  0xe2   : > { %v465_v33 = vpop.f32.mrf.mxu0  ;;  %v588_v34 = vpop.f32.mrf.mxu1 }
  0xe3   : > { %v589_v35 = vadd.f32 %v588_v34, %v379_v17 }
  0xe4   : > { %v467_v36 = vpop.f32.mrf.mxu0  ;;  %v590_v37 = vpop.f32.mrf.mxu1 }
  0xe5   : > { %v591_v39 = vadd.f32 %v590_v37, %v381_v19 }
  0xe6   : > { %v627_v40 = vpop.f32.mrf.mxu0  ;;  %v670_v43 = vpop.f32.mrf.mxu1 }
  0xe7   : > { %v628_v45 = vadd.f32 %v627_v40, %v418_v10  ;;  %v671_v46 = vadd.f32 %v670_v43, %v461_v21 }
  0xe8   : > { %v629_v47 = vpop.f32.mrf.mxu0  ;;  %v672_v48 = vpop.f32.mrf.mxu1 }
  0xe9   : > { %v630_v51 = vadd.f32 %v629_v47, %v420_v12  ;;  %v673_v53 = vadd.f32 %v672_v48, %v463_v26 }
  0xea   : > { %v631_v54 = vpop.f32.mrf.mxu0  ;;  %v674_v55 = vpop.f32.mrf.mxu1 }
  0xeb   : > { %v632_v59 = vadd.f32 %v631_v54, %v422_v18  ;;  %v675_v60 = vadd.f32 %v674_v55, %v465_v33 }
  0xec   : > { %v633_v62 = vpop.f32.mrf.mxu0  ;;  %v676_v63 = vpop.f32.mrf.mxu1 }
  0xed   : > { %v634_v2 = vadd.f32 %v633_v62, %v424_v20  ;;  %v677_v4 = vadd.f32 %v676_v63, %v467_v36 }
  0xee   : > { %v811_v13 = vpop.f32.mrf.mxu0  ;;  %v854_v15 = vpop.f32.mrf.mxu1 }
  0xef   : > { %v906_v16 = vadd.f32 %v811_v13, %v585_v23  ;;  %v908_v28 = vadd.f32 %v854_v15, %v628_v45 }
  0xf0   : > { %v813_v29 = vpop.f32.mrf.mxu0  ;;  %v856_v30 = vpop.f32.mrf.mxu1 }
  0xf1   : > { %v907_v38 = vadd.f32 %v813_v29, %v587_v32  ;;  %v909_v41 = vadd.f32 %v856_v30, %v630_v51 }
  0xf2   : > { %v815_v42 = vpop.f32.mrf.mxu0  ;;  %v858_v44 = vpop.f32.mrf.mxu1 }
  0xf3   : > { %v912_v49 = vadd.f32 %v815_v42, %v589_v35  ;;  %v914_v50 = vadd.f32 %v858_v44, %v632_v59 }
  0xf4   : > { %v817_v52 = vpop.f32.mrf.mxu0  ;;  %v860_v56 = vpop.f32.mrf.mxu1 }
  0xf5   : > { %v913_v14 = vadd.f32 %v817_v52, %v591_v39  ;;  %v915_v24 = vadd.f32 %v860_v56, %v634_v2 }
  0xf6   : > { %v897_v25 = vpop.f32.mrf.mxu0  ;;  %v1050_v57 = vpop.f32.mrf.mxu1 }
  0xf7   : > { %v910_v58 = vadd.f32 %v897_v25, %v671_v46  ;;  %v1145_v31 = vadd.f32 %v1050_v57, %v906_v16 }
  0xf8   : > { %v899_v61 = vpop.f32.mrf.mxu0  ;;  %v1052_v0 = vpop.f32.mrf.mxu1 }
  0xf9   : > { %v911_v1 = vadd.f32 %v899_v61, %v673_v53  ;;  %v1146_v3 = vadd.f32 %v1052_v0, %v907_v38 }
  0xfa   : > { %v901_v5 = vpop.f32.mrf.mxu0  ;;  %v1054_v6 = vpop.f32.mrf.mxu1 }
  0xfb   : > { %v916_v7 = vadd.f32 %v901_v5, %v675_v60  ;;  %v1151_v8 = vadd.f32 %v1054_v6, %v912_v49 }
  0xfc   : > { %v903_v9 = vpop.f32.mrf.mxu0  ;;  %v1056_v10 = vpop.f32.mrf.mxu1 }
  0xfd   : > { %v917_v11 = vadd.f32 %v903_v9, %v677_v4  ;;  %v1152_v12 = vadd.f32 %v1056_v10, %v913_v14 }
  0xfe   : > { %v1093_v17 = vpop.f32.mrf.mxu0  ;;  %v1136_v18 = vpop.f32.mrf.mxu1 }
  0xff   : > { %v1147_v19 = vadd.f32 %v1093_v17, %v908_v28  ;;  %v3154_v20 = vadd.f32 %v1136_v18, %v910_v58 }
 0x100   : > { %v1095_v21 = vpop.f32.mrf.mxu0  ;;  %v1138_v22 = vpop.f32.mrf.mxu1 }
 0x101   : > { %v1148_v23 = vadd.f32 %v1095_v21, %v909_v41  ;;  %v3156_v26 = vadd.f32 %v1138_v22, %v911_v1 }
 0x102   : > { %v1097_v27 = vpop.f32.mrf.mxu0  ;;  %v1140_v32 = vpop.f32.mrf.mxu1 }
 0x103   : > { %v1153_v33 = vadd.f32 %v1097_v27, %v914_v50  ;;  %v3158_v34 = vadd.f32 %v1140_v32, %v916_v7  ;;  %v2098_v27 = vlaneseq }
 0x104   : > { %v1099_v35 = vpop.f32.mrf.mxu0  ;;  %v1142_v36 = vpop.f32.mrf.mxu1 }
 0x105   : > { %v1154_v37 = vadd.f32 %v1099_v35, %v915_v24  ;;  %v3160_v39 = vadd.f32 %v1142_v36, %v917_v11 }
 0x106   : > { %v1283_v40 = vpop.f32.mrf.mxu0  ;;  %v1326_v43 = vpop.f32.mrf.mxu1 }
 0x107   : > { %3262 = vst [vmem:[#allocation2_spill] sm:$0xff] %v3160_v39  ;;  %v3162_v45 = vadd.f32 %v1283_v40, %v1145_v31  ;;  %v3164_v46 = vadd.f32 %v1326_v43, %v1147_v19 }
 0x108   : > { %v1285_v47 = vpop.f32.mrf.mxu0  ;;  %v1328_v48 = vpop.f32.mrf.mxu1 }
 0x109   : > { %3263 = vst [vmem:[#allocation3_spill] sm:$0xff] %v3162_v45  ;;  %3264 = vst [vmem:[#allocation4_spill] sm:$0xff] %v3164_v46  ;;  %v3166_v51 = vadd.f32 %v1285_v47, %v1146_v3  ;;  %v3168_v53 = vadd.f32 %v1328_v48, %v1148_v23 }
 0x10a   : > { %v1287_v54 = vpop.f32.mrf.mxu0  ;;  %v1330_v55 = vpop.f32.mrf.mxu1 }
 0x10b   : > { %3265 = vst [vmem:[#allocation5_spill] sm:$0xff] %v3166_v51  ;;  %3266 = vst [vmem:[#allocation6_spill] sm:$0xff] %v3168_v53  ;;  %v3170_v59 = vadd.f32 %v1287_v54, %v1151_v8  ;;  %v3172_v60 = vadd.f32 %v1330_v55, %v1153_v33 }
 0x10c   : > { %v1289_v62 = vpop.f32.mrf.mxu0  ;;  %v1332_v63 = vpop.f32.mrf.mxu1 }
 0x10d   : > { %3267 = vst [vmem:[#allocation7_spill] sm:$0xff] %v3170_v59  ;;  %3268 = vst [vmem:[#allocation8_spill] sm:$0xff] %v3172_v60  ;;  %v3174_v2 = vadd.f32 %v1289_v62, %v1152_v12  ;;  %v3176_v4 = vadd.f32 %v1332_v63, %v1154_v37  ;;  %v2099_v37 = vshrl.u32 %v2098_v27, 7  ;;  %v2096_v63 = vld [vmem:[%s3242_s3] sm:$0x7] }
 0x10e   : > { %v1369_v13 = vpop.f32.mrf.mxu0  ;;  %v1424_v15 = vpop.f32.mrf.mxu1 }
 0x10f   : > { %3269 = vst [vmem:[#allocation9_spill] sm:$0xff] %v3174_v2  ;;  %3270 = vst [vmem:[#allocation10_spill] sm:$0xff] %v3176_v4  ;;  %v2104_v54 = vsub.s32 1, %v2099_v37  ;;  %v2100_v55 = vsub.s32 0, %v2099_v37  ;;  %v2108_v62 = vsub.s32 2, %v2099_v37  ;;  %v1382_v53 = vadd.f32 %v1369_v13, %v3154_v20 }
 0x110   : > { %v1371_v16 = vpop.f32.mrf.mxu0  ;;  %v1426_v28 = vpop.f32.mrf.mxu1 }
 0x111   : > { %v3197_v39 = vrot.slane %v2096_v63, %v2100_v55  ;;  %v3199_v27 = vrot.slane %v2096_v63, %v2108_v62  ;;  %v3203_v46 = vadd.f32 %v1371_v16, %v3156_v26 }
 0x112   : > { %v1373_v29 = vpop.f32.mrf.mxu0  ;;  %v1428_v30 = vpop.f32.mrf.mxu1 }
 0x113   : > { %3277 = vst [vmem:[#allocation17_spill] sm:$0xff] %v3199_v27  ;;  %v3206_v37 = vadd.f32 %v1373_v29, %v3158_v34 }
 0x114   : > { %v3178_v38 = vpop.f32.mrf.mxu0  ;;  %v3180_v41 = vpop.f32.mrf.mxu1 }
 0x115   : > { %3271 = vst [vmem:[#allocation11_spill] sm:$0xff] %v3178_v38  ;;  %v3195_v38 = vrot.slane %v2096_v63, %v2104_v54 }
 0x116   : > { %v1467_v42 = vpop.f32.mrf.mxu0  ;;  %v1510_v44 = vpop.f32.mrf.mxu1 }
 0x117   : > { %3276 = vst [vmem:[#allocation16_spill] sm:$0xff] %v3195_v38 }
 0x118   : > { %v1469_v49 = vpop.f32.mrf.mxu0  ;;  %v3182_v50 = vpop.f32.mrf.mxu1 }
 0x11a   : > { %v1471_v52 = vpop.f32.mrf.mxu0  ;;  %v3184_v56 = vpop.f32.mrf.mxu1 }
 0x11b   : > { %3272 = vst [vmem:[#allocation12_spill] sm:$0xff] %v3184_v56 }
 0x11c   : > { %v1473_v14 = vpop.f32.mrf.mxu0  ;;  %v3186_v24 = vpop.f32.mrf.mxu1 }
 0x11d   : > { %3273 = vst [vmem:[#allocation13_spill] sm:$0xff] %v3186_v24 }
 0x11e   : > { %v1553_v25 = vpop.f32.mrf.mxu0  ;;  %v1596_v57 = vpop.f32.mrf.mxu1 }
 0x11f   : > { %v1554_v51 = vadd.f32 %v1553_v25, %v1424_v15 }
 0x120   : > { %v1555_v58 = vpop.f32.mrf.mxu0  ;;  %v1598_v31 = vpop.f32.mrf.mxu1 }
 0x121   : > { %v1556_v45 = vadd.f32 %v1555_v58, %v1426_v28 }
 0x122   : > { %v1557_v61 = vpop.f32.mrf.mxu0  ;;  %v1600_v0 = vpop.f32.mrf.mxu1  ;;  %v3278_v13 = vld [vmem:[#allocation12_spill] sm:$0xff] }
 0x123   : > { %v1558_v24 = vadd.f32 %v1557_v61, %v1428_v30  ;;  %v1601_v38 = vadd.f32 %v1600_v0, %v1471_v52 }
 0x124   : > { %v1559_v1 = vpop.f32.mrf.mxu0  ;;  %v1602_v3 = vpop.f32.mrf.mxu1  ;;  %v3279_v30 = vld [vmem:[#allocation13_spill] sm:$0xff] }
 0x125   : > { %v1560_v55 = vadd.f32 %v1559_v1, %v3180_v41  ;;  %v1603_v27 = vadd.f32 %v1602_v3, %v1473_v14 }
 0x126   : > { %v1639_v5 = vpop.f32.mrf.mxu0  ;;  %v1682_v6 = vpop.f32.mrf.mxu1 }
 0x127   : > { %v1640_v62 = vadd.f32 %v1639_v5, %v1510_v44  ;;  %v1777_v20 = vadd.f32 %v1682_v6, %v1554_v51 }
 0x128   : > { %v1641_v7 = vpop.f32.mrf.mxu0  ;;  %v1684_v8 = vpop.f32.mrf.mxu1 }
 0x129   : > { %v1778_v63 = vadd.f32 %v1684_v8, %v1556_v45  ;;  %v1642_v26 = vadd.f32 %v1641_v7, %v3182_v50 }
 0x12a   : > { %v1643_v9 = vpop.f32.mrf.mxu0  ;;  %v1686_v10 = vpop.f32.mrf.mxu1 }
 0x12b   : > { %v1644_v16 = vadd.f32 %v1643_v9, %v3278_v13  ;;  %v1783_v28 = vadd.f32 %v1686_v10, %v1558_v24  ;;  %v3286_v13 = vld [vmem:[#allocation2_spill] sm:$0xff] }
 0x12c   : > { %v1645_v11 = vpop.f32.mrf.mxu0  ;;  %v1688_v12 = vpop.f32.mrf.mxu1 }
 0x12d   : > { %v1646_v25 = vadd.f32 %v1645_v11, %v3279_v30 }
 0x12e   : > { %v1725_v17 = vpop.f32.mrf.mxu0  ;;  %v1768_v18 = vpop.f32.mrf.mxu1 }
 0x130   : > { %v1727_v19 = vpop.f32.mrf.mxu0  ;;  %v1770_v21 = vpop.f32.mrf.mxu1 }
 0x131   : > { %v1782_v45 = vadd.f32 %v1770_v21, %v1642_v26 }
 0x132   : > { %v1729_v22 = vpop.f32.mrf.mxu0  ;;  %v1772_v23 = vpop.f32.mrf.mxu1 }
 0x133   : > { %v1785_v50 = vadd.f32 %v1729_v22, %v1601_v38  ;;  %v1787_v61 = vadd.f32 %v1772_v23, %v1644_v16  ;;  %v3282_v23 = vld [vmem:[#allocation3_spill] sm:$0xff] }
 0x134   : > { %v1731_v32 = vpop.f32.mrf.mxu0  ;;  %v3188_v33 = vpop.f32.mrf.mxu1  ;;  %v3287_v16 = vld [vmem:[#allocation11_spill] sm:$0xff] }
 0x135   : > { %3274 = vst [vmem:[#allocation14_spill] sm:$0xff] %v3188_v33  ;;  %v1597_v33 = vadd.f32 %v1596_v57, %v1467_v42  ;;  %v1781_v42 = vadd.f32 %v1768_v18, %v1640_v62  ;;  %v1784_v57 = vadd.f32 %v1688_v12, %v1560_v55  ;;  %v1786_v0 = vadd.f32 %v1731_v32, %v1603_v27 }
 0x136   : > { %v1823_v35 = vpop.f32.mrf.mxu0  ;;  %v1866_v36 = vpop.f32.mrf.mxu1 }
 0x137   : > { %v1779_v15 = vadd.f32 %v1725_v17, %v1597_v33  ;;  %v1918_v58 = vadd.f32 %v1823_v35, %v1777_v20 }
 0x138   : > { %v1825_v40 = vpop.f32.mrf.mxu0  ;;  %v1868_v43 = vpop.f32.mrf.mxu1 }
 0x139   : > { %v1920_v14 = vadd.f32 %v1866_v36, %v1779_v15 }
 0x13a   : > { %v1827_v47 = vpop.f32.mrf.mxu0  ;;  %v1870_v48 = vpop.f32.mrf.mxu1 }
 0x13b   : > { %v1926_v11 = vadd.f32 %v1870_v48, %v1785_v50  ;;  %v3284_v48 = vld [vmem:[#allocation6_spill] sm:$0xff] }
 0x13c   : > { %v1829_v4 = vpop.f32.mrf.mxu0  ;;  %v3193_v60 = vpop.f32.mrf.mxu1  ;;  %v3280_v9 = vld [vmem:[#allocation14_spill] sm:$0xff] }
 0x13d   : > { %3275 = vst [vmem:[#allocation15_spill] sm:$0xff] %v3193_v60  ;;  %v1599_v60 = vadd.f32 %v1598_v31, %v1469_v49  ;;  %v1919_v49 = vadd.f32 %v1825_v40, %v1778_v63  ;;  %v1788_v10 = vadd.f32 %v3280_v9, %v1646_v25  ;;  %v1925_v12 = vadd.f32 %v1829_v4, %v1784_v57  ;;  %v3283_v40 = vld [vmem:[#allocation4_spill] sm:$0xff]  ;;  %v3293_v50 = vld [vmem:[#allocation10_spill] sm:$0xff] }
 0x13e   : > { %v1909_v59 = vpop.f32.mrf.mxu0  ;;  %v1971_v2 = vpop.f32.mrf.mxu1 }
 0x13f   : > { %v1780_v52 = vadd.f32 %v1727_v19, %v1599_v60  ;;  %v1922_v51 = vadd.f32 %v1909_v59, %v1781_v42  ;;  %v2066_v1 = vadd.f32 %v1971_v2, %v1918_v58  ;;  %v1924_v60 = vadd.f32 %v1827_v47, %v1783_v28  ;;  %v3281_v19 = vld [vmem:[#allocation5_spill] sm:$0xff] }
 0x140   : > { %v1911_v56 = vpop.f32.mrf.mxu0  ;;  %v1973_v54 = vpop.f32.mrf.mxu1 }
 0x141   : > { %v2067_v31 = vadd.f32 %v1973_v54, %v1919_v49  ;;  %v1921_v5 = vadd.f32 %v1868_v43, %v1780_v52  ;;  %v1923_v6 = vadd.f32 %v1911_v56, %v1782_v45  ;;  %v2078_v2 = vmax.f32 %v3282_v23, %v2066_v1  ;;  %v3289_v49 = vld [vmem:[#allocation9_spill] sm:$0xff]  ;;  %v3290_v52 = vld [vmem:[#allocation7_spill] sm:$0xff] }
 0x142   : > { %v1913_v34 = vpop.f32.mrf.mxu0  ;;  %v1975_v29 = vpop.f32.mrf.mxu1 }
 0x143   : > { %v2079_v59 = vmax.f32 %v3281_v19, %v2067_v31  ;;  %v1928_v32 = vadd.f32 %v1913_v34, %v1787_v61  ;;  %v2072_v33 = vadd.f32 %v1975_v29, %v1924_v60  ;;  %v1389_v34 = vadd.f32 %v3287_v16, %v3286_v13  ;;  %v3288_v29 = vld [vmem:[#allocation16_spill] sm:$0xff] }
 0x144   : > { %v1915_v41 = vpop.f32.mrf.mxu0  ;;  %v1977_v44 = vpop.f32.mrf.mxu1  ;;  %v3285_v54 = vld [vmem:[#allocation15_spill] sm:$0xff] }
 0x145   : > { %v2073_v35 = vadd.f32 %v1977_v44, %v1925_v12  ;;  %v1927_v55 = vadd.f32 %v3285_v54, %v1786_v0  ;;  %v2084_v58 = vmax.f32 %v3290_v52, %v2072_v33  ;;  %v3291_v44 = vld [vmem:[#allocation17_spill] sm:$0xff] }
 0x146   : > { %v2014_v3 = vpop.f32.mrf.mxu0  ;;  %v2057_v24 = vpop.f32.mrf.mxu1 }
 0x147   : > { %v2068_v7 = vadd.f32 %v2014_v3, %v1920_v14  ;;  %v2070_v8 = vadd.f32 %v2057_v24, %v1922_v51  ;;  %v2085_v30 = vmax.f32 %v3289_v49, %v2073_v35  ;;  %v3292_v14 = vld [vmem:[#allocation8_spill] sm:$0xff] }
 0x148   : > { %v2016_v17 = vpop.f32.mrf.mxu0  ;;  %v2059_v18 = vpop.f32.mrf.mxu1 }
 0x149   : > { %v2082_v21 = vmax.f32 %v1382_v53, %v2070_v8  ;;  %v2069_v38 = vadd.f32 %v2016_v17, %v1921_v5  ;;  %v2071_v22 = vadd.f32 %v2059_v18, %v1923_v6  ;;  %v2080_v43 = vmax.f32 %v3283_v40, %v2068_v7 }
 0x14a   : > { %v2018_v56 = vpop.f32.mrf.mxu0  ;;  %v2061_v36 = vpop.f32.mrf.mxu1  ;;  %v1929_v53 = vadd.f32 %v1915_v41, %v1788_v10 }
 0x14b   : > { %v2091_v47 = vmax.f32 %v2079_v59, %v2082_v21  ;;  %v2081_v4 = vmax.f32 %v3284_v48, %v2069_v38  ;;  %v2083_v27 = vmax.f32 %v3203_v46, %v2071_v22  ;;  %v2074_v62 = vadd.f32 %v2018_v56, %v1926_v11 }
 0x14c   : > { %v2076_v63 = vadd.f32 %v2061_v36, %v1928_v32  ;;  %v2020_v20 = vpop.f32.mrf.mxu0  ;;  %v2063_v26 = vpop.f32.mrf.mxu1 }
 0x14d   : > { %v2114_v28 = vadd.f32 %v3288_v29, %v2091_v47  ;;  %v2090_v15 = vmax.f32 %v2078_v2, %v2081_v4  ;;  %v2092_v42 = vmax.f32 %v2080_v43, %v2083_v27  ;;  %v2075_v46 = vadd.f32 %v2020_v20, %v1927_v55 }
 0x14e   : > { %v2088_v25 = vmax.f32 %v3206_v37, %v2076_v63  ;;  %v2077_v57 = vadd.f32 %v2063_v26, %v1929_v53  ;;  %v2086_v51 = vmax.f32 %v3292_v14, %v2074_v62 }
 0x14f   : > { %v2113_v41 = vadd.f32 %v3197_v39, %v2090_v15  ;;  %v2115_v45 = vadd.f32 %v3291_v44, %v2092_v42  ;;  %v2087_v61 = vmax.f32 %v3293_v50, %v2075_v46  ;;  %v2120_v1 = vmax.f32 %v2114_v28, 0.0 }
 0x150   : > { %v2094_v31 = vmax.f32 %v2085_v30, %v2088_v25  ;;  %v2089_v0 = vmax.f32 %v1389_v34, %v2077_v57 }
 0x151   : > { %v2119_v3 = vmax.f32 %v2113_v41, 0.0  ;;  %v2121_v24 = vmax.f32 %v2115_v45, 0.0  ;;  %v2093_v5 = vmax.f32 %v2084_v58, %v2087_v61 }
 0x152   : > { %v2117_v37 = vadd.f32 %v3288_v29, %v2094_v31  ;;  %v2095_v6 = vmax.f32 %v2086_v51, %v2089_v0 }
 0x153   : > { %v2410_v7 = vpack.c.bf16 %v2120_v1, %v2119_v3  ;;  %v2411_v8 = vpack.c.bf16 %v2121_v24, %v2121_v24  ;;  %v2116_v9 = vadd.f32 %v3197_v39, %v2093_v5 }
 0x154   : > { %v2118_v10 = vadd.f32 %v3291_v44, %v2095_v6  ;;  %v2123_v60 = vmax.f32 %v2117_v37, 0.0 }
 0x155   : > { %2145 = vst [vmem:[%s223_s8] sm:$0xff] %v2410_v7  ;;  %2146 = vst [vmem:[%s223_s8 + $0x8] sm:$0xf] %v2411_v8  ;;  %v2122_v11 = vmax.f32 %v2116_v9, 0.0 }
 0x156   : > { %v2124_v12 = vmax.f32 %v2118_v10, 0.0 }
 0x157   : > { %v2412_v17 = vpack.c.bf16 %v2123_v60, %v2122_v11 }
 0x158   : > { %v2413_v18 = vpack.c.bf16 %v2124_v12, %v2124_v12 }
 0x159   : > { %2147 = vst [vmem:[%s223_s8 + $0xc] sm:$0x77] %v2412_v17 }
 0x15a   : > { %2148 = vst [vmem:[%s223_s8 + $0x14] sm:$0x7] %v2413_v18 }
 0x15b PF: > { %s14_s15 = sadd.s32 1, %s2526_s15  }
 0x15c   : > { %p11_p4 = scmp.ge.s32.totalorder %s14_s15, 4  }
 0x15e   :  { %13 = sbr.rel (!%p11_p4) target bundleno = 1 (0x1), region = 73 }

// kernel: tile.18
= control target key start
LH: loop header
LB: loop body
LE: loop exit
PB: predicated region body
PF: predicated region fallthrough
CT: control target
= control target key end

     0   :  { %s22_s0 = inlined_call_operand.vmem [shape: f32[64], index: 0, kind: input, shape index: {}]   ;;  %s23_s1 = inlined_call_operand.vmem [shape: f32[4,64], index: 1, kind: output, shape index: {}]  }
   0x1   :  { %v4_v0 = vld [vmem:[%s22_s0] ss:$0 sm:$0xff] }
   0x2   :  { %5 = vst [vmem:[%s23_s1] sm:$0xf] %v4_v0 }

// kernel: tile.19
= control target key start
LH: loop header
LB: loop body
LE: loop exit
PB: predicated region body
PF: predicated region fallthrough
CT: control target
= control target key end

     0   :  { %s7_s8 = smov 3  ;;  %vm9_vm0 = vcmask 523264   ;;  %s34_s9 = smov 64   ;;  %vm16_vm1 = vcmask 1048064   ;;  %s54_s0 = inlined_call_operand.vmem [shape: f32[4,64], index: 0, kind: input, shape index: {}]   ;;  %s55_s1 = inlined_call_operand.vmem [shape: f32[1,256], index: 1, kind: output, shape index: {}]  }
   0x1   :  { %v5_v0 = vld [vmem:[%s54_s0] sm:$0xf]  ;;  %s12_s0 = smov 3 }
   0x2   :  { %6 = vst [vmem:[#allocation1] sm:$0xf] %v5_v0 }
   0x9   :  { %v13_v1 = vld [vmem:[#allocation1 + $0x1] ss:$2 sm:%s12_s0]   ;;  %v8_v2 = vld [vmem:[#allocation1] ss:$2 sm:%s7_s8]  }
   0xa   :  { %14 = vrot.lane.b32.xlu0 %v13_v1, %s34_s9  ;;  %10 = vst.msk [vmem:[#allocation0] ss:$8 sm:$0x3] %vm9_vm0, %v8_v2  }
  0x7c   :  { %v15_v3 = vpop.permute.xlu0 %14  }
  0x7d   :  { %17 = vst.msk [vmem:[#allocation0] ss:$8 sm:$0x3] %vm16_vm1, %v15_v3  }
  0x84   :  { %v22_v4 = vld [vmem:[#allocation0] sm:$0x1]  ;;  %v27_v5 = vld [vmem:[#allocation0 + $0x8] sm:$0x1] }
  0x85   :  { %25 = vst [vmem:[%s55_s1] sm:$0x1] %v22_v4  ;;  %32 = vst [vmem:[%s55_s1 + $0x1] sm:$0x1] %v27_v5 }

// kernel: cnn_forward.4
= control target key start
LH: loop header
LB: loop body
LE: loop exit
PB: predicated region body
PF: predicated region fallthrough
CT: control target
= control target key end

     0   :  { %s7150_s15 = smov 0   ;;  %s10367_s0 = inlined_call_operand.vmem [shape: bf16[16,384], index: 0, kind: input, shape index: {}]   ;;  %s10368_s1 = inlined_call_operand.vmem [shape: bf16[16,384], index: 1, kind: input, shape index: {}]   ;;  %s10369_s2 = inlined_call_operand.vmem [shape: bf16[5,384,512], index: 2, kind: input, shape index: {}]   ;;  %s10370_s3 = inlined_call_operand.vmem [shape: f32[1,256], index: 3, kind: input, shape index: {}]   ;;  %s10371_s4 = inlined_call_operand.vmem [shape: bf16[16,256], index: 4, kind: output, shape index: {}]  }
   0x1 LB: > { %s4991_s16 = sadd.s32 4294967295, %s7122_s15   ;;  %p4995_p0 = scmp.ge.s32.totalorder %s7122_s15, 1  ;;  %s7122_s15 = sphi %s7150_s15, %s14_s15  }
   0x2   : > { %p172_p1 = scmp.lt.s32.totalorder %s7122_s15, 3 }
   0x4   : > { %p173_p2 = pnand %p4995_p0, %p172_p1 }
   0x5   : > { %p203_p3 = scmp.lt.s32.totalorder (!%p173_p2), %s4991_s16, 1 }
   0x6   : > { %176 = sbr.rel (%p173_p2) target bundleno = 1183 (0x49f), region = 36 }
   0xb   : > { %v5897_v0 = vld [vmem:[%s10369_s2 + $0x3e4] ss:$16 sps:$4 sm:$0xff]   ;;  %v7124_v2 = vmov 0   ;;  %v5901_v3 = vld [vmem:[%s10369_s2 + $0x3e0] ss:$16 sps:$4 sm:$0xff]   ;;  %s10373_s16 = smov (!%p203_p3, %s4991_s16), 1 }
   0xc   : > { %v5899_v1 = vld [vmem:[%s10369_s2 + $0x5e4] ss:$16 sps:$4 sm:$0xff]   ;;  %988 = vmatprep.mubr.bf16.mxu1 %v7124_v2  ;;  %915 = vmatprep.subr.bf16.mxu0 %v5897_v0  ;;  %v5902_v4 = vld [vmem:[%s10369_s2 + $0x5e0] ss:$16 sps:$4 sm:$0xff]   ;;  %s5887_s11 = smul.u32 12, %s10373_s16  ;;  %s5885_s17 = sshll.u32 %s10373_s16, 3 }
   0xd   : > { %956 = vmatprep.subr.bf16.mxu1 %v5899_v1  ;;  %v5903_v5 = vld [vmem:[%s10369_s2 + $0x3c4] ss:$16 sps:$4 sm:$0xff]   ;;  %916 = vmatpush1.bf16.msra.mxu0 %v5901_v3  ;;  %v5907_v7 = vld [vmem:[%s10369_s2 + $0x3c0] ss:$16 sps:$4 sm:$0xff]   ;;  %v5950_v34 = vld [vmem:[%s10369_s2 + $0x3ec] ss:$16 sps:$4 sm:$0xff]   ;;  %s217_s19 = scalar_lea.vmem %s10371_s4, %s5885_s17 }
   0xe   : > { %957 = vmatpush1.bf16.msra.mxu1 %v5902_v4  ;;  %v5905_v6 = vld [vmem:[%s10369_s2 + $0x5c4] ss:$16 sps:$4 sm:$0xff]   ;;  %917 = vmatprep.subr.bf16.mxu0 %v5903_v5  ;;  %v5908_v8 = vld [vmem:[%s10369_s2 + $0x5c0] ss:$16 sps:$4 sm:$0xff]   ;;  %s7249_s24 = scalar_lea.vmem %s10368_s1, %s5887_s11  ;;  %v5948_v36 = vld [vmem:[%s10369_s2 + $0x3e8] ss:$16 sps:$4 sm:$0xff]   ;;  %s7461_s22 = scalar_lea.vmem %s10367_s0, %s5887_s11 }
   0xf   : > { %958 = vmatprep.subr.bf16.mxu1 %v5905_v6  ;;  %v5909_v9 = vld [vmem:[%s10369_s2 + $0x3a4] ss:$16 sps:$4 sm:$0xff]   ;;  %v5913_v11 = vld [vmem:[%s10369_s2 + $0x3a0] ss:$16 sps:$4 sm:$0xff]   ;;  %v5956_v39 = vld [vmem:[%s10369_s2 + $0x3cc] ss:$16 sps:$4 sm:$0xff]  }
  0x10   : > { %v5911_v10 = vld [vmem:[%s10369_s2 + $0x5a4] ss:$16 sps:$4 sm:$0xff]   ;;  %v5914_v12 = vld [vmem:[%s10369_s2 + $0x5a0] ss:$16 sps:$4 sm:$0xff]   ;;  %v5954_v40 = vld [vmem:[%s10369_s2 + $0x3c8] ss:$16 sps:$4 sm:$0xff]  }
  0x11   : > { %918 = vmatpush1.bf16.msra.mxu0 %v5907_v7  ;;  %v5915_v13 = vld [vmem:[%s10369_s2 + $0x384] ss:$16 sps:$4 sm:$0xff]   ;;  %v5919_v15 = vld [vmem:[%s10369_s2 + $0x380] ss:$16 sps:$4 sm:$0xff]   ;;  %v5962_v43 = vld [vmem:[%s10369_s2 + $0x3ac] ss:$16 sps:$4 sm:$0xff]  }
  0x12   : > { %959 = vmatpush1.bf16.msra.mxu1 %v5908_v8  ;;  %919 = vmatprep.subr.bf16.mxu0 %v5909_v9  ;;  %v5917_v14 = vld [vmem:[%s10369_s2 + $0x584] ss:$16 sps:$4 sm:$0xff]   ;;  %v5920_v16 = vld [vmem:[%s10369_s2 + $0x580] ss:$16 sps:$4 sm:$0xff]   ;;  %v5960_v44 = vld [vmem:[%s10369_s2 + $0x3a8] ss:$16 sps:$4 sm:$0xff]  }
  0x13   : > { %960 = vmatprep.subr.bf16.mxu1 %v5911_v10  ;;  %v5921_v17 = vld [vmem:[%s10369_s2 + $0x364] ss:$16 sps:$4 sm:$0xff]   ;;  %v5925_v19 = vld [vmem:[%s10369_s2 + $0x360] ss:$16 sps:$4 sm:$0xff]   ;;  %v5968_v47 = vld [vmem:[%s10369_s2 + $0x38c] ss:$16 sps:$4 sm:$0xff]  }
  0x14   : > { %v5923_v18 = vld [vmem:[%s10369_s2 + $0x564] ss:$16 sps:$4 sm:$0xff]   ;;  %v5926_v20 = vld [vmem:[%s10369_s2 + $0x560] ss:$16 sps:$4 sm:$0xff]   ;;  %v5966_v48 = vld [vmem:[%s10369_s2 + $0x388] ss:$16 sps:$4 sm:$0xff]  }
  0x15   : > { %920 = vmatpush1.bf16.msra.mxu0 %v5913_v11  ;;  %v5927_v21 = vld [vmem:[%s10369_s2 + $0x344] ss:$16 sps:$4 sm:$0xff]   ;;  %v5931_v23 = vld [vmem:[%s10369_s2 + $0x340] ss:$16 sps:$4 sm:$0xff]   ;;  %v5974_v53 = vld [vmem:[%s10369_s2 + $0x36c] ss:$16 sps:$4 sm:$0xff]  }
  0x16   : > { %961 = vmatpush1.bf16.msra.mxu1 %v5914_v12  ;;  %921 = vmatprep.subr.bf16.mxu0 %v5915_v13  ;;  %v5929_v22 = vld [vmem:[%s10369_s2 + $0x544] ss:$16 sps:$4 sm:$0xff]   ;;  %v5932_v24 = vld [vmem:[%s10369_s2 + $0x540] ss:$16 sps:$4 sm:$0xff]   ;;  %v5972_v54 = vld [vmem:[%s10369_s2 + $0x368] ss:$16 sps:$4 sm:$0xff]  }
  0x17   : > { %962 = vmatprep.subr.bf16.mxu1 %v5917_v14  ;;  %v5933_v25 = vld [vmem:[%s10369_s2 + $0x324] ss:$16 sps:$4 sm:$0xff]   ;;  %v5937_v27 = vld [vmem:[%s10369_s2 + $0x320] ss:$16 sps:$4 sm:$0xff]   ;;  %v5980_v57 = vld [vmem:[%s10369_s2 + $0x34c] ss:$16 sps:$4 sm:$0xff]  }
  0x18   : > { %v5935_v26 = vld [vmem:[%s10369_s2 + $0x524] ss:$16 sps:$4 sm:$0xff]   ;;  %v5938_v28 = vld [vmem:[%s10369_s2 + $0x520] ss:$16 sps:$4 sm:$0xff]   ;;  %v5978_v58 = vld [vmem:[%s10369_s2 + $0x348] ss:$16 sps:$4 sm:$0xff]  }
  0x19   : > { %922 = vmatpush1.bf16.msra.mxu0 %v5919_v15  ;;  %v5939_v29 = vld [vmem:[%s10369_s2 + $0x304] ss:$16 sps:$4 sm:$0xff]   ;;  %v5943_v31 = vld [vmem:[%s10369_s2 + $0x300] ss:$16 sps:$4 sm:$0xff]   ;;  %v5986_v61 = vld [vmem:[%s10369_s2 + $0x32c] ss:$16 sps:$4 sm:$0xff]  }
  0x1a   : > { %963 = vmatpush1.bf16.msra.mxu1 %v5920_v16  ;;  %923 = vmatprep.subr.bf16.mxu0 %v5921_v17  ;;  %v5941_v30 = vld [vmem:[%s10369_s2 + $0x504] ss:$16 sps:$4 sm:$0xff]   ;;  %v5944_v32 = vld [vmem:[%s10369_s2 + $0x500] ss:$16 sps:$4 sm:$0xff]   ;;  %v5984_v62 = vld [vmem:[%s10369_s2 + $0x328] ss:$16 sps:$4 sm:$0xff]  }
  0x1b   : > { %964 = vmatprep.subr.bf16.mxu1 %v5923_v18  ;;  %v5945_v33 = vld [vmem:[%s10369_s2 + $0x4e4] ss:$16 sps:$4 sm:$0xff]   ;;  %v7276_v35 = vld [vmem:[%s7249_s24 + $0x8] ss:$0 sps:$4 sm:$0x77]  }
  0x1c   : > { %v5951_v37 = vld [vmem:[%s10369_s2 + $0x4e0] ss:$16 sps:$4 sm:$0xff]   ;;  %v5952_v38 = vld [vmem:[%s10369_s2 + $0x4c4] ss:$16 sps:$4 sm:$0xff]   ;;  %v5992_v1 = vld [vmem:[%s10369_s2 + $0x30c] ss:$16 sps:$4 sm:$0xff]  }
  0x1d   : > { %924 = vmatpush1.bf16.msra.mxu0 %v5925_v19  ;;  %v5957_v41 = vld [vmem:[%s10369_s2 + $0x4c0] ss:$16 sps:$4 sm:$0xff]   ;;  %v5958_v42 = vld [vmem:[%s10369_s2 + $0x4a4] ss:$16 sps:$4 sm:$0xff]   ;;  %v5990_v3 = vld [vmem:[%s10369_s2 + $0x308] ss:$16 sps:$4 sm:$0xff]  }
  0x1e   : > { %965 = vmatpush1.bf16.msra.mxu1 %v5926_v20  ;;  %925 = vmatprep.subr.bf16.mxu0 %v5927_v21  ;;  %v5963_v45 = vld [vmem:[%s10369_s2 + $0x4a0] ss:$16 sps:$4 sm:$0xff]   ;;  %v5964_v46 = vld [vmem:[%s10369_s2 + $0x484] ss:$16 sps:$4 sm:$0xff]   ;;  %v5998_v5 = vld [vmem:[%s10369_s2 + $0x4ec] ss:$16 sps:$4 sm:$0xff]  }
  0x1f   : > { %966 = vmatprep.subr.bf16.mxu1 %v5929_v22  ;;  %v221_v49 = vld [vmem:[%s7249_s24] sm:$0x77]  ;;  %v6001_v6 = vld [vmem:[%s10369_s2 + $0x5ec] ss:$16 sps:$4 sm:$0xff]   ;;  %v5996_v8 = vld [vmem:[%s10369_s2 + $0x4e8] ss:$16 sps:$4 sm:$0xff]  }
  0x20   : > { %v5969_v50 = vld [vmem:[%s10369_s2 + $0x480] ss:$16 sps:$4 sm:$0xff]   ;;  %v5970_v51 = vld [vmem:[%s10369_s2 + $0x464] ss:$16 sps:$4 sm:$0xff]   ;;  %v7325_v52 = vcombine.high %v221_v49, %v221_v49  ;;  %v7380_v7 = vcombine.low %v221_v49, %v221_v49  ;;  %v5999_v9 = vld [vmem:[%s10369_s2 + $0x5e8] ss:$16 sps:$4 sm:$0xff]  }
  0x21   : > { %926 = vmatpush1.bf16.msra.mxu0 %v5931_v23  ;;  %v5975_v55 = vld [vmem:[%s10369_s2 + $0x460] ss:$16 sps:$4 sm:$0xff]   ;;  %v5976_v56 = vld [vmem:[%s10369_s2 + $0x444] ss:$16 sps:$4 sm:$0xff]   ;;  %v6004_v10 = vld [vmem:[%s10369_s2 + $0x4cc] ss:$16 sps:$4 sm:$0xff]  }
  0x22   : > { %967 = vmatpush1.bf16.msra.mxu1 %v5932_v24  ;;  %927 = vmatprep.subr.bf16.mxu0 %v5933_v25  ;;  %v5981_v59 = vld [vmem:[%s10369_s2 + $0x440] ss:$16 sps:$4 sm:$0xff]   ;;  %v5982_v60 = vld [vmem:[%s10369_s2 + $0x424] ss:$16 sps:$4 sm:$0xff]   ;;  %v6007_v11 = vld [vmem:[%s10369_s2 + $0x5cc] ss:$16 sps:$4 sm:$0xff]  }
  0x23   : > { %968 = vmatprep.subr.bf16.mxu1 %v5935_v26  ;;  %947 = vmatprep.mubr.bf16.mxu0 %v7325_v52  ;;  %v5987_v63 = vld [vmem:[%s10369_s2 + $0x420] ss:$16 sps:$4 sm:$0xff]   ;;  %v5988_v0 = vld [vmem:[%s10369_s2 + $0x404] ss:$16 sps:$4 sm:$0xff]   ;;  %v6002_v12 = vld [vmem:[%s10369_s2 + $0x4c8] ss:$16 sps:$4 sm:$0xff]  }
  0x24   : > { %v5993_v4 = vld [vmem:[%s10369_s2 + $0x400] ss:$16 sps:$4 sm:$0xff]   ;;  %v6005_v13 = vld [vmem:[%s10369_s2 + $0x5c8] ss:$16 sps:$4 sm:$0xff]   ;;  %v6010_v14 = vld [vmem:[%s10369_s2 + $0x4ac] ss:$16 sps:$4 sm:$0xff]  }
  0x25   : > { %928 = vmatpush1.bf16.msra.mxu0 %v5937_v27  ;;  %v6013_v15 = vld [vmem:[%s10369_s2 + $0x5ac] ss:$16 sps:$4 sm:$0xff]   ;;  %v6008_v16 = vld [vmem:[%s10369_s2 + $0x4a8] ss:$16 sps:$4 sm:$0xff]   ;;  %v6059_v49 = vld [vmem:[%s10369_s2 + $0x2a0] ss:$16 sps:$4 sm:$0xff]  }
  0x26   : > { %969 = vmatpush1.bf16.msra.mxu1 %v5938_v28  ;;  %929 = vmatprep.subr.bf16.mxu0 %v5939_v29  ;;  %v6011_v17 = vld [vmem:[%s10369_s2 + $0x5a8] ss:$16 sps:$4 sm:$0xff]   ;;  %v6016_v18 = vld [vmem:[%s10369_s2 + $0x48c] ss:$16 sps:$4 sm:$0xff]  }
  0x27   : > { %970 = vmatprep.subr.bf16.mxu1 %v5941_v30  ;;  %v6019_v19 = vld [vmem:[%s10369_s2 + $0x58c] ss:$16 sps:$4 sm:$0xff]   ;;  %v6014_v20 = vld [vmem:[%s10369_s2 + $0x488] ss:$16 sps:$4 sm:$0xff]  }
  0x28   : > { %v6017_v21 = vld [vmem:[%s10369_s2 + $0x588] ss:$16 sps:$4 sm:$0xff]   ;;  %v6022_v22 = vld [vmem:[%s10369_s2 + $0x46c] ss:$16 sps:$4 sm:$0xff]  }
  0x29   : > { %930 = vmatpush1.bf16.msra.mxu0 %v5943_v31  ;;  %v6025_v23 = vld [vmem:[%s10369_s2 + $0x56c] ss:$16 sps:$4 sm:$0xff]   ;;  %v6020_v24 = vld [vmem:[%s10369_s2 + $0x468] ss:$16 sps:$4 sm:$0xff]  }
  0x2a   : > { %971 = vmatpush1.bf16.msra.mxu1 %v5944_v32  ;;  %931 = vmatprep.subr.bf16.mxu0 %v5945_v33  ;;  %v6023_v25 = vld [vmem:[%s10369_s2 + $0x568] ss:$16 sps:$4 sm:$0xff]   ;;  %v6028_v26 = vld [vmem:[%s10369_s2 + $0x44c] ss:$16 sps:$4 sm:$0xff]  }
  0x2b   : > { %997 = vmatprep.subr.bf16.mxu1 %v5950_v34  ;;  %v6031_v27 = vld [vmem:[%s10369_s2 + $0x54c] ss:$16 sps:$4 sm:$0xff]   ;;  %v6026_v28 = vld [vmem:[%s10369_s2 + $0x448] ss:$16 sps:$4 sm:$0xff]  }
  0x2c   : > { %v6029_v29 = vld [vmem:[%s10369_s2 + $0x548] ss:$16 sps:$4 sm:$0xff]   ;;  %v6034_v30 = vld [vmem:[%s10369_s2 + $0x42c] ss:$16 sps:$4 sm:$0xff]  }
  0x2d   : > { %989 = vmatmul.mubr.bf16.vlgmr.msra.gmra.mxu1 %v7276_v35  ;;  %932 = vmatpush2.bf16.msra.mxu0 %v5951_v37  ;;  %v6037_v31 = vld [vmem:[%s10369_s2 + $0x52c] ss:$16 sps:$4 sm:$0xff]   ;;  %v6032_v32 = vld [vmem:[%s10369_s2 + $0x428] ss:$16 sps:$4 sm:$0xff]  }
  0x2e   : > { %998 = vmatpush1.bf16.msra.mxu1 %v5948_v36  ;;  %933 = vmatprep.subr.bf16.mxu0 %v5952_v38  ;;  %v6035_v33 = vld [vmem:[%s10369_s2 + $0x528] ss:$16 sps:$4 sm:$0xff]   ;;  %v6040_v34 = vld [vmem:[%s10369_s2 + $0x40c] ss:$16 sps:$4 sm:$0xff]  }
  0x2f   : > { %999 = vmatprep.subr.bf16.mxu1 %v5956_v39  ;;  %1029 = vmatprep.mubr.bf16.mxu1 %v7325_v52  ;;  %v6043_v36 = vld [vmem:[%s10369_s2 + $0x50c] ss:$16 sps:$4 sm:$0xff]   ;;  %v6038_v37 = vld [vmem:[%s10369_s2 + $0x408] ss:$16 sps:$4 sm:$0xff]   ;;  %v6046_v39 = vld [vmem:[%s10369_s2 + $0xe4] ss:$16 sps:$4 sm:$0xff]  }
  0x30   : > { %v6041_v38 = vld [vmem:[%s10369_s2 + $0x508] ss:$16 sps:$4 sm:$0xff]  }
  0x31   : > { %934 = vmatpush2.bf16.msra.mxu0 %v5957_v41  ;;  %v6044_v41 = vld [vmem:[%s10369_s2 + $0xe0] ss:$16 sps:$4 sm:$0xff]  }
  0x32   : > { %1000 = vmatpush1.bf16.msra.mxu1 %v5954_v40  ;;  %935 = vmatprep.subr.bf16.mxu0 %v5958_v42  ;;  %v6049_v40 = vld [vmem:[%s10369_s2 + $0x2e4] ss:$16 sps:$4 sm:$0xff]   ;;  %v6047_v42 = vld [vmem:[%s10369_s2 + $0x2e0] ss:$16 sps:$4 sm:$0xff]  }
  0x33   : > { %1001 = vmatprep.subr.bf16.mxu1 %v5962_v43  ;;  %v6052_v43 = vld [vmem:[%s10369_s2 + $0xc4] ss:$16 sps:$4 sm:$0xff]  }
  0x35   : > { %936 = vmatpush2.bf16.msra.mxu0 %v5963_v45  ;;  %v6050_v45 = vld [vmem:[%s10369_s2 + $0xc0] ss:$16 sps:$4 sm:$0xff]  }
  0x36   : > { %1002 = vmatpush1.bf16.msra.mxu1 %v5960_v44  ;;  %937 = vmatprep.subr.bf16.mxu0 %v5964_v46  ;;  %v6055_v44 = vld [vmem:[%s10369_s2 + $0x2c4] ss:$16 sps:$4 sm:$0xff]   ;;  %v6053_v46 = vld [vmem:[%s10369_s2 + $0x2c0] ss:$16 sps:$4 sm:$0xff]  }
  0x37   : > { %1003 = vmatprep.subr.bf16.mxu1 %v5968_v47  ;;  %v6058_v47 = vld [vmem:[%s10369_s2 + $0xa4] ss:$16 sps:$4 sm:$0xff]  }
  0x39   : > { %938 = vmatpush2.bf16.msra.mxu0 %v5969_v50  ;;  %v6064_v50 = vld [vmem:[%s10369_s2 + $0x84] ss:$16 sps:$4 sm:$0xff]  }
  0x3a   : > { %1004 = vmatpush1.bf16.msra.mxu1 %v5966_v48  ;;  %939 = vmatprep.subr.bf16.mxu0 %v5970_v51  ;;  %v6056_v48 = vld [vmem:[%s10369_s2 + $0xa0] ss:$16 sps:$4 sm:$0xff]   ;;  %v6067_v51 = vld [vmem:[%s10369_s2 + $0x284] ss:$16 sps:$4 sm:$0xff]  }
  0x3b   : > { %1005 = vmatprep.subr.bf16.mxu1 %v5974_v53  ;;  %v6062_v53 = vld [vmem:[%s10369_s2 + $0x80] ss:$16 sps:$4 sm:$0xff]  }
  0x3d   : > { %940 = vmatpush2.bf16.msra.mxu0 %v5975_v55  ;;  %v7533_v55 = vld [vmem:[%s7461_s22] sm:$0x77] }
  0x3e   : > { %1006 = vmatpush1.bf16.msra.mxu1 %v5972_v54  ;;  %941 = vmatprep.subr.bf16.mxu0 %v5976_v56  ;;  %v6065_v54 = vld [vmem:[%s10369_s2 + $0x280] ss:$16 sps:$4 sm:$0xff]   ;;  %v6070_v56 = vld [vmem:[%s10369_s2 + $0x64] ss:$16 sps:$4 sm:$0xff]  }
  0x3f   : > { %1007 = vmatprep.subr.bf16.mxu1 %v5980_v57  ;;  %v6073_v57 = vld [vmem:[%s10369_s2 + $0x264] ss:$16 sps:$4 sm:$0xff]  }
  0x41   : > { %942 = vmatpush2.bf16.msra.mxu0 %v5981_v59  ;;  %v6068_v59 = vld [vmem:[%s10369_s2 + $0x60] ss:$16 sps:$4 sm:$0xff]  }
  0x42   : > { %1008 = vmatpush1.bf16.msra.mxu1 %v5978_v58  ;;  %943 = vmatprep.subr.bf16.mxu0 %v5982_v60  ;;  %v5196_v58 = vcombine.high %v7533_v55, %v7533_v55  ;;  %v6071_v60 = vld [vmem:[%s10369_s2 + $0x260] ss:$16 sps:$4 sm:$0xff]  }
  0x43   : > { %1009 = vmatprep.subr.bf16.mxu1 %v5986_v61  ;;  %v6076_v61 = vld [vmem:[%s10369_s2 + $0x44] ss:$16 sps:$4 sm:$0xff]  }
  0x45   : > { %944 = vmatpush2.bf16.msra.mxu0 %v5987_v63  ;;  %v6074_v63 = vld [vmem:[%s10369_s2 + $0x40] ss:$16 sps:$4 sm:$0xff]  }
  0x46   : > { %1010 = vmatpush1.bf16.msra.mxu1 %v5984_v62  ;;  %945 = vmatprep.subr.bf16.mxu0 %v5988_v0  ;;  %v6079_v62 = vld [vmem:[%s10369_s2 + $0x244] ss:$16 sps:$4 sm:$0xff]   ;;  %v6077_v0 = vld [vmem:[%s10369_s2 + $0x240] ss:$16 sps:$4 sm:$0xff]  }
  0x47   : > { %1011 = vmatprep.subr.bf16.mxu1 %v5992_v1  ;;  %v6082_v1 = vld [vmem:[%s10369_s2 + $0x24] ss:$16 sps:$4 sm:$0xff]  }
  0x49   : > { %946 = vmatpush2.bf16.msra.mxu0 %v5993_v4  ;;  %v6080_v4 = vld [vmem:[%s10369_s2 + $0x20] ss:$16 sps:$4 sm:$0xff]  }
  0x4a   : > { %1012 = vmatpush1.bf16.msra.mxu1 %v5990_v3  ;;  %1038 = vmatprep.subr.bf16.mxu0 %v6001_v6  ;;  %v6085_v3 = vld [vmem:[%s10369_s2 + $0x224] ss:$16 sps:$4 sm:$0xff]  }
  0x4b   : > { %1013 = vmatprep.subr.bf16.mxu1 %v5998_v5  ;;  %v6083_v5 = vld [vmem:[%s10369_s2 + $0x220] ss:$16 sps:$4 sm:$0xff]   ;;  %v6088_v6 = vld [vmem:[%s10369_s2 + $0x4] ss:$16 sps:$4 sm:$0xff]  }
  0x4c   : > { %948 = vmatmul.mubr.bf16.vlgmr.msra.gmra.mxu0 %v7380_v7 }
  0x4d   : > { %1039 = vmatpush1.bf16.msra.mxu0 %v5999_v9  ;;  %1070 = vmatprep.mubr.bf16.mxu0 %v7124_v2  ;;  %v6086_v9 = vld [vmem:[%s10369_s2] ss:$16 sps:$4 sm:$0xff]  }
  0x4e   : > { %1014 = vmatpush2.bf16.msra.mxu1 %v5996_v8  ;;  %1040 = vmatprep.subr.bf16.mxu0 %v6007_v11  ;;  %v6091_v8 = vld [vmem:[%s10369_s2 + $0x204] ss:$16 sps:$4 sm:$0xff]  }
  0x4f   : > { %1015 = vmatprep.subr.bf16.mxu1 %v6004_v10  ;;  %v6089_v10 = vld [vmem:[%s10369_s2 + $0x200] ss:$16 sps:$4 sm:$0xff]   ;;  %v6094_v11 = vld [vmem:[%s10369_s2 + $0x1e4] ss:$16 sps:$4 sm:$0xff]  }
  0x51   : > { %1041 = vmatpush1.bf16.msra.mxu0 %v6005_v13  ;;  %v7592_v13 = vld [vmem:[%s7461_s22 + $0x8] ss:$0 sps:$4 sm:$0x77]  }
  0x52   : > { %1016 = vmatpush2.bf16.msra.mxu1 %v6002_v12  ;;  %1042 = vmatprep.subr.bf16.mxu0 %v6013_v15  ;;  %v6098_v12 = vld [vmem:[%s10369_s2 + $0xec] ss:$16 sps:$4 sm:$0xff]   ;;  %v6096_v15 = vld [vmem:[%s10369_s2 + $0xe8] ss:$16 sps:$4 sm:$0xff]  }
  0x53   : > { %1017 = vmatprep.subr.bf16.mxu1 %v6010_v14  ;;  %v6092_v14 = vld [vmem:[%s10369_s2 + $0x1e0] ss:$16 sps:$4 sm:$0xff]  }
  0x55   : > { %1043 = vmatpush1.bf16.msra.mxu0 %v6011_v17  ;;  %v6104_v17 = vld [vmem:[%s10369_s2 + $0xcc] ss:$16 sps:$4 sm:$0xff]  }
  0x56   : > { %1018 = vmatpush2.bf16.msra.mxu1 %v6008_v16  ;;  %1044 = vmatprep.subr.bf16.mxu0 %v6019_v19  ;;  %v6101_v16 = vld [vmem:[%s10369_s2 + $0x1c4] ss:$16 sps:$4 sm:$0xff]   ;;  %v6102_v19 = vld [vmem:[%s10369_s2 + $0xc8] ss:$16 sps:$4 sm:$0xff]  }
  0x57   : > { %1019 = vmatprep.subr.bf16.mxu1 %v6016_v18  ;;  %v6099_v18 = vld [vmem:[%s10369_s2 + $0x1c0] ss:$16 sps:$4 sm:$0xff]  }
  0x59   : > { %1045 = vmatpush1.bf16.msra.mxu0 %v6017_v21  ;;  %v6110_v21 = vld [vmem:[%s10369_s2 + $0xac] ss:$16 sps:$4 sm:$0xff]  }
  0x5a   : > { %1020 = vmatpush2.bf16.msra.mxu1 %v6014_v20  ;;  %1046 = vmatprep.subr.bf16.mxu0 %v6025_v23  ;;  %v6107_v20 = vld [vmem:[%s10369_s2 + $0x1a4] ss:$16 sps:$4 sm:$0xff]   ;;  %v6108_v23 = vld [vmem:[%s10369_s2 + $0xa8] ss:$16 sps:$4 sm:$0xff]  }
  0x5b   : > { %1021 = vmatprep.subr.bf16.mxu1 %v6022_v22  ;;  %v6105_v22 = vld [vmem:[%s10369_s2 + $0x1a0] ss:$16 sps:$4 sm:$0xff]  }
  0x5d   : > { %1047 = vmatpush1.bf16.msra.mxu0 %v6023_v25  ;;  %v6116_v25 = vld [vmem:[%s10369_s2 + $0x8c] ss:$16 sps:$4 sm:$0xff]  }
  0x5e   : > { %1022 = vmatpush2.bf16.msra.mxu1 %v6020_v24  ;;  %1048 = vmatprep.subr.bf16.mxu0 %v6031_v27  ;;  %v6113_v24 = vld [vmem:[%s10369_s2 + $0x184] ss:$16 sps:$4 sm:$0xff]   ;;  %v6114_v27 = vld [vmem:[%s10369_s2 + $0x88] ss:$16 sps:$4 sm:$0xff]  }
  0x5f   : > { %1023 = vmatprep.subr.bf16.mxu1 %v6028_v26  ;;  %v6111_v26 = vld [vmem:[%s10369_s2 + $0x180] ss:$16 sps:$4 sm:$0xff]  }
  0x61   : > { %1049 = vmatpush1.bf16.msra.mxu0 %v6029_v29  ;;  %v6122_v29 = vld [vmem:[%s10369_s2 + $0x6c] ss:$16 sps:$4 sm:$0xff]  }
  0x62   : > { %1024 = vmatpush2.bf16.msra.mxu1 %v6026_v28  ;;  %1050 = vmatprep.subr.bf16.mxu0 %v6037_v31  ;;  %v6119_v28 = vld [vmem:[%s10369_s2 + $0x164] ss:$16 sps:$4 sm:$0xff]   ;;  %v6120_v31 = vld [vmem:[%s10369_s2 + $0x68] ss:$16 sps:$4 sm:$0xff]  }
  0x63   : > { %1025 = vmatprep.subr.bf16.mxu1 %v6034_v30  ;;  %v6117_v30 = vld [vmem:[%s10369_s2 + $0x160] ss:$16 sps:$4 sm:$0xff]  }
  0x65   : > { %1051 = vmatpush1.bf16.msra.mxu0 %v6035_v33  ;;  %v6128_v33 = vld [vmem:[%s10369_s2 + $0x4c] ss:$16 sps:$4 sm:$0xff]  }
  0x66   : > { %1026 = vmatpush2.bf16.msra.mxu1 %v6032_v32  ;;  %1052 = vmatprep.subr.bf16.mxu0 %v6043_v36  ;;  %v6125_v32 = vld [vmem:[%s10369_s2 + $0x144] ss:$16 sps:$4 sm:$0xff]   ;;  %v6126_v36 = vld [vmem:[%s10369_s2 + $0x48] ss:$16 sps:$4 sm:$0xff]  }
  0x67   : > { %1027 = vmatprep.subr.bf16.mxu1 %v6040_v34  ;;  %v6123_v34 = vld [vmem:[%s10369_s2 + $0x140] ss:$16 sps:$4 sm:$0xff]  }
  0x69   : > { %1053 = vmatpush1.bf16.msra.mxu0 %v6041_v38  ;;  %v6134_v38 = vld [vmem:[%s10369_s2 + $0x2c] ss:$16 sps:$4 sm:$0xff]  }
  0x6a   : > { %1028 = vmatpush2.bf16.msra.mxu1 %v6038_v37  ;;  %1570 = vmatprep.subr.bf16.mxu0 %v6046_v39  ;;  %v6131_v37 = vld [vmem:[%s10369_s2 + $0x124] ss:$16 sps:$4 sm:$0xff]   ;;  %v6129_v39 = vld [vmem:[%s10369_s2 + $0x120] ss:$16 sps:$4 sm:$0xff]  }
  0x6b   : > { %1611 = vmatprep.subr.bf16.mxu1 %v6049_v40  ;;  %v6132_v40 = vld [vmem:[%s10369_s2 + $0x28] ss:$16 sps:$4 sm:$0xff]  }
  0x6c   : > { %1071 = vmatmul.mubr.bf16.vlgmr.msra.gmra.mxu0 %v7276_v35  ;;  %v6061_v35 = vld [vmem:[%s10369_s2 + $0x2a4] ss:$16 sps:$4 sm:$0xff]  }
  0x6d   : > { %1030 = vmatmul.mubr.bf16.vlgmr.msra.gmra.mxu1 %v7380_v7  ;;  %1571 = vmatpush1.bf16.msra.mxu0 %v6044_v41  ;;  %v6137_v41 = vld [vmem:[%s10369_s2 + $0x104] ss:$16 sps:$4 sm:$0xff]  }
  0x6e   : > { %1612 = vmatpush1.bf16.msra.mxu1 %v6047_v42  ;;  %1572 = vmatprep.subr.bf16.mxu0 %v6052_v43  ;;  %v6140_v42 = vld [vmem:[%s10369_s2 + $0xc] ss:$16 sps:$4 sm:$0xff]   ;;  %v6135_v43 = vld [vmem:[%s10369_s2 + $0x100] ss:$16 sps:$4 sm:$0xff]  }
  0x6f   : > { %1613 = vmatprep.subr.bf16.mxu1 %v6055_v44  ;;  %1643 = vmatprep.mubr.bf16.mxu1 %v7124_v2  ;;  %v6138_v44 = vld [vmem:[%s10369_s2 + $0x8] ss:$16 sps:$4 sm:$0xff]  }
  0x70   : > { %1602 = vmatprep.mubr.bf16.mxu0 %v5196_v58 }
  0x71   : > { %1573 = vmatpush1.bf16.msra.mxu0 %v6050_v45  ;;  %v6145_v45 = vld [vmem:[%s10369_s2 + $0x1ec] ss:$16 sps:$4 sm:$0xff]  }
  0x72   : > { %1614 = vmatpush1.bf16.msra.mxu1 %v6053_v46  ;;  %1574 = vmatprep.subr.bf16.mxu0 %v6058_v47  ;;  %v6148_v46 = vld [vmem:[%s10369_s2 + $0x2ec] ss:$16 sps:$4 sm:$0xff]   ;;  %v7693_v47 = vcombine.low %v7533_v55, %v7533_v55 }
  0x73   : > { %1615 = vmatprep.subr.bf16.mxu1 %v6061_v35  ;;  %v6143_v35 = vld [vmem:[%s10369_s2 + $0x1e8] ss:$16 sps:$4 sm:$0xff]   ;;  %v6160_v55 = vld [vmem:[%s10369_s2 + $0x2ac] ss:$16 sps:$4 sm:$0xff]  }
  0x75   : > { %1575 = vmatpush1.bf16.msra.mxu0 %v6056_v48  ;;  %v6146_v48 = vld [vmem:[%s10369_s2 + $0x2e8] ss:$16 sps:$4 sm:$0xff]  }
  0x76   : > { %1616 = vmatpush1.bf16.msra.mxu1 %v6059_v49  ;;  %1576 = vmatprep.subr.bf16.mxu0 %v6064_v50  ;;  %v6151_v49 = vld [vmem:[%s10369_s2 + $0x1cc] ss:$16 sps:$4 sm:$0xff]  }
  0x77   : > { %1617 = vmatprep.subr.bf16.mxu1 %v6067_v51  ;;  %v6154_v50 = vld [vmem:[%s10369_s2 + $0x2cc] ss:$16 sps:$4 sm:$0xff]   ;;  %v6149_v51 = vld [vmem:[%s10369_s2 + $0x1c8] ss:$16 sps:$4 sm:$0xff]  }
  0x79   : > { %1577 = vmatpush1.bf16.msra.mxu0 %v6062_v53  ;;  %v6152_v53 = vld [vmem:[%s10369_s2 + $0x2c8] ss:$16 sps:$4 sm:$0xff]  }
  0x7a   : > { %1618 = vmatpush1.bf16.msra.mxu1 %v6065_v54  ;;  %1578 = vmatprep.subr.bf16.mxu0 %v6070_v56  ;;  %v6157_v54 = vld [vmem:[%s10369_s2 + $0x1ac] ss:$16 sps:$4 sm:$0xff]   ;;  %v6155_v56 = vld [vmem:[%s10369_s2 + $0x1a8] ss:$16 sps:$4 sm:$0xff]  }
  0x7b   : > { %1619 = vmatprep.subr.bf16.mxu1 %v6073_v57  ;;  %v6158_v57 = vld [vmem:[%s10369_s2 + $0x2a8] ss:$16 sps:$4 sm:$0xff]  }
  0x7d   : > { %1579 = vmatpush1.bf16.msra.mxu0 %v6068_v59  ;;  %v6166_v59 = vld [vmem:[%s10369_s2 + $0x28c] ss:$16 sps:$4 sm:$0xff]  }
  0x7e   : > { %1620 = vmatpush1.bf16.msra.mxu1 %v6071_v60  ;;  %1580 = vmatprep.subr.bf16.mxu0 %v6076_v61  ;;  %v6161_v60 = vld [vmem:[%s10369_s2 + $0x188] ss:$16 sps:$4 sm:$0xff]  }
  0x7f   : > { %1621 = vmatprep.subr.bf16.mxu1 %v6079_v62  ;;  %v6164_v61 = vld [vmem:[%s10369_s2 + $0x288] ss:$16 sps:$4 sm:$0xff]   ;;  %v6169_v62 = vld [vmem:[%s10369_s2 + $0x16c] ss:$16 sps:$4 sm:$0xff]  }
  0x81   : > { %1581 = vmatpush1.bf16.msra.mxu0 %v6074_v63  ;;  %v6172_v63 = vld [vmem:[%s10369_s2 + $0x26c] ss:$16 sps:$4 sm:$0xff]  }
  0x82   : > { %1622 = vmatpush1.bf16.msra.mxu1 %v6077_v0  ;;  %1582 = vmatprep.subr.bf16.mxu0 %v6082_v1  ;;  %v6167_v0 = vld [vmem:[%s10369_s2 + $0x168] ss:$16 sps:$4 sm:$0xff]  }
  0x83   : > { %1623 = vmatprep.subr.bf16.mxu1 %v6085_v3  ;;  %v6170_v1 = vld [vmem:[%s10369_s2 + $0x268] ss:$16 sps:$4 sm:$0xff]   ;;  %v6175_v3 = vld [vmem:[%s10369_s2 + $0x14c] ss:$16 sps:$4 sm:$0xff]  }
  0x85   : > { %1583 = vmatpush1.bf16.msra.mxu0 %v6080_v4  ;;  %v6178_v4 = vld [vmem:[%s10369_s2 + $0x24c] ss:$16 sps:$4 sm:$0xff]  }
  0x86   : > { %1624 = vmatpush1.bf16.msra.mxu1 %v6083_v5  ;;  %1584 = vmatprep.subr.bf16.mxu0 %v6088_v6  ;;  %v6173_v5 = vld [vmem:[%s10369_s2 + $0x148] ss:$16 sps:$4 sm:$0xff]   ;;  %v7761_v6 = vld [vmem:[%s7461_s22] sm:$0xff] }
  0x87   : > { %1625 = vmatprep.subr.bf16.mxu1 %v6091_v8  ;;  %v6176_v8 = vld [vmem:[%s10369_s2 + $0x248] ss:$16 sps:$4 sm:$0xff]  }
  0x89   : > { %1585 = vmatpush1.bf16.msra.mxu0 %v6086_v9  ;;  %v6181_v9 = vld [vmem:[%s10369_s2 + $0x12c] ss:$16 sps:$4 sm:$0xff]  }
  0x8a   : > { %1626 = vmatpush1.bf16.msra.mxu1 %v6089_v10  ;;  %1586 = vmatprep.subr.bf16.mxu0 %v6094_v11  ;;  %v6184_v10 = vld [vmem:[%s10369_s2 + $0x22c] ss:$16 sps:$4 sm:$0xff]   ;;  %v5391_v11 = vcombine.high %v7761_v6, %v7761_v6 }
  0x8b   : > { %1652 = vmatprep.subr.bf16.mxu1 %v6098_v12  ;;  %v6179_v12 = vld [vmem:[%s10369_s2 + $0x128] ss:$16 sps:$4 sm:$0xff]  }
  0x8d   : > { %1644 = vmatmul.mubr.bf16.vlgmr.msra.gmra.mxu1 %v7592_v13  ;;  %1587 = vmatpush2.bf16.msra.mxu0 %v6092_v14  ;;  %v6182_v14 = vld [vmem:[%s10369_s2 + $0x228] ss:$16 sps:$4 sm:$0xff]  }
  0x8e   : > { %1653 = vmatpush1.bf16.msra.mxu1 %v6096_v15  ;;  %1588 = vmatprep.subr.bf16.mxu0 %v6101_v16  ;;  %v6187_v15 = vld [vmem:[%s10369_s2 + $0x10c] ss:$16 sps:$4 sm:$0xff]  }
  0x8f   : > { %1654 = vmatprep.subr.bf16.mxu1 %v6104_v17  ;;  %1684 = vmatprep.mubr.bf16.mxu1 %v5196_v58  ;;  %v6163_v58 = vld [vmem:[%s10369_s2 + $0x18c] ss:$16 sps:$4 sm:$0xff]   ;;  %v1849_v17 = vshll.u32 %v5391_v11, 16 }
  0x90   : > { %v6190_v16 = vld [vmem:[%s10369_s2 + $0x20c] ss:$16 sps:$4 sm:$0xff]  }
  0x91   : > { %1589 = vmatpush2.bf16.msra.mxu0 %v6099_v18  ;;  %v6185_v18 = vld [vmem:[%s10369_s2 + $0x108] ss:$16 sps:$4 sm:$0xff]  }
  0x92   : > { %1655 = vmatpush1.bf16.msra.mxu1 %v6102_v19  ;;  %1590 = vmatprep.subr.bf16.mxu0 %v6107_v20  ;;  %v6188_v19 = vld [vmem:[%s10369_s2 + $0x208] ss:$16 sps:$4 sm:$0xff]   ;;  %v6193_v20 = vld [vmem:[%s10369_s2 + $0x6e4] ss:$16 sps:$4 sm:$0xff]  }
  0x93   : > { %1656 = vmatprep.subr.bf16.mxu1 %v6110_v21  ;;  %v6196_v21 = vld [vmem:[%s10369_s2 + $0x8e4] ss:$16 sps:$4 sm:$0xff]  }
  0x95   : > { %1591 = vmatpush2.bf16.msra.mxu0 %v6105_v22  ;;  %v1847_v22 = vshrl.u32 %v5391_v11, 16 }
  0x96   : > { %1657 = vmatpush1.bf16.msra.mxu1 %v6108_v23  ;;  %1592 = vmatprep.subr.bf16.mxu0 %v6113_v24  ;;  %v1851_v23 = vrot.slane %v1849_v17, 1  ;;  %v6191_v24 = vld [vmem:[%s10369_s2 + $0x6e0] ss:$16 sps:$4 sm:$0xff]   ;;  %v6263_v17 = vld [vmem:[%s10369_s2 + $0x68c] ss:$16 sps:$4 sm:$0xff]  }
  0x97   : > { %1658 = vmatprep.subr.bf16.mxu1 %v6116_v25  ;;  %v6194_v25 = vld [vmem:[%s10369_s2 + $0x8e0] ss:$16 sps:$4 sm:$0xff]  }
  0x99   : > { %1593 = vmatpush2.bf16.msra.mxu0 %v6111_v26  ;;  %v6199_v26 = vld [vmem:[%s10369_s2 + $0x6c4] ss:$16 sps:$4 sm:$0xff]  }
  0x9a   : > { %1659 = vmatpush1.bf16.msra.mxu1 %v6114_v27  ;;  %1594 = vmatprep.subr.bf16.mxu0 %v6119_v28  ;;  %v6202_v27 = vld [vmem:[%s10369_s2 + $0x8c4] ss:$16 sps:$4 sm:$0xff]   ;;  %v7810_v28 = vor.u32 %v1851_v23, %v1847_v22  ;;  %v6264_v22 = vld [vmem:[%s10369_s2 + $0x760] ss:$16 sps:$4 sm:$0xff]   ;;  %v6267_v23 = vld [vmem:[%s10369_s2 + $0x668] ss:$16 sps:$4 sm:$0xff]  }
  0x9b   : > { %1660 = vmatprep.subr.bf16.mxu1 %v6122_v29  ;;  %v6197_v29 = vld [vmem:[%s10369_s2 + $0x6c0] ss:$16 sps:$4 sm:$0xff]  }
  0x9d   : > { %1595 = vmatpush2.bf16.msra.mxu0 %v6117_v30  ;;  %v6200_v30 = vld [vmem:[%s10369_s2 + $0x8c0] ss:$16 sps:$4 sm:$0xff]  }
  0x9e   : > { %1661 = vmatpush1.bf16.msra.mxu1 %v6120_v31  ;;  %1596 = vmatprep.subr.bf16.mxu0 %v6125_v32  ;;  %v6205_v31 = vld [vmem:[%s10369_s2 + $0x6a4] ss:$16 sps:$4 sm:$0xff]   ;;  %v6203_v32 = vld [vmem:[%s10369_s2 + $0x6a0] ss:$16 sps:$4 sm:$0xff]  }
  0x9f   : > { %1662 = vmatprep.subr.bf16.mxu1 %v6128_v33  ;;  %v6206_v33 = vld [vmem:[%s10369_s2 + $0x8a0] ss:$16 sps:$4 sm:$0xff]  }
  0xa1   : > { %1597 = vmatpush2.bf16.msra.mxu0 %v6123_v34  ;;  %v6211_v34 = vld [vmem:[%s10369_s2 + $0x684] ss:$16 sps:$4 sm:$0xff]  }
  0xa2   : > { %1663 = vmatpush1.bf16.msra.mxu1 %v6126_v36  ;;  %1598 = vmatprep.subr.bf16.mxu0 %v6131_v37  ;;  %v6214_v36 = vld [vmem:[%s10369_s2 + $0x884] ss:$16 sps:$4 sm:$0xff]   ;;  %v6209_v37 = vld [vmem:[%s10369_s2 + $0x680] ss:$16 sps:$4 sm:$0xff]  }
  0xa3   : > { %1664 = vmatprep.subr.bf16.mxu1 %v6134_v38  ;;  %v6212_v38 = vld [vmem:[%s10369_s2 + $0x880] ss:$16 sps:$4 sm:$0xff]  }
  0xa5   : > { %1599 = vmatpush2.bf16.msra.mxu0 %v6129_v39  ;;  %v6217_v39 = vld [vmem:[%s10369_s2 + $0x664] ss:$16 sps:$4 sm:$0xff]  }
  0xa6   : > { %1665 = vmatpush1.bf16.msra.mxu1 %v6132_v40  ;;  %1600 = vmatprep.subr.bf16.mxu0 %v6137_v41  ;;  %v6220_v40 = vld [vmem:[%s10369_s2 + $0x864] ss:$16 sps:$4 sm:$0xff]   ;;  %v6215_v41 = vld [vmem:[%s10369_s2 + $0x660] ss:$16 sps:$4 sm:$0xff]  }
  0xa7   : > { %1666 = vmatprep.subr.bf16.mxu1 %v6140_v42  ;;  %v6218_v42 = vld [vmem:[%s10369_s2 + $0x860] ss:$16 sps:$4 sm:$0xff]  }
  0xa9   : > { %1601 = vmatpush2.bf16.msra.mxu0 %v6135_v43  ;;  %v6223_v43 = vld [vmem:[%s10369_s2 + $0x644] ss:$16 sps:$4 sm:$0xff]  }
  0xaa   : > { %1667 = vmatpush1.bf16.msra.mxu1 %v6138_v44  ;;  %1693 = vmatprep.subr.bf16.mxu0 %v6148_v46  ;;  %v6226_v44 = vld [vmem:[%s10369_s2 + $0x844] ss:$16 sps:$4 sm:$0xff]   ;;  %v6242_v46 = vld [vmem:[%s7461_s22 + $0x8] ss:$0 sps:$4 sm:$0xff]  }
  0xab   : > { %1668 = vmatprep.subr.bf16.mxu1 %v6145_v45  ;;  %v6221_v45 = vld [vmem:[%s10369_s2 + $0x640] ss:$16 sps:$4 sm:$0xff]  }
  0xac   : > { %1603 = vmatmul.mubr.bf16.vlgmr.msra.gmra.mxu0 %v7693_v47 }
  0xad   : > { %1694 = vmatpush1.bf16.msra.mxu0 %v6146_v48  ;;  %1725 = vmatprep.mubr.bf16.mxu0 %v7124_v2  ;;  %v6232_v48 = vld [vmem:[%s10369_s2 + $0x824] ss:$16 sps:$4 sm:$0xff]  }
  0xae   : > { %1669 = vmatpush2.bf16.msra.mxu1 %v6143_v35  ;;  %1695 = vmatprep.subr.bf16.mxu0 %v6154_v50  ;;  %v6229_v35 = vld [vmem:[%s10369_s2 + $0x624] ss:$16 sps:$4 sm:$0xff]   ;;  %v1856_v50 = vshll.u32 %v6242_v46, 16 }
  0xaf   : > { %1670 = vmatprep.subr.bf16.mxu1 %v6151_v49  ;;  %v6227_v49 = vld [vmem:[%s10369_s2 + $0x620] ss:$16 sps:$4 sm:$0xff]  }
  0xb1   : > { %1696 = vmatpush1.bf16.msra.mxu0 %v6152_v53  ;;  %v6235_v53 = vld [vmem:[%s10369_s2 + $0x604] ss:$16 sps:$4 sm:$0xff]  }
  0xb2   : > { %1671 = vmatpush2.bf16.msra.mxu1 %v6149_v51  ;;  %1697 = vmatprep.subr.bf16.mxu0 %v6160_v55  ;;  %v6230_v51 = vld [vmem:[%s10369_s2 + $0x820] ss:$16 sps:$4 sm:$0xff]  }
  0xb3   : > { %1672 = vmatprep.subr.bf16.mxu1 %v6157_v54  ;;  %v6238_v54 = vld [vmem:[%s10369_s2 + $0x804] ss:$16 sps:$4 sm:$0xff]   ;;  %v6233_v55 = vld [vmem:[%s10369_s2 + $0x600] ss:$16 sps:$4 sm:$0xff]  }
  0xb5   : > { %1698 = vmatpush1.bf16.msra.mxu0 %v6158_v57  ;;  %v1858_v57 = vrot.slane %v1856_v50, 1  ;;  %v6304_v50 = vld [vmem:[%s10369_s2 + $0x7ac] ss:$16 sps:$4 sm:$0xff]  }
  0xb6   : > { %1673 = vmatpush2.bf16.msra.mxu1 %v6155_v56  ;;  %1699 = vmatprep.subr.bf16.mxu0 %v6166_v59  ;;  %v1854_v56 = vshrl.u32 %v6242_v46, 16  ;;  %v6241_v59 = vld [vmem:[%s10369_s2 + $0x7e4] ss:$16 sps:$4 sm:$0xff]   ;;  %v6301_v46 = vld [vmem:[%s10369_s2 + $0x8cc] ss:$16 sps:$4 sm:$0xff]  }
  0xb7   : > { %1674 = vmatprep.subr.bf16.mxu1 %v6163_v58  ;;  %v6236_v58 = vld [vmem:[%s10369_s2 + $0x800] ss:$16 sps:$4 sm:$0xff]  }
  0xb9   : > { %1700 = vmatpush1.bf16.msra.mxu0 %v6164_v61  ;;  %v6239_v61 = vld [vmem:[%s10369_s2 + $0x7e0] ss:$16 sps:$4 sm:$0xff]  }
  0xba   : > { %1675 = vmatpush2.bf16.msra.mxu1 %v6161_v60  ;;  %1701 = vmatprep.subr.bf16.mxu0 %v6172_v63  ;;  %v6245_v60 = vld [vmem:[%s10369_s2 + $0x6ec] ss:$16 sps:$4 sm:$0xff]   ;;  %v6243_v63 = vld [vmem:[%s10369_s2 + $0x6e8] ss:$16 sps:$4 sm:$0xff]  }
  0xbb   : > { %1676 = vmatprep.subr.bf16.mxu1 %v6169_v62  ;;  %v7904_v62 = vor.u32 %v1858_v57, %v1854_v56  ;;  %v6302_v56 = vld [vmem:[%s10369_s2 + $0x7a8] ss:$16 sps:$4 sm:$0xff]  }
  0xbc   : > { %v6305_v57 = vld [vmem:[%s10369_s2 + $0x8a8] ss:$16 sps:$4 sm:$0xff]  }
  0xbd   : > { %1702 = vmatpush1.bf16.msra.mxu0 %v6170_v1  ;;  %v6251_v1 = vld [vmem:[%s10369_s2 + $0x6cc] ss:$16 sps:$4 sm:$0xff]  }
  0xbe   : > { %1677 = vmatpush2.bf16.msra.mxu1 %v6167_v0  ;;  %1703 = vmatprep.subr.bf16.mxu0 %v6178_v4  ;;  %v6248_v0 = vld [vmem:[%s10369_s2 + $0x7c4] ss:$16 sps:$4 sm:$0xff]   ;;  %v6246_v4 = vld [vmem:[%s10369_s2 + $0x7c0] ss:$16 sps:$4 sm:$0xff]  }
  0xbf   : > { %1678 = vmatprep.subr.bf16.mxu1 %v6175_v3 }
  0xc1   : > { %1704 = vmatpush1.bf16.msra.mxu0 %v6176_v8 }
  0xc2   : > { %1679 = vmatpush2.bf16.msra.mxu1 %v6173_v5  ;;  %1705 = vmatprep.subr.bf16.mxu0 %v6184_v10  ;;  %v6249_v5 = vld [vmem:[%s10369_s2 + $0x6c8] ss:$16 sps:$4 sm:$0xff]   ;;  %v6257_v10 = vld [vmem:[%s10369_s2 + $0x6ac] ss:$16 sps:$4 sm:$0xff]  }
  0xc3   : > { %1680 = vmatprep.subr.bf16.mxu1 %v6181_v9  ;;  %v6254_v9 = vld [vmem:[%s10369_s2 + $0x7a4] ss:$16 sps:$4 sm:$0xff]  }
  0xc5   : > { %1706 = vmatpush1.bf16.msra.mxu0 %v6182_v14  ;;  %v6255_v14 = vld [vmem:[%s10369_s2 + $0x6a8] ss:$16 sps:$4 sm:$0xff]  }
  0xc6   : > { %1681 = vmatpush2.bf16.msra.mxu1 %v6179_v12  ;;  %1707 = vmatprep.subr.bf16.mxu0 %v6190_v16  ;;  %v6252_v12 = vld [vmem:[%s10369_s2 + $0x7a0] ss:$16 sps:$4 sm:$0xff]   ;;  %v6260_v16 = vld [vmem:[%s10369_s2 + $0x784] ss:$16 sps:$4 sm:$0xff]  }
  0xc7   : > { %1682 = vmatprep.subr.bf16.mxu1 %v6187_v15 }
  0xc9   : > { %1708 = vmatpush1.bf16.msra.mxu0 %v6188_v19  ;;  %v6261_v19 = vld [vmem:[%s10369_s2 + $0x688] ss:$16 sps:$4 sm:$0xff]  }
  0xca   : > { %1683 = vmatpush2.bf16.msra.mxu1 %v6185_v18  ;;  %2343 = vmatprep.subr.bf16.mxu0 %v6193_v20  ;;  %v6258_v18 = vld [vmem:[%s10369_s2 + $0x780] ss:$16 sps:$4 sm:$0xff]   ;;  %v6266_v20 = vld [vmem:[%s10369_s2 + $0x764] ss:$16 sps:$4 sm:$0xff]  }
  0xcb   : > { %2384 = vmatprep.subr.bf16.mxu1 %v6196_v21  ;;  %v6269_v21 = vld [vmem:[%s10369_s2 + $0x66c] ss:$16 sps:$4 sm:$0xff]  }
  0xcc   : > { %1726 = vmatmul.mubr.bf16.vlgmr.msra.gmra.mxu0 %v7592_v13  ;;  %v6208_v13 = vld [vmem:[%s10369_s2 + $0x8a4] ss:$16 sps:$4 sm:$0xff]  }
  0xcd   : > { %1685 = vmatmul.mubr.bf16.vlgmr.msra.gmra.mxu1 %v7693_v47  ;;  %2344 = vmatpush1.bf16.msra.mxu0 %v6191_v24  ;;  %v6224_v47 = vld [vmem:[%s10369_s2 + $0x840] ss:$16 sps:$4 sm:$0xff]   ;;  %v6272_v24 = vld [vmem:[%s10369_s2 + $0x744] ss:$16 sps:$4 sm:$0xff]  }
  0xce   : > { %2385 = vmatpush1.bf16.msra.mxu1 %v6194_v25  ;;  %2345 = vmatprep.subr.bf16.mxu0 %v6199_v26  ;;  %v6275_v25 = vld [vmem:[%s10369_s2 + $0x64c] ss:$16 sps:$4 sm:$0xff]   ;;  %v6270_v26 = vld [vmem:[%s10369_s2 + $0x740] ss:$16 sps:$4 sm:$0xff]  }
  0xcf   : > { %2386 = vmatprep.subr.bf16.mxu1 %v6202_v27  ;;  %2416 = vmatprep.mubr.bf16.mxu1 %v7124_v2  ;;  %v5390_v27 = vcombine.low %v7761_v6, %v7761_v6  ;;  %v6276_v6 = vld [vmem:[%s10369_s2 + $0x720] ss:$16 sps:$4 sm:$0xff]  }
  0xd0   : > { %2375 = vmatprep.mubr.bf16.mxu0 %v7810_v28 }
  0xd1   : > { %2346 = vmatpush1.bf16.msra.mxu0 %v6197_v29  ;;  %v6273_v29 = vld [vmem:[%s10369_s2 + $0x648] ss:$16 sps:$4 sm:$0xff]  }
  0xd2   : > { %2387 = vmatpush1.bf16.msra.mxu1 %v6200_v30  ;;  %2347 = vmatprep.subr.bf16.mxu0 %v6205_v31  ;;  %v6278_v30 = vld [vmem:[%s10369_s2 + $0x724] ss:$16 sps:$4 sm:$0xff]   ;;  %v6281_v31 = vld [vmem:[%s10369_s2 + $0x62c] ss:$16 sps:$4 sm:$0xff]  }
  0xd3   : > { %2388 = vmatprep.subr.bf16.mxu1 %v6208_v13  ;;  %v1842_v13 = vshll.u32 %v5390_v27, 16 }
  0xd5   : > { %2348 = vmatpush1.bf16.msra.mxu0 %v6203_v32  ;;  %v6279_v32 = vld [vmem:[%s10369_s2 + $0x628] ss:$16 sps:$4 sm:$0xff]  }
  0xd6   : > { %2389 = vmatpush1.bf16.msra.mxu1 %v6206_v33  ;;  %2349 = vmatprep.subr.bf16.mxu0 %v6211_v34  ;;  %v6284_v33 = vld [vmem:[%s10369_s2 + $0x704] ss:$16 sps:$4 sm:$0xff]   ;;  %v6287_v34 = vld [vmem:[%s10369_s2 + $0x60c] ss:$16 sps:$4 sm:$0xff]  }
  0xd7   : > { %2390 = vmatprep.subr.bf16.mxu1 %v6214_v36  ;;  %v6282_v36 = vld [vmem:[%s10369_s2 + $0x700] ss:$16 sps:$4 sm:$0xff]  }
  0xd9   : > { %2350 = vmatpush1.bf16.msra.mxu0 %v6209_v37  ;;  %v1840_v37 = vshrl.u32 %v5390_v27, 16 }
  0xda   : > { %2391 = vmatpush1.bf16.msra.mxu1 %v6212_v38  ;;  %2351 = vmatprep.subr.bf16.mxu0 %v6217_v39  ;;  %v1844_v38 = vrot.slane %v1842_v13, 1  ;;  %v6285_v39 = vld [vmem:[%s10369_s2 + $0x608] ss:$16 sps:$4 sm:$0xff]   ;;  %v6347_v13 = vld [vmem:[%s10369_s2 + $0xbc0] ss:$16 sps:$4 sm:$0xff]  }
  0xdb   : > { %2392 = vmatprep.subr.bf16.mxu1 %v6220_v40  ;;  %v6292_v40 = vld [vmem:[%s10369_s2 + $0x7ec] ss:$16 sps:$4 sm:$0xff]  }
  0xdd   : > { %2352 = vmatpush1.bf16.msra.mxu0 %v6215_v41  ;;  %v6295_v41 = vld [vmem:[%s10369_s2 + $0x8ec] ss:$16 sps:$4 sm:$0xff]  }
  0xde   : > { %2393 = vmatpush1.bf16.msra.mxu1 %v6218_v42  ;;  %2353 = vmatprep.subr.bf16.mxu0 %v6223_v43  ;;  %v8007_v42 = vor.u32 %v1844_v38, %v1840_v37  ;;  %v6290_v43 = vld [vmem:[%s10369_s2 + $0x7e8] ss:$16 sps:$4 sm:$0xff]  }
  0xdf   : > { %2394 = vmatprep.subr.bf16.mxu1 %v6226_v44  ;;  %v6293_v44 = vld [vmem:[%s10369_s2 + $0x8e8] ss:$16 sps:$4 sm:$0xff]  }
  0xe1   : > { %2354 = vmatpush1.bf16.msra.mxu0 %v6221_v45  ;;  %v6298_v45 = vld [vmem:[%s10369_s2 + $0x7cc] ss:$16 sps:$4 sm:$0xff]  }
  0xe2   : > { %2395 = vmatpush1.bf16.msra.mxu1 %v6224_v47  ;;  %2355 = vmatprep.subr.bf16.mxu0 %v6229_v35  ;;  %v6296_v35 = vld [vmem:[%s10369_s2 + $0x7c8] ss:$16 sps:$4 sm:$0xff]  }
  0xe3   : > { %2396 = vmatprep.subr.bf16.mxu1 %v6232_v48 }
  0xe5   : > { %2356 = vmatpush1.bf16.msra.mxu0 %v6227_v49  ;;  %v6299_v49 = vld [vmem:[%s10369_s2 + $0x8c8] ss:$16 sps:$4 sm:$0xff]  }
  0xe6   : > { %2397 = vmatpush1.bf16.msra.mxu1 %v6230_v51  ;;  %2357 = vmatprep.subr.bf16.mxu0 %v6235_v53  ;;  %v6307_v53 = vld [vmem:[%s10369_s2 + $0x8ac] ss:$16 sps:$4 sm:$0xff]  }
  0xe7   : > { %2398 = vmatprep.subr.bf16.mxu1 %v6238_v54 }
  0xe9   : > { %2358 = vmatpush1.bf16.msra.mxu0 %v6233_v55 }
  0xea   : > { %2399 = vmatpush1.bf16.msra.mxu1 %v6236_v58  ;;  %2359 = vmatprep.subr.bf16.mxu0 %v6241_v59  ;;  %v6310_v58 = vld [vmem:[%s10369_s2 + $0x78c] ss:$16 sps:$4 sm:$0xff]  }
  0xeb   : > { %2425 = vmatprep.subr.bf16.mxu1 %v6245_v60  ;;  %v6313_v60 = vld [vmem:[%s10369_s2 + $0x88c] ss:$16 sps:$4 sm:$0xff]  }
  0xed   : > { %v7915_v3 = vpop.f32.mrf.mxu1  ;;  %2417 = vmatmul.mubr.bf16.vlgmr.msra.gmra.mxu1 %v7904_v62  ;;  %2360 = vmatpush2.bf16.msra.mxu0 %v6239_v61  ;;  %v6308_v61 = vld [vmem:[%s10369_s2 + $0x788] ss:$16 sps:$4 sm:$0xff]  }
  0xee   : > { %2426 = vmatpush1.bf16.msra.mxu1 %v6243_v63  ;;  %2361 = vmatprep.subr.bf16.mxu0 %v6248_v0  ;;  %v6311_v63 = vld [vmem:[%s10369_s2 + $0x888] ss:$16 sps:$4 sm:$0xff]   ;;  %v6316_v0 = vld [vmem:[%s10369_s2 + $0x76c] ss:$16 sps:$4 sm:$0xff]  }
  0xef   : > { %v7924_v8 = vpop.f32.mrf.mxu1  ;;  %2427 = vmatprep.subr.bf16.mxu1 %v6251_v1  ;;  %2457 = vmatprep.mubr.bf16.mxu1 %v7810_v28  ;;  %v6319_v1 = vld [vmem:[%s10369_s2 + $0x86c] ss:$16 sps:$4 sm:$0xff]  }
  0xf1   : > { %v994_v11 = vpop.f32.mrf.mxu1  ;;  %2362 = vmatpush2.bf16.msra.mxu0 %v6246_v4  ;;  %v6317_v4 = vld [vmem:[%s10369_s2 + $0x868] ss:$16 sps:$4 sm:$0xff]  }
  0xf2   : > { %2428 = vmatpush1.bf16.msra.mxu1 %v6249_v5  ;;  %2363 = vmatprep.subr.bf16.mxu0 %v6254_v9  ;;  %v6322_v5 = vld [vmem:[%s10369_s2 + $0x74c] ss:$16 sps:$4 sm:$0xff]   ;;  %v8078_v9 = vld [vmem:[%s7249_s24] sm:$0xff]  ;;  %v6323_v11 = vld [vmem:[%s10369_s2 + $0x848] ss:$16 sps:$4 sm:$0xff]  }
  0xf3   : > { %v995_v15 = vpop.f32.mrf.mxu1  ;;  %2429 = vmatprep.subr.bf16.mxu1 %v6257_v10  ;;  %v6320_v10 = vld [vmem:[%s10369_s2 + $0x748] ss:$16 sps:$4 sm:$0xff]  }
  0xf4   : > { %v5586_v15 = vcombine.high %v8078_v9, %v8078_v9 }
  0xf5   : > { %2364 = vmatpush2.bf16.msra.mxu0 %v6252_v12  ;;  %v6328_v12 = vld [vmem:[%s10369_s2 + $0x72c] ss:$16 sps:$4 sm:$0xff]  }
  0xf6   : > { %2430 = vmatpush1.bf16.msra.mxu1 %v6255_v14  ;;  %2365 = vmatprep.subr.bf16.mxu0 %v6260_v16  ;;  %v6331_v14 = vld [vmem:[%s10369_s2 + $0x82c] ss:$16 sps:$4 sm:$0xff]   ;;  %v6326_v16 = vld [vmem:[%s10369_s2 + $0x728] ss:$16 sps:$4 sm:$0xff]  }
  0xf7   : > { %2431 = vmatprep.subr.bf16.mxu1 %v6263_v17  ;;  %v6329_v17 = vld [vmem:[%s10369_s2 + $0x828] ss:$16 sps:$4 sm:$0xff]  }
  0xf9   : > { %2366 = vmatpush2.bf16.msra.mxu0 %v6258_v18  ;;  %v6334_v18 = vld [vmem:[%s10369_s2 + $0x70c] ss:$16 sps:$4 sm:$0xff]  }
  0xfa   : > { %2432 = vmatpush1.bf16.msra.mxu1 %v6261_v19  ;;  %2367 = vmatprep.subr.bf16.mxu0 %v6266_v20  ;;  %v6337_v19 = vld [vmem:[%s10369_s2 + $0x80c] ss:$16 sps:$4 sm:$0xff]   ;;  %v2626_v20 = vshll.u32 %v5586_v15, 16 }
  0xfb   : > { %2433 = vmatprep.subr.bf16.mxu1 %v6269_v21  ;;  %v6332_v21 = vld [vmem:[%s10369_s2 + $0x708] ss:$16 sps:$4 sm:$0xff]  }
  0xfc   : > { %v2628_v27 = vrot.slane %v2626_v20, 1  ;;  %v6386_v20 = vld [vmem:[%s10369_s2 + $0xae0] ss:$16 sps:$4 sm:$0xff]  }
  0xfd   : > { %2368 = vmatpush2.bf16.msra.mxu0 %v6264_v22  ;;  %v6335_v22 = vld [vmem:[%s10369_s2 + $0x808] ss:$16 sps:$4 sm:$0xff]  }
  0xfe   : > { %2434 = vmatpush1.bf16.msra.mxu1 %v6267_v23  ;;  %2369 = vmatprep.subr.bf16.mxu0 %v6272_v24  ;;  %v6340_v23 = vld [vmem:[%s10369_s2 + $0x9e4] ss:$16 sps:$4 sm:$0xff]  }
  0xff   : > { %2435 = vmatprep.subr.bf16.mxu1 %v6275_v25  ;;  %v6343_v24 = vld [vmem:[%s10369_s2 + $0xbe4] ss:$16 sps:$4 sm:$0xff]   ;;  %v6338_v25 = vld [vmem:[%s10369_s2 + $0x9e0] ss:$16 sps:$4 sm:$0xff]  }
 0x101   : > { %2370 = vmatpush2.bf16.msra.mxu0 %v6270_v26  ;;  %v2624_v26 = vshrl.u32 %v5586_v15, 16  ;;  %v6380_v15 = vld [vmem:[%s10369_s2 + $0x900] ss:$16 sps:$4 sm:$0xff]  }
 0x102   : > { %2436 = vmatpush1.bf16.msra.mxu1 %v6273_v29  ;;  %2371 = vmatprep.subr.bf16.mxu0 %v6278_v30  ;;  %v6341_v29 = vld [vmem:[%s10369_s2 + $0xbe0] ss:$16 sps:$4 sm:$0xff]   ;;  %v6346_v30 = vld [vmem:[%s10369_s2 + $0x9c4] ss:$16 sps:$4 sm:$0xff]  }
 0x103   : > { %2437 = vmatprep.subr.bf16.mxu1 %v6281_v31  ;;  %v6349_v31 = vld [vmem:[%s10369_s2 + $0xbc4] ss:$16 sps:$4 sm:$0xff]  }
 0x105   : > { %2372 = vmatpush2.bf16.msra.mxu0 %v6276_v6  ;;  %v6344_v6 = vld [vmem:[%s10369_s2 + $0x9c0] ss:$16 sps:$4 sm:$0xff]  }
 0x106   : > { %2438 = vmatpush1.bf16.msra.mxu1 %v6279_v32  ;;  %2373 = vmatprep.subr.bf16.mxu0 %v6284_v33  ;;  %v8136_v32 = vor.u32 %v2628_v27, %v2624_v26  ;;  %v6396_v26 = vld [vmem:[%s10369_s2 + $0x9c8] ss:$16 sps:$4 sm:$0xff]  }
 0x107   : > { %2439 = vmatprep.subr.bf16.mxu1 %v6287_v34 }
 0x109   : > { %2374 = vmatpush2.bf16.msra.mxu0 %v6282_v36 }
 0x10a   : > { %2440 = vmatpush1.bf16.msra.mxu1 %v6285_v39  ;;  %2466 = vmatprep.subr.bf16.mxu0 %v6295_v41  ;;  %v6352_v39 = vld [vmem:[%s10369_s2 + $0x9a4] ss:$16 sps:$4 sm:$0xff]  }
 0x10b   : > { %2441 = vmatprep.subr.bf16.mxu1 %v6292_v40  ;;  %v6355_v40 = vld [vmem:[%s10369_s2 + $0xba4] ss:$16 sps:$4 sm:$0xff]  }
 0x10c   : > { %v949_v47 = vpop.f32.mrf.mxu0  ;;  %2376 = vmatmul.mubr.bf16.vlgmr.msra.gmra.mxu0 %v8007_v42 }
 0x10d   : > { %v8026_v48 = vadd.f32 %v7915_v3, %v949_v47  ;;  %2467 = vmatpush1.bf16.msra.mxu0 %v6293_v44  ;;  %2498 = vmatprep.mubr.bf16.mxu0 %v7124_v2  ;;  %v6314_v3 = vld [vmem:[%s10369_s2 + $0x768] ss:$16 sps:$4 sm:$0xff]   ;;  %v6353_v44 = vld [vmem:[%s10369_s2 + $0xba0] ss:$16 sps:$4 sm:$0xff]  }
 0x10e   : > { %2442 = vmatpush2.bf16.msra.mxu1 %v6290_v43  ;;  %v951_v51 = vpop.f32.mrf.mxu0  ;;  %2468 = vmatprep.subr.bf16.mxu0 %v6301_v46  ;;  %v6350_v43 = vld [vmem:[%s10369_s2 + $0x9a0] ss:$16 sps:$4 sm:$0xff]  }
 0x10f   : > { %2443 = vmatprep.subr.bf16.mxu1 %v6298_v45  ;;  %v8038_v54 = vadd.f32 %v7924_v8, %v951_v51  ;;  %v6325_v8 = vld [vmem:[%s10369_s2 + $0x84c] ss:$16 sps:$4 sm:$0xff]   ;;  %v6356_v51 = vld [vmem:[%s10369_s2 + $0x980] ss:$16 sps:$4 sm:$0xff]  }
 0x110   : > { %v953_v55 = vpop.f32.mrf.mxu0 }
 0x111   : > { %2469 = vmatpush1.bf16.msra.mxu0 %v6299_v49  ;;  %v6358_v49 = vld [vmem:[%s10369_s2 + $0x984] ss:$16 sps:$4 sm:$0xff]  }
 0x112   : > { %2444 = vmatpush2.bf16.msra.mxu1 %v6296_v35  ;;  %v954_v59 = vpop.f32.mrf.mxu0  ;;  %2470 = vmatprep.subr.bf16.mxu0 %v6307_v53  ;;  %v6359_v53 = vld [vmem:[%s10369_s2 + $0xb80] ss:$16 sps:$4 sm:$0xff]   ;;  %v6364_v55 = vld [vmem:[%s10369_s2 + $0x964] ss:$16 sps:$4 sm:$0xff]  }
 0x113   : > { %2445 = vmatprep.subr.bf16.mxu1 %v6304_v50  ;;  %v6361_v50 = vld [vmem:[%s10369_s2 + $0xb84] ss:$16 sps:$4 sm:$0xff]  }
 0x114   : > { %v6370_v59 = vld [vmem:[%s10369_s2 + $0x944] ss:$16 sps:$4 sm:$0xff]  }
 0x115   : > { %2471 = vmatpush1.bf16.msra.mxu0 %v6305_v57  ;;  %v6362_v57 = vld [vmem:[%s10369_s2 + $0x960] ss:$16 sps:$4 sm:$0xff]  }
 0x116   : > { %2446 = vmatpush2.bf16.msra.mxu1 %v6302_v56  ;;  %2472 = vmatprep.subr.bf16.mxu0 %v6313_v60  ;;  %v6367_v56 = vld [vmem:[%s10369_s2 + $0xb64] ss:$16 sps:$4 sm:$0xff]  }
 0x117   : > { %2447 = vmatprep.subr.bf16.mxu1 %v6310_v58  ;;  %v6365_v58 = vld [vmem:[%s10369_s2 + $0xb60] ss:$16 sps:$4 sm:$0xff]   ;;  %v6373_v60 = vld [vmem:[%s10369_s2 + $0xb44] ss:$16 sps:$4 sm:$0xff]  }
 0x119   : > { %2473 = vmatpush1.bf16.msra.mxu0 %v6311_v63  ;;  %v6368_v63 = vld [vmem:[%s10369_s2 + $0x940] ss:$16 sps:$4 sm:$0xff]  }
 0x11a   : > { %2448 = vmatpush2.bf16.msra.mxu1 %v6308_v61  ;;  %2474 = vmatprep.subr.bf16.mxu0 %v6319_v1  ;;  %v6389_v61 = vld [vmem:[%s7249_s24 + $0x8] ss:$0 sps:$4 sm:$0xff]   ;;  %v6376_v1 = vld [vmem:[%s10369_s2 + $0x924] ss:$16 sps:$4 sm:$0xff]  }
 0x11b   : > { %2449 = vmatprep.subr.bf16.mxu1 %v6316_v0  ;;  %v6371_v0 = vld [vmem:[%s10369_s2 + $0xb40] ss:$16 sps:$4 sm:$0xff]  }
 0x11d   : > { %2475 = vmatpush1.bf16.msra.mxu0 %v6317_v4  ;;  %v2633_v4 = vshll.u32 %v6389_v61, 16 }
 0x11e   : > { %2450 = vmatpush2.bf16.msra.mxu1 %v6314_v3  ;;  %2476 = vmatprep.subr.bf16.mxu0 %v6325_v8  ;;  %v6379_v3 = vld [vmem:[%s10369_s2 + $0xb24] ss:$16 sps:$4 sm:$0xff]   ;;  %v6377_v8 = vld [vmem:[%s10369_s2 + $0xb20] ss:$16 sps:$4 sm:$0xff]  }
 0x11f   : > { %2451 = vmatprep.subr.bf16.mxu1 %v6322_v5  ;;  %v6374_v5 = vld [vmem:[%s10369_s2 + $0x920] ss:$16 sps:$4 sm:$0xff]  }
 0x121   : > { %2477 = vmatpush1.bf16.msra.mxu0 %v6323_v11  ;;  %v6385_v11 = vld [vmem:[%s10369_s2 + $0xb04] ss:$16 sps:$4 sm:$0xff]  }
 0x122   : > { %2452 = vmatpush2.bf16.msra.mxu1 %v6320_v10  ;;  %2478 = vmatprep.subr.bf16.mxu0 %v6331_v14  ;;  %v6382_v10 = vld [vmem:[%s10369_s2 + $0x904] ss:$16 sps:$4 sm:$0xff]   ;;  %v2635_v14 = vrot.slane %v2633_v4, 1  ;;  %v6437_v4 = vld [vmem:[%s10369_s2 + $0xae8] ss:$16 sps:$4 sm:$0xff]  }
 0x123   : > { %2453 = vmatprep.subr.bf16.mxu1 %v6328_v12  ;;  %v2631_v12 = vshrl.u32 %v6389_v61, 16  ;;  %v6429_v61 = vld [vmem:[%s10369_s2 + $0xa00] ss:$16 sps:$4 sm:$0xff]  }
 0x125   : > { %2479 = vmatpush1.bf16.msra.mxu0 %v6329_v17  ;;  %v6388_v17 = vld [vmem:[%s10369_s2 + $0xae4] ss:$16 sps:$4 sm:$0xff]  }
 0x126   : > { %2454 = vmatpush2.bf16.msra.mxu1 %v6326_v16  ;;  %2480 = vmatprep.subr.bf16.mxu0 %v6337_v19  ;;  %v6383_v16 = vld [vmem:[%s10369_s2 + $0xb00] ss:$16 sps:$4 sm:$0xff]   ;;  %v8225_v19 = vor.u32 %v2635_v14, %v2631_v12  ;;  %v6443_v14 = vld [vmem:[%s10369_s2 + $0xac8] ss:$16 sps:$4 sm:$0xff]  }
 0x127   : > { %2455 = vmatprep.subr.bf16.mxu1 %v6334_v18  ;;  %v6392_v18 = vld [vmem:[%s10369_s2 + $0x9ec] ss:$16 sps:$4 sm:$0xff]  }
 0x129   : > { %2481 = vmatpush1.bf16.msra.mxu0 %v6335_v22  ;;  %v6395_v22 = vld [vmem:[%s10369_s2 + $0xac4] ss:$16 sps:$4 sm:$0xff]  }
 0x12a   : > { %2456 = vmatpush2.bf16.msra.mxu1 %v6332_v21  ;;  %3120 = vmatprep.subr.bf16.mxu0 %v6340_v23  ;;  %v6390_v21 = vld [vmem:[%s10369_s2 + $0x9e8] ss:$16 sps:$4 sm:$0xff]   ;;  %v6398_v23 = vld [vmem:[%s10369_s2 + $0x9cc] ss:$16 sps:$4 sm:$0xff]  }
 0x12b   : > { %3161 = vmatprep.subr.bf16.mxu1 %v6343_v24 }
 0x12c   : > { %v1072_v34 = vpop.f32.mrf.mxu0  ;;  %2499 = vmatmul.mubr.bf16.vlgmr.msra.gmra.mxu0 %v7904_v62 }
 0x12d   : > { %v1031_v33 = vpop.f32.mrf.mxu1  ;;  %2458 = vmatmul.mubr.bf16.vlgmr.msra.gmra.mxu1 %v8007_v42  ;;  %3121 = vmatpush1.bf16.msra.mxu0 %v6338_v25  ;;  %v6393_v25 = vld [vmem:[%s10369_s2 + $0xac0] ss:$16 sps:$4 sm:$0xff]  }
 0x12e   : > { %v8140_v36 = vadd.f32 %v1072_v34, %v1031_v33  ;;  %3162 = vmatpush1.bf16.msra.mxu1 %v6341_v29  ;;  %v1074_v38 = vpop.f32.mrf.mxu0  ;;  %3122 = vmatprep.subr.bf16.mxu0 %v6346_v30  ;;  %v6401_v29 = vld [vmem:[%s10369_s2 + $0xaa4] ss:$16 sps:$4 sm:$0xff]   ;;  %v6404_v30 = vld [vmem:[%s10369_s2 + $0x9ac] ss:$16 sps:$4 sm:$0xff]  }
 0x12f   : > { %v1033_v37 = vpop.f32.mrf.mxu1  ;;  %3163 = vmatprep.subr.bf16.mxu1 %v6349_v31  ;;  %3193 = vmatprep.mubr.bf16.mxu1 %v7124_v2  ;;  %v6407_v34 = vld [vmem:[%s10369_s2 + $0xa84] ss:$16 sps:$4 sm:$0xff]  }
 0x130   : > { %v8148_v41 = vadd.f32 %v1074_v38, %v1033_v37  ;;  %3152 = vmatprep.mubr.bf16.mxu0 %v8136_v32  ;;  %v1076_v46 = vpop.f32.mrf.mxu0  ;;  %v6410_v37 = vld [vmem:[%s10369_s2 + $0x98c] ss:$16 sps:$4 sm:$0xff]   ;;  %v6405_v38 = vld [vmem:[%s10369_s2 + $0xa80] ss:$16 sps:$4 sm:$0xff]  }
 0x131   : > { %v1035_v45 = vpop.f32.mrf.mxu1  ;;  %3123 = vmatpush1.bf16.msra.mxu0 %v6344_v6  ;;  %v6399_v6 = vld [vmem:[%s10369_s2 + $0xaa0] ss:$16 sps:$4 sm:$0xff]   ;;  %v6419_v46 = vld [vmem:[%s10369_s2 + $0xa44] ss:$16 sps:$4 sm:$0xff]  }
 0x132   : > { %3164 = vmatpush1.bf16.msra.mxu1 %v6347_v13  ;;  %v1077_v35 = vpop.f32.mrf.mxu0  ;;  %3124 = vmatprep.subr.bf16.mxu0 %v6352_v39  ;;  %v6402_v13 = vld [vmem:[%s10369_s2 + $0x9a8] ss:$16 sps:$4 sm:$0xff]  }
 0x133   : > { %v1036_v47 = vpop.f32.mrf.mxu1  ;;  %3165 = vmatprep.subr.bf16.mxu1 %v6355_v40  ;;  %v6408_v39 = vld [vmem:[%s10369_s2 + $0x988] ss:$16 sps:$4 sm:$0xff]   ;;  %v6413_v40 = vld [vmem:[%s10369_s2 + $0xa64] ss:$16 sps:$4 sm:$0xff]   ;;  %v5585_v35 = vcombine.low %v8078_v9, %v8078_v9  ;;  %v6428_v9 = vld [vmem:[%s10369_s2 + $0x92c] ss:$16 sps:$4 sm:$0xff]  }
 0x134   : > { %v6414_v45 = vld [vmem:[%s10369_s2 + $0x968] ss:$16 sps:$4 sm:$0xff]   ;;  %v6422_v47 = vld [vmem:[%s10369_s2 + $0x94c] ss:$16 sps:$4 sm:$0xff]  }
 0x135   : > { %3125 = vmatpush1.bf16.msra.mxu0 %v6350_v43  ;;  %v6416_v43 = vld [vmem:[%s10369_s2 + $0x96c] ss:$16 sps:$4 sm:$0xff]  }
 0x136   : > { %3166 = vmatpush1.bf16.msra.mxu1 %v6353_v44  ;;  %3126 = vmatprep.subr.bf16.mxu0 %v6358_v49  ;;  %v6411_v44 = vld [vmem:[%s10369_s2 + $0xa60] ss:$16 sps:$4 sm:$0xff]  }
 0x137   : > { %3167 = vmatprep.subr.bf16.mxu1 %v6361_v50  ;;  %v6417_v49 = vld [vmem:[%s10369_s2 + $0xa40] ss:$16 sps:$4 sm:$0xff]   ;;  %v6420_v50 = vld [vmem:[%s10369_s2 + $0x948] ss:$16 sps:$4 sm:$0xff]  }
 0x139   : > { %3127 = vmatpush1.bf16.msra.mxu0 %v6356_v51  ;;  %v6425_v51 = vld [vmem:[%s10369_s2 + $0xa24] ss:$16 sps:$4 sm:$0xff]  }
 0x13a   : > { %3168 = vmatpush1.bf16.msra.mxu1 %v6359_v53  ;;  %3128 = vmatprep.subr.bf16.mxu0 %v6364_v55  ;;  %v2619_v53 = vshll.u32 %v5585_v35, 16  ;;  %v6423_v55 = vld [vmem:[%s10369_s2 + $0xa20] ss:$16 sps:$4 sm:$0xff]  }
 0x13b   : > { %3169 = vmatprep.subr.bf16.mxu1 %v6367_v56  ;;  %v6426_v56 = vld [vmem:[%s10369_s2 + $0x928] ss:$16 sps:$4 sm:$0xff]  }
 0x13d   : > { %3129 = vmatpush1.bf16.msra.mxu0 %v6362_v57  ;;  %v6431_v57 = vld [vmem:[%s10369_s2 + $0xa04] ss:$16 sps:$4 sm:$0xff]  }
 0x13e   : > { %3170 = vmatpush1.bf16.msra.mxu1 %v6365_v58  ;;  %3130 = vmatprep.subr.bf16.mxu0 %v6370_v59  ;;  %v6434_v58 = vld [vmem:[%s10369_s2 + $0x90c] ss:$16 sps:$4 sm:$0xff]   ;;  %v2617_v59 = vshrl.u32 %v5585_v35, 16  ;;  %v6479_v35 = vld [vmem:[%s10369_s2 + $0xa08] ss:$16 sps:$4 sm:$0xff]  }
 0x13f   : > { %3171 = vmatprep.subr.bf16.mxu1 %v6373_v60  ;;  %v2621_v60 = vrot.slane %v2619_v53, 1  ;;  %v6485_v53 = vld [vmem:[%s10369_s2 + $0xce0] ss:$16 sps:$4 sm:$0xff]  }
 0x141   : > { %3131 = vmatpush1.bf16.msra.mxu0 %v6368_v63  ;;  %v6432_v63 = vld [vmem:[%s10369_s2 + $0x908] ss:$16 sps:$4 sm:$0xff]  }
 0x142   : > { %3172 = vmatpush1.bf16.msra.mxu1 %v6371_v0  ;;  %3132 = vmatprep.subr.bf16.mxu0 %v6376_v1  ;;  %v6439_v0 = vld [vmem:[%s10369_s2 + $0xaec] ss:$16 sps:$4 sm:$0xff]  }
 0x143   : > { %3173 = vmatprep.subr.bf16.mxu1 %v6379_v3  ;;  %v6442_v1 = vld [vmem:[%s10369_s2 + $0xbec] ss:$16 sps:$4 sm:$0xff]   ;;  %v8331_v3 = vor.u32 %v2621_v60, %v2617_v59 }
 0x145   : > { %3133 = vmatpush1.bf16.msra.mxu0 %v6374_v5  ;;  %v6440_v5 = vld [vmem:[%s10369_s2 + $0xbe8] ss:$16 sps:$4 sm:$0xff]  }
 0x146   : > { %3174 = vmatpush1.bf16.msra.mxu1 %v6377_v8  ;;  %3134 = vmatprep.subr.bf16.mxu0 %v6382_v10  ;;  %v6445_v8 = vld [vmem:[%s10369_s2 + $0xacc] ss:$16 sps:$4 sm:$0xff]  }
 0x147   : > { %3175 = vmatprep.subr.bf16.mxu1 %v6385_v11  ;;  %v6448_v10 = vld [vmem:[%s10369_s2 + $0xbcc] ss:$16 sps:$4 sm:$0xff]  }
 0x149   : > { %3135 = vmatpush1.bf16.msra.mxu0 %v6380_v15  ;;  %v6446_v15 = vld [vmem:[%s10369_s2 + $0xbc8] ss:$16 sps:$4 sm:$0xff]  }
 0x14a   : > { %3176 = vmatpush1.bf16.msra.mxu1 %v6383_v16  ;;  %3136 = vmatprep.subr.bf16.mxu0 %v6388_v17  ;;  %v6451_v17 = vld [vmem:[%s10369_s2 + $0xaac] ss:$16 sps:$4 sm:$0xff]  }
 0x14b   : > { %3202 = vmatprep.subr.bf16.mxu1 %v6392_v18 }
 0x14d   : > { %v8239_v24 = vpop.f32.mrf.mxu1  ;;  %3194 = vmatmul.mubr.bf16.vlgmr.msra.gmra.mxu1 %v8225_v19  ;;  %3137 = vmatpush2.bf16.msra.mxu0 %v6386_v20 }
 0x14e   : > { %3203 = vmatpush1.bf16.msra.mxu1 %v6390_v21  ;;  %3138 = vmatprep.subr.bf16.mxu0 %v6395_v22 }
 0x14f   : > { %v8248_v27 = vpop.f32.mrf.mxu1  ;;  %3204 = vmatprep.subr.bf16.mxu1 %v6398_v23  ;;  %3234 = vmatprep.mubr.bf16.mxu1 %v8136_v32  ;;  %v6449_v23 = vld [vmem:[%s10369_s2 + $0xaa8] ss:$16 sps:$4 sm:$0xff]  }
 0x151   : > { %v1649_v31 = vpop.f32.mrf.mxu1  ;;  %3139 = vmatpush2.bf16.msra.mxu0 %v6393_v25  ;;  %v6452_v25 = vld [vmem:[%s10369_s2 + $0xba8] ss:$16 sps:$4 sm:$0xff]  }
 0x152   : > { %3205 = vmatpush1.bf16.msra.mxu1 %v6396_v26  ;;  %3140 = vmatprep.subr.bf16.mxu0 %v6401_v29  ;;  %v6460_v26 = vld [vmem:[%s10369_s2 + $0xb8c] ss:$16 sps:$4 sm:$0xff]   ;;  %v6458_v29 = vld [vmem:[%s10369_s2 + $0xb88] ss:$16 sps:$4 sm:$0xff]  }
 0x153   : > { %v1650_v33 = vpop.f32.mrf.mxu1  ;;  %3206 = vmatprep.subr.bf16.mxu1 %v6404_v30  ;;  %v6463_v30 = vld [vmem:[%s10369_s2 + $0xa6c] ss:$16 sps:$4 sm:$0xff]  }
 0x154   : > { %v6466_v31 = vld [vmem:[%s10369_s2 + $0xb6c] ss:$16 sps:$4 sm:$0xff]  }
 0x155   : > { %3141 = vmatpush2.bf16.msra.mxu0 %v6399_v6  ;;  %v6461_v6 = vld [vmem:[%s10369_s2 + $0xa68] ss:$16 sps:$4 sm:$0xff]   ;;  %v6469_v33 = vld [vmem:[%s10369_s2 + $0xa4c] ss:$16 sps:$4 sm:$0xff]  }
 0x156   : > { %3207 = vmatpush1.bf16.msra.mxu1 %v6402_v13  ;;  %3142 = vmatprep.subr.bf16.mxu0 %v6407_v34  ;;  %v6464_v13 = vld [vmem:[%s10369_s2 + $0xb68] ss:$16 sps:$4 sm:$0xff]   ;;  %v6472_v34 = vld [vmem:[%s10369_s2 + $0xb4c] ss:$16 sps:$4 sm:$0xff]  }
 0x157   : > { %3208 = vmatprep.subr.bf16.mxu1 %v6410_v37  ;;  %v6467_v37 = vld [vmem:[%s10369_s2 + $0xa48] ss:$16 sps:$4 sm:$0xff]  }
 0x159   : > { %3143 = vmatpush2.bf16.msra.mxu0 %v6405_v38  ;;  %v6470_v38 = vld [vmem:[%s10369_s2 + $0xb48] ss:$16 sps:$4 sm:$0xff]  }
 0x15a   : > { %3209 = vmatpush1.bf16.msra.mxu1 %v6408_v39  ;;  %3144 = vmatprep.subr.bf16.mxu0 %v6413_v40  ;;  %v6475_v39 = vld [vmem:[%s10369_s2 + $0xa2c] ss:$16 sps:$4 sm:$0xff]  }
 0x15b   : > { %3210 = vmatprep.subr.bf16.mxu1 %v6416_v43  ;;  %v6478_v40 = vld [vmem:[%s10369_s2 + $0xb2c] ss:$16 sps:$4 sm:$0xff]   ;;  %v6473_v43 = vld [vmem:[%s10369_s2 + $0xa28] ss:$16 sps:$4 sm:$0xff]  }
 0x15d   : > { %3145 = vmatpush2.bf16.msra.mxu0 %v6411_v44  ;;  %v6476_v44 = vld [vmem:[%s10369_s2 + $0xb28] ss:$16 sps:$4 sm:$0xff]  }
 0x15e   : > { %3211 = vmatpush1.bf16.msra.mxu1 %v6414_v45  ;;  %3146 = vmatprep.subr.bf16.mxu0 %v6419_v46  ;;  %v6481_v45 = vld [vmem:[%s10369_s2 + $0xa0c] ss:$16 sps:$4 sm:$0xff]  }
 0x15f   : > { %3212 = vmatprep.subr.bf16.mxu1 %v6422_v47  ;;  %v6484_v46 = vld [vmem:[%s10369_s2 + $0xb0c] ss:$16 sps:$4 sm:$0xff]   ;;  %v8428_v47 = vld [vmem:[%s7461_s22] sm:$0xee] }
 0x161   : > { %3147 = vmatpush2.bf16.msra.mxu0 %v6417_v49  ;;  %v6482_v49 = vld [vmem:[%s10369_s2 + $0xb08] ss:$16 sps:$4 sm:$0xff]  }
 0x162   : > { %3213 = vmatpush1.bf16.msra.mxu1 %v6420_v50  ;;  %3148 = vmatprep.subr.bf16.mxu0 %v6425_v51  ;;  %v6487_v50 = vld [vmem:[%s10369_s2 + $0xce4] ss:$16 sps:$4 sm:$0xff]  }
 0x163   : > { %3214 = vmatprep.subr.bf16.mxu1 %v6428_v9  ;;  %v6490_v51 = vld [vmem:[%s10369_s2 + $0xee4] ss:$16 sps:$4 sm:$0xff]   ;;  %v5781_v9 = vcombine.high %v8428_v47, %v8428_v47 }
 0x165   : > { %3149 = vmatpush2.bf16.msra.mxu0 %v6423_v55  ;;  %v6488_v55 = vld [vmem:[%s10369_s2 + $0xee0] ss:$16 sps:$4 sm:$0xff]  }
 0x166   : > { %3215 = vmatpush1.bf16.msra.mxu1 %v6426_v56  ;;  %3150 = vmatprep.subr.bf16.mxu0 %v6431_v57  ;;  %v6493_v56 = vld [vmem:[%s10369_s2 + $0xcc4] ss:$16 sps:$4 sm:$0xff]  }
 0x167   : > { %3216 = vmatprep.subr.bf16.mxu1 %v6434_v58  ;;  %v6496_v57 = vld [vmem:[%s10369_s2 + $0xec4] ss:$16 sps:$4 sm:$0xff]   ;;  %v8456_v58 = vrot.slane %v5781_v9, 1 }
 0x169   : > { %3151 = vmatpush2.bf16.msra.mxu0 %v6429_v61 }
 0x16a   : > { %3217 = vmatpush1.bf16.msra.mxu1 %v6432_v63  ;;  %3243 = vmatprep.subr.bf16.mxu0 %v6442_v1  ;;  %v6491_v63 = vld [vmem:[%s10369_s2 + $0xcc0] ss:$16 sps:$4 sm:$0xff]  }
 0x16b   : > { %3218 = vmatprep.subr.bf16.mxu1 %v6439_v0  ;;  %v6494_v0 = vld [vmem:[%s10369_s2 + $0xec0] ss:$16 sps:$4 sm:$0xff]  }
 0x16c   : > { %v1604_v11 = vpop.f32.mrf.mxu0  ;;  %3153 = vmatmul.mubr.bf16.vlgmr.msra.gmra.mxu0 %v8331_v3 }
 0x16d   : > { %v1605_v12 = vadd.f32 %v1604_v11, %v8026_v48  ;;  %3244 = vmatpush1.bf16.msra.mxu0 %v6440_v5  ;;  %v6454_v48 = vld [vmem:[%s10369_s2 + $0xbac] ss:$16 sps:$4 sm:$0xff]   ;;  %3275 = vmatprep.mubr.bf16.mxu0 %v7124_v2  ;;  %v6499_v5 = vld [vmem:[%s10369_s2 + $0xca4] ss:$16 sps:$4 sm:$0xff]  }
 0x16e   : > { %3219 = vmatpush2.bf16.msra.mxu1 %v6437_v4  ;;  %v1606_v16 = vpop.f32.mrf.mxu0  ;;  %3245 = vmatprep.subr.bf16.mxu0 %v6448_v10 }
 0x16f   : > { %3220 = vmatprep.subr.bf16.mxu1 %v6445_v8  ;;  %v8360_v18 = vadd.f32 %v8239_v24, %v1605_v12  ;;  %v1607_v20 = vadd.f32 %v1606_v16, %v8038_v54  ;;  %v6457_v54 = vld [vmem:[%s10369_s2 + $0xa8c] ss:$16 sps:$4 sm:$0xff]   ;;  %v6500_v16 = vld [vmem:[%s10369_s2 + $0xea0] ss:$16 sps:$4 sm:$0xff]  }
 0x170   : > { %v1608_v21 = vpop.f32.mrf.mxu0 }
 0x171   : > { %v8365_v22 = vadd.f32 %v8248_v27, %v1607_v20  ;;  %3246 = vmatpush1.bf16.msra.mxu0 %v6446_v15  ;;  %v6455_v27 = vld [vmem:[%s10369_s2 + $0xa88] ss:$16 sps:$4 sm:$0xff]   ;;  %v6497_v15 = vld [vmem:[%s10369_s2 + $0xca0] ss:$16 sps:$4 sm:$0xff]   ;;  %v6508_v20 = vld [vmem:[%s10369_s2 + $0xe84] ss:$16 sps:$4 sm:$0xff]  }
 0x172   : > { %3221 = vmatpush2.bf16.msra.mxu1 %v6443_v14  ;;  %v1609_v24 = vpop.f32.mrf.mxu0  ;;  %3247 = vmatprep.subr.bf16.mxu0 %v6454_v48  ;;  %v6505_v48 = vld [vmem:[%s10369_s2 + $0xc84] ss:$16 sps:$4 sm:$0xff]   ;;  %v6503_v21 = vld [vmem:[%s10369_s2 + $0xc80] ss:$16 sps:$4 sm:$0xff]  }
 0x173   : > { %3222 = vmatprep.subr.bf16.mxu1 %v6451_v17  ;;  %v6514_v24 = vld [vmem:[%s10369_s2 + $0xe64] ss:$16 sps:$4 sm:$0xff]  }
 0x175   : > { %3248 = vmatpush1.bf16.msra.mxu0 %v6452_v25  ;;  %v6511_v25 = vld [vmem:[%s10369_s2 + $0xc64] ss:$16 sps:$4 sm:$0xff]  }
 0x176   : > { %3223 = vmatpush2.bf16.msra.mxu1 %v6449_v23  ;;  %3249 = vmatprep.subr.bf16.mxu0 %v6460_v26  ;;  %v6506_v23 = vld [vmem:[%s10369_s2 + $0xe80] ss:$16 sps:$4 sm:$0xff]  }
 0x177   : > { %3224 = vmatprep.subr.bf16.mxu1 %v6457_v54  ;;  %v6509_v54 = vld [vmem:[%s10369_s2 + $0xc60] ss:$16 sps:$4 sm:$0xff]  }
 0x178   : > { %v6512_v26 = vld [vmem:[%s10369_s2 + $0xe60] ss:$16 sps:$4 sm:$0xff]  }
 0x179   : > { %3250 = vmatpush1.bf16.msra.mxu0 %v6458_v29  ;;  %v6520_v29 = vld [vmem:[%s10369_s2 + $0xe44] ss:$16 sps:$4 sm:$0xff]  }
 0x17a   : > { %3225 = vmatpush2.bf16.msra.mxu1 %v6455_v27  ;;  %3251 = vmatprep.subr.bf16.mxu0 %v6466_v31  ;;  %v6517_v27 = vld [vmem:[%s10369_s2 + $0xc44] ss:$16 sps:$4 sm:$0xff]   ;;  %v6518_v31 = vld [vmem:[%s10369_s2 + $0xe40] ss:$16 sps:$4 sm:$0xff]  }
 0x17b   : > { %3226 = vmatprep.subr.bf16.mxu1 %v6463_v30  ;;  %v6515_v30 = vld [vmem:[%s10369_s2 + $0xc40] ss:$16 sps:$4 sm:$0xff]  }
 0x17d   : > { %3252 = vmatpush1.bf16.msra.mxu0 %v6464_v13  ;;  %v6526_v13 = vld [vmem:[%s10369_s2 + $0xe24] ss:$16 sps:$4 sm:$0xff]  }
 0x17e   : > { %3227 = vmatpush2.bf16.msra.mxu1 %v6461_v6  ;;  %3253 = vmatprep.subr.bf16.mxu0 %v6472_v34  ;;  %v6523_v6 = vld [vmem:[%s10369_s2 + $0xc24] ss:$16 sps:$4 sm:$0xff]   ;;  %v6524_v34 = vld [vmem:[%s10369_s2 + $0xe20] ss:$16 sps:$4 sm:$0xff]  }
 0x17f   : > { %3228 = vmatprep.subr.bf16.mxu1 %v6469_v33  ;;  %v6521_v33 = vld [vmem:[%s10369_s2 + $0xc20] ss:$16 sps:$4 sm:$0xff]  }
 0x181   : > { %3254 = vmatpush1.bf16.msra.mxu0 %v6470_v38  ;;  %v6532_v38 = vld [vmem:[%s10369_s2 + $0xe04] ss:$16 sps:$4 sm:$0xff]  }
 0x182   : > { %3229 = vmatpush2.bf16.msra.mxu1 %v6467_v37  ;;  %3255 = vmatprep.subr.bf16.mxu0 %v6478_v40  ;;  %v6529_v37 = vld [vmem:[%s10369_s2 + $0xc04] ss:$16 sps:$4 sm:$0xff]   ;;  %v6527_v40 = vld [vmem:[%s10369_s2 + $0xc00] ss:$16 sps:$4 sm:$0xff]  }
 0x183   : > { %3230 = vmatprep.subr.bf16.mxu1 %v6475_v39  ;;  %v6536_v39 = vld [vmem:[%s7461_s22 + $0x8] ss:$0 sps:$4 sm:$0xee]  }
 0x185   : > { %3256 = vmatpush1.bf16.msra.mxu0 %v6476_v44  ;;  %v6535_v44 = vld [vmem:[%s10369_s2 + $0xde4] ss:$16 sps:$4 sm:$0xff]  }
 0x186   : > { %3231 = vmatpush2.bf16.msra.mxu1 %v6473_v43  ;;  %3257 = vmatprep.subr.bf16.mxu0 %v6484_v46  ;;  %v6530_v43 = vld [vmem:[%s10369_s2 + $0xe00] ss:$16 sps:$4 sm:$0xff]   ;;  %v8553_v46 = vrot.slane %v6536_v39, 1  ;;  %v6590_v39 = vld [vmem:[%s10369_s2 + $0xdc8] ss:$16 sps:$4 sm:$0xff]  }
 0x187   : > { %3232 = vmatprep.subr.bf16.mxu1 %v6481_v45  ;;  %v6539_v45 = vld [vmem:[%s10369_s2 + $0xcec] ss:$16 sps:$4 sm:$0xff]  }
 0x189   : > { %3258 = vmatpush1.bf16.msra.mxu0 %v6482_v49  ;;  %v6537_v49 = vld [vmem:[%s10369_s2 + $0xce8] ss:$16 sps:$4 sm:$0xff]  }
 0x18a   : > { %3233 = vmatpush2.bf16.msra.mxu1 %v6479_v35  ;;  %3879 = vmatprep.subr.bf16.mxu0 %v6487_v50  ;;  %v6533_v35 = vld [vmem:[%s10369_s2 + $0xde0] ss:$16 sps:$4 sm:$0xff]   ;;  %v6542_v50 = vld [vmem:[%s10369_s2 + $0xdc4] ss:$16 sps:$4 sm:$0xff]  }
 0x18b   : > { %3920 = vmatprep.subr.bf16.mxu1 %v6490_v51  ;;  %v6545_v51 = vld [vmem:[%s10369_s2 + $0xccc] ss:$16 sps:$4 sm:$0xff]  }
 0x18c   : > { %v1727_v60 = vpop.f32.mrf.mxu0  ;;  %3276 = vmatmul.mubr.bf16.vlgmr.msra.gmra.mxu0 %v8225_v19 }
 0x18d   : > { %v1686_v59 = vpop.f32.mrf.mxu1  ;;  %3235 = vmatmul.mubr.bf16.vlgmr.msra.gmra.mxu1 %v8331_v3  ;;  %3880 = vmatpush1.bf16.msra.mxu0 %v6485_v53  ;;  %v6540_v53 = vld [vmem:[%s10369_s2 + $0xdc0] ss:$16 sps:$4 sm:$0xff]  }
 0x18e   : > { %v1687_v61 = vadd.f32 %v1686_v59, %v8140_v36  ;;  %3921 = vmatpush1.bf16.msra.mxu1 %v6488_v55  ;;  %v1729_v4 = vpop.f32.mrf.mxu0  ;;  %3881 = vmatprep.subr.bf16.mxu0 %v6493_v56  ;;  %v6502_v36 = vld [vmem:[%s10369_s2 + $0xea4] ss:$16 sps:$4 sm:$0xff]   ;;  %v6543_v55 = vld [vmem:[%s10369_s2 + $0xcc8] ss:$16 sps:$4 sm:$0xff]   ;;  %v6551_v59 = vld [vmem:[%s10369_s2 + $0xcac] ss:$16 sps:$4 sm:$0xff]  }
 0x18f   : > { %v1688_v1 = vpop.f32.mrf.mxu1  ;;  %3922 = vmatprep.subr.bf16.mxu1 %v6496_v57  ;;  %3952 = vmatprep.mubr.bf16.mxu1 %v7124_v2  ;;  %v6548_v57 = vld [vmem:[%s10369_s2 + $0xda4] ss:$16 sps:$4 sm:$0xff]  }
 0x190   : > { %v8473_v8 = vadd.f32 %v1727_v60, %v1687_v61  ;;  %v1689_v10 = vadd.f32 %v1688_v1, %v8148_v41  ;;  %3911 = vmatprep.mubr.bf16.mxu0 %v8456_v58  ;;  %v1731_v12 = vpop.f32.mrf.mxu0  ;;  %v6546_v61 = vld [vmem:[%s10369_s2 + $0xda0] ss:$16 sps:$4 sm:$0xff]   ;;  %v6554_v1 = vld [vmem:[%s10369_s2 + $0xd84] ss:$16 sps:$4 sm:$0xff]  }
 0x191   : > { %v1690_v11 = vpop.f32.mrf.mxu1  ;;  %3882 = vmatpush1.bf16.msra.mxu0 %v6491_v63  ;;  %v6549_v63 = vld [vmem:[%s10369_s2 + $0xca8] ss:$16 sps:$4 sm:$0xff]   ;;  %v6558_v12 = vld [vmem:[%s10369_s2 + $0xd60] ss:$16 sps:$4 sm:$0xff]  }
 0x192   : > { %v8478_v14 = vadd.f32 %v1729_v4, %v1689_v10  ;;  %3923 = vmatpush1.bf16.msra.mxu1 %v6494_v0  ;;  %v1732_v41 = vpop.f32.mrf.mxu0  ;;  %3883 = vmatprep.subr.bf16.mxu0 %v6499_v5  ;;  %v6557_v4 = vld [vmem:[%s10369_s2 + $0xc8c] ss:$16 sps:$4 sm:$0xff]   ;;  %v6552_v5 = vld [vmem:[%s10369_s2 + $0xd80] ss:$16 sps:$4 sm:$0xff]   ;;  %v6560_v10 = vld [vmem:[%s10369_s2 + $0xd64] ss:$16 sps:$4 sm:$0xff]  }
 0x193   : > { %v1691_v17 = vpop.f32.mrf.mxu1  ;;  %3924 = vmatprep.subr.bf16.mxu1 %v6502_v36  ;;  %v6555_v36 = vld [vmem:[%s10369_s2 + $0xc88] ss:$16 sps:$4 sm:$0xff]   ;;  %v6563_v11 = vld [vmem:[%s10369_s2 + $0xc6c] ss:$16 sps:$4 sm:$0xff]   ;;  %v6564_v41 = vld [vmem:[%s10369_s2 + $0xd40] ss:$16 sps:$4 sm:$0xff]  }
 0x194   : > { %v6569_v17 = vld [vmem:[%s10369_s2 + $0xc4c] ss:$16 sps:$4 sm:$0xff]  }
 0x195   : > { %3884 = vmatpush1.bf16.msra.mxu0 %v6497_v15  ;;  %v6561_v15 = vld [vmem:[%s10369_s2 + $0xc68] ss:$16 sps:$4 sm:$0xff]  }
 0x196   : > { %3925 = vmatpush1.bf16.msra.mxu1 %v6500_v16  ;;  %3885 = vmatprep.subr.bf16.mxu0 %v6505_v48  ;;  %v6566_v16 = vld [vmem:[%s10369_s2 + $0xd44] ss:$16 sps:$4 sm:$0xff]   ;;  %v6567_v48 = vld [vmem:[%s10369_s2 + $0xc48] ss:$16 sps:$4 sm:$0xff]  }
 0x197   : > { %3926 = vmatprep.subr.bf16.mxu1 %v6508_v20  ;;  %v6572_v20 = vld [vmem:[%s10369_s2 + $0xd24] ss:$16 sps:$4 sm:$0xff]  }
 0x199   : > { %3886 = vmatpush1.bf16.msra.mxu0 %v6503_v21  ;;  %v6575_v21 = vld [vmem:[%s10369_s2 + $0xc2c] ss:$16 sps:$4 sm:$0xff]  }
 0x19a   : > { %3927 = vmatpush1.bf16.msra.mxu1 %v6506_v23  ;;  %3887 = vmatprep.subr.bf16.mxu0 %v6511_v25  ;;  %v6570_v23 = vld [vmem:[%s10369_s2 + $0xd20] ss:$16 sps:$4 sm:$0xff]   ;;  %v6573_v25 = vld [vmem:[%s10369_s2 + $0xc28] ss:$16 sps:$4 sm:$0xff]  }
 0x19b   : > { %3928 = vmatprep.subr.bf16.mxu1 %v6514_v24  ;;  %v6578_v24 = vld [vmem:[%s10369_s2 + $0xd04] ss:$16 sps:$4 sm:$0xff]  }
 0x19d   : > { %3888 = vmatpush1.bf16.msra.mxu0 %v6509_v54  ;;  %v6581_v54 = vld [vmem:[%s10369_s2 + $0xc0c] ss:$16 sps:$4 sm:$0xff]  }
 0x19e   : > { %3929 = vmatpush1.bf16.msra.mxu1 %v6512_v26  ;;  %3889 = vmatprep.subr.bf16.mxu0 %v6517_v27  ;;  %v5780_v26 = vcombine.low %v8428_v47, %v8428_v47  ;;  %v6576_v27 = vld [vmem:[%s10369_s2 + $0xd00] ss:$16 sps:$4 sm:$0xff]   ;;  %v6589_v47 = vld [vmem:[%s10369_s2 + $0xeec] ss:$16 sps:$4 sm:$0xff]  }
 0x19f   : > { %3930 = vmatprep.subr.bf16.mxu1 %v6520_v29  ;;  %v6579_v29 = vld [vmem:[%s10369_s2 + $0xc08] ss:$16 sps:$4 sm:$0xff]  }
 0x1a1   : > { %3890 = vmatpush1.bf16.msra.mxu0 %v6515_v30  ;;  %v6586_v30 = vld [vmem:[%s10369_s2 + $0xdec] ss:$16 sps:$4 sm:$0xff]  }
 0x1a2   : > { %3931 = vmatpush1.bf16.msra.mxu1 %v6518_v31  ;;  %3891 = vmatprep.subr.bf16.mxu0 %v6523_v6  ;;  %v8659_v31 = vrot.slane %v5780_v26, 1  ;;  %v6584_v6 = vld [vmem:[%s10369_s2 + $0xde8] ss:$16 sps:$4 sm:$0xff]  }
 0x1a3   : > { %3932 = vmatprep.subr.bf16.mxu1 %v6526_v13  ;;  %v6587_v13 = vld [vmem:[%s10369_s2 + $0xee8] ss:$16 sps:$4 sm:$0xff]  }
 0x1a5   : > { %3892 = vmatpush1.bf16.msra.mxu0 %v6521_v33  ;;  %v6592_v33 = vld [vmem:[%s10369_s2 + $0xdcc] ss:$16 sps:$4 sm:$0xff]  }
 0x1a6   : > { %3933 = vmatpush1.bf16.msra.mxu1 %v6524_v34  ;;  %3893 = vmatprep.subr.bf16.mxu0 %v6529_v37  ;;  %v6595_v34 = vld [vmem:[%s10369_s2 + $0xecc] ss:$16 sps:$4 sm:$0xff]  }
 0x1a7   : > { %3934 = vmatprep.subr.bf16.mxu1 %v6532_v38 }
 0x1a9   : > { %3894 = vmatpush1.bf16.msra.mxu0 %v6527_v40  ;;  %v6593_v40 = vld [vmem:[%s10369_s2 + $0xec8] ss:$16 sps:$4 sm:$0xff]  }
 0x1aa   : > { %3935 = vmatpush1.bf16.msra.mxu1 %v6530_v43  ;;  %3895 = vmatprep.subr.bf16.mxu0 %v6535_v44  ;;  %v6598_v44 = vld [vmem:[%s10369_s2 + $0xdac] ss:$16 sps:$4 sm:$0xff]  }
 0x1ab   : > { %3961 = vmatprep.subr.bf16.mxu1 %v6539_v45  ;;  %v6601_v45 = vld [vmem:[%s10369_s2 + $0xeac] ss:$16 sps:$4 sm:$0xff]  }
 0x1ad   : > { %v8567_v9 = vpop.f32.mrf.mxu1  ;;  %3953 = vmatmul.mubr.bf16.vlgmr.msra.gmra.mxu1 %v8553_v46  ;;  %3896 = vmatpush2.bf16.msra.mxu0 %v6533_v35 }
 0x1ae   : > { %3962 = vmatpush1.bf16.msra.mxu1 %v6537_v49  ;;  %3897 = vmatprep.subr.bf16.mxu0 %v6542_v50 }
 0x1af   : > { %v8576_v56 = vpop.f32.mrf.mxu1  ;;  %3963 = vmatprep.subr.bf16.mxu1 %v6545_v51  ;;  %3993 = vmatprep.mubr.bf16.mxu1 %v8456_v58 }
 0x1b1   : > { %v2422_v60 = vpop.f32.mrf.mxu1  ;;  %3898 = vmatpush2.bf16.msra.mxu0 %v6540_v53  ;;  %v6599_v53 = vld [vmem:[%s10369_s2 + $0xea8] ss:$16 sps:$4 sm:$0xff]  }
 0x1b2   : > { %3964 = vmatpush1.bf16.msra.mxu1 %v6543_v55  ;;  %3899 = vmatprep.subr.bf16.mxu0 %v6548_v57  ;;  %v6604_v55 = vld [vmem:[%s10369_s2 + $0xd8c] ss:$16 sps:$4 sm:$0xff]   ;;  %v6605_v57 = vld [vmem:[%s10369_s2 + $0xe88] ss:$16 sps:$4 sm:$0xff]  }
 0x1b3   : > { %v2423_v0 = vpop.f32.mrf.mxu1  ;;  %3965 = vmatprep.subr.bf16.mxu1 %v6551_v59  ;;  %v6610_v59 = vld [vmem:[%s10369_s2 + $0xd6c] ss:$16 sps:$4 sm:$0xff]  }
 0x1b4   : > { %v6613_v60 = vld [vmem:[%s10369_s2 + $0xe6c] ss:$16 sps:$4 sm:$0xff]  }
 0x1b5   : > { %3900 = vmatpush2.bf16.msra.mxu0 %v6546_v61  ;;  %v6608_v61 = vld [vmem:[%s10369_s2 + $0xd68] ss:$16 sps:$4 sm:$0xff]   ;;  %v6616_v0 = vld [vmem:[%s10369_s2 + $0xd4c] ss:$16 sps:$4 sm:$0xff]  }
 0x1b6   : > { %3966 = vmatpush1.bf16.msra.mxu1 %v6549_v63  ;;  %3901 = vmatprep.subr.bf16.mxu0 %v6554_v1  ;;  %v6611_v63 = vld [vmem:[%s10369_s2 + $0xe68] ss:$16 sps:$4 sm:$0xff]   ;;  %v6619_v1 = vld [vmem:[%s10369_s2 + $0xe4c] ss:$16 sps:$4 sm:$0xff]  }
 0x1b7   : > { %3967 = vmatprep.subr.bf16.mxu1 %v6557_v4  ;;  %v6614_v4 = vld [vmem:[%s10369_s2 + $0xd48] ss:$16 sps:$4 sm:$0xff]  }
 0x1b9   : > { %3902 = vmatpush2.bf16.msra.mxu0 %v6552_v5  ;;  %v6617_v5 = vld [vmem:[%s10369_s2 + $0xe48] ss:$16 sps:$4 sm:$0xff]  }
 0x1ba   : > { %3968 = vmatpush1.bf16.msra.mxu1 %v6555_v36  ;;  %3903 = vmatprep.subr.bf16.mxu0 %v6560_v10  ;;  %v6622_v36 = vld [vmem:[%s10369_s2 + $0xd2c] ss:$16 sps:$4 sm:$0xff]  }
 0x1bb   : > { %3969 = vmatprep.subr.bf16.mxu1 %v6563_v11  ;;  %v6625_v10 = vld [vmem:[%s10369_s2 + $0xe2c] ss:$16 sps:$4 sm:$0xff]   ;;  %v6620_v11 = vld [vmem:[%s10369_s2 + $0xd28] ss:$16 sps:$4 sm:$0xff]  }
 0x1bd   : > { %3904 = vmatpush2.bf16.msra.mxu0 %v6558_v12  ;;  %v6623_v12 = vld [vmem:[%s10369_s2 + $0xe28] ss:$16 sps:$4 sm:$0xff]  }
 0x1be   : > { %3970 = vmatpush1.bf16.msra.mxu1 %v6561_v15  ;;  %3905 = vmatprep.subr.bf16.mxu0 %v6566_v16  ;;  %v6628_v15 = vld [vmem:[%s10369_s2 + $0xd0c] ss:$16 sps:$4 sm:$0xff]  }
 0x1bf   : > { %3971 = vmatprep.subr.bf16.mxu1 %v6569_v17  ;;  %v6631_v16 = vld [vmem:[%s10369_s2 + $0xe0c] ss:$16 sps:$4 sm:$0xff]   ;;  %v6626_v17 = vld [vmem:[%s10369_s2 + $0xd08] ss:$16 sps:$4 sm:$0xff]  }
 0x1c1   : > { %3906 = vmatpush2.bf16.msra.mxu0 %v6564_v41  ;;  %v6629_v41 = vld [vmem:[%s10369_s2 + $0xe08] ss:$16 sps:$4 sm:$0xff]  }
 0x1c2   : > { %3972 = vmatpush1.bf16.msra.mxu1 %v6567_v48  ;;  %3907 = vmatprep.subr.bf16.mxu0 %v6572_v20  ;;  %v6635_v48 = vld [vmem:[%s10369_s2 + $0x3e4] ss:$16 sps:$4 sm:$0xff]  }
 0x1c3   : > { %3973 = vmatprep.subr.bf16.mxu1 %v6575_v21  ;;  %v6636_v20 = vld [vmem:[%s10369_s2 + $0x5e4] ss:$16 sps:$4 sm:$0xff]  }
 0x1c5   : > { %3908 = vmatpush2.bf16.msra.mxu0 %v6570_v23 }
 0x1c6   : > { %3974 = vmatpush1.bf16.msra.mxu1 %v6573_v25  ;;  %3909 = vmatprep.subr.bf16.mxu0 %v6578_v24  ;;  %v6637_v24 = vld [vmem:[%s10369_s2 + $0x3e0] ss:$16 sps:$4 sm:$0xff]  }
 0x1c7   : > { %3975 = vmatprep.subr.bf16.mxu1 %v6581_v54  ;;  %v6638_v54 = vld [vmem:[%s10369_s2 + $0x5e0] ss:$16 sps:$4 sm:$0xff]  }
 0x1c9   : > { %3910 = vmatpush2.bf16.msra.mxu0 %v6576_v27 }
 0x1ca   : > { %3976 = vmatpush1.bf16.msra.mxu1 %v6579_v29  ;;  %4002 = vmatprep.subr.bf16.mxu0 %v6589_v47  ;;  %v6639_v29 = vld [vmem:[%s10369_s2 + $0x3c4] ss:$16 sps:$4 sm:$0xff]  }
 0x1cb   : > { %3977 = vmatprep.subr.bf16.mxu1 %v6586_v30  ;;  %v6640_v30 = vld [vmem:[%s10369_s2 + $0x5c4] ss:$16 sps:$4 sm:$0xff]  }
 0x1cc   : > { %v2377_v37 = vpop.f32.mrf.mxu0  ;;  %3912 = vmatmul.mubr.bf16.vlgmr.msra.gmra.mxu0 %v8659_v31 }
 0x1cd   : > { %v2419_v38 = vadd.f32 %v8567_v9, %v2377_v37  ;;  %4003 = vmatpush1.bf16.msra.mxu0 %v6587_v13  ;;  %4034 = vmatprep.mubr.bf16.mxu0 %v7124_v2  ;;  %v6596_v9 = vld [vmem:[%s10369_s2 + $0xda8] ss:$16 sps:$4 sm:$0xff]   ;;  %v6641_v37 = vld [vmem:[%s10369_s2 + $0x3c0] ss:$16 sps:$4 sm:$0xff]  }
 0x1ce   : > { %3978 = vmatpush2.bf16.msra.mxu1 %v6584_v6  ;;  %v2379_v43 = vpop.f32.mrf.mxu0  ;;  %4004 = vmatprep.subr.bf16.mxu0 %v6595_v34 }
 0x1cf   : > { %3979 = vmatprep.subr.bf16.mxu1 %v6592_v33  ;;  %v8688_v35 = vadd.f32 %v2419_v38, %v8360_v18  ;;  %v2421_v49 = vadd.f32 %v8576_v56, %v2379_v43  ;;  %v6602_v56 = vld [vmem:[%s10369_s2 + $0xd88] ss:$16 sps:$4 sm:$0xff]   ;;  %v6645_v43 = vld [vmem:[%s10369_s2 + $0x3a0] ss:$16 sps:$4 sm:$0xff]  }
 0x1d0   : > { %v2381_v50 = vpop.f32.mrf.mxu0 }
 0x1d1   : > { %v8693_v51 = vadd.f32 %v2421_v49, %v8365_v22  ;;  %4005 = vmatpush1.bf16.msra.mxu0 %v6593_v40  ;;  %v6607_v22 = vld [vmem:[%s10369_s2 + $0xe8c] ss:$16 sps:$4 sm:$0xff]   ;;  %v6643_v40 = vld [vmem:[%s10369_s2 + $0x3a4] ss:$16 sps:$4 sm:$0xff]   ;;  %v6649_v50 = vld [vmem:[%s10369_s2 + $0x380] ss:$16 sps:$4 sm:$0xff]  }
 0x1d2   : > { %3980 = vmatpush2.bf16.msra.mxu1 %v6590_v39  ;;  %v2382_v18 = vpop.f32.mrf.mxu0  ;;  %4006 = vmatprep.subr.bf16.mxu0 %v6601_v45  ;;  %v6647_v45 = vld [vmem:[%s10369_s2 + $0x384] ss:$16 sps:$4 sm:$0xff]  }
 0x1d3   : > { %3981 = vmatprep.subr.bf16.mxu1 %v6598_v44  ;;  %v6646_v44 = vld [vmem:[%s10369_s2 + $0x5a0] ss:$16 sps:$4 sm:$0xff]   ;;  %v6648_v49 = vld [vmem:[%s10369_s2 + $0x584] ss:$16 sps:$4 sm:$0xff]  }
 0x1d4   : > { %v6652_v18 = vld [vmem:[%s10369_s2 + $0x564] ss:$16 sps:$4 sm:$0xff]  }
 0x1d5   : > { %4007 = vmatpush1.bf16.msra.mxu0 %v6599_v53  ;;  %v6651_v53 = vld [vmem:[%s10369_s2 + $0x364] ss:$16 sps:$4 sm:$0xff]  }
 0x1d6   : > { %3982 = vmatpush2.bf16.msra.mxu1 %v6596_v9  ;;  %4008 = vmatprep.subr.bf16.mxu0 %v6607_v22  ;;  %v6650_v9 = vld [vmem:[%s10369_s2 + $0x580] ss:$16 sps:$4 sm:$0xff]  }
 0x1d7   : > { %3983 = vmatprep.subr.bf16.mxu1 %v6604_v55  ;;  %v6653_v55 = vld [vmem:[%s10369_s2 + $0x360] ss:$16 sps:$4 sm:$0xff]  }
 0x1d8   : > { %v6654_v22 = vld [vmem:[%s10369_s2 + $0x560] ss:$16 sps:$4 sm:$0xff]  }
 0x1d9   : > { %4009 = vmatpush1.bf16.msra.mxu0 %v6605_v57  ;;  %v6656_v57 = vld [vmem:[%s10369_s2 + $0x544] ss:$16 sps:$4 sm:$0xff]  }
 0x1da   : > { %3984 = vmatpush2.bf16.msra.mxu1 %v6602_v56  ;;  %4010 = vmatprep.subr.bf16.mxu0 %v6613_v60  ;;  %v6655_v56 = vld [vmem:[%s10369_s2 + $0x344] ss:$16 sps:$4 sm:$0xff]   ;;  %v6658_v60 = vld [vmem:[%s10369_s2 + $0x540] ss:$16 sps:$4 sm:$0xff]  }
 0x1db   : > { %3985 = vmatprep.subr.bf16.mxu1 %v6610_v59  ;;  %v6657_v59 = vld [vmem:[%s10369_s2 + $0x340] ss:$16 sps:$4 sm:$0xff]  }
 0x1dd   : > { %4011 = vmatpush1.bf16.msra.mxu0 %v6611_v63  ;;  %v6660_v63 = vld [vmem:[%s10369_s2 + $0x524] ss:$16 sps:$4 sm:$0xff]  }
 0x1de   : > { %3986 = vmatpush2.bf16.msra.mxu1 %v6608_v61  ;;  %4012 = vmatprep.subr.bf16.mxu0 %v6619_v1  ;;  %v6659_v61 = vld [vmem:[%s10369_s2 + $0x324] ss:$16 sps:$4 sm:$0xff]   ;;  %v6662_v1 = vld [vmem:[%s10369_s2 + $0x520] ss:$16 sps:$4 sm:$0xff]  }
 0x1df   : > { %3987 = vmatprep.subr.bf16.mxu1 %v6616_v0  ;;  %v6661_v0 = vld [vmem:[%s10369_s2 + $0x320] ss:$16 sps:$4 sm:$0xff]  }
 0x1e1   : > { %4013 = vmatpush1.bf16.msra.mxu0 %v6617_v5  ;;  %v6664_v5 = vld [vmem:[%s10369_s2 + $0x504] ss:$16 sps:$4 sm:$0xff]  }
 0x1e2   : > { %3988 = vmatpush2.bf16.msra.mxu1 %v6614_v4  ;;  %4014 = vmatprep.subr.bf16.mxu0 %v6625_v10  ;;  %v6663_v4 = vld [vmem:[%s10369_s2 + $0x304] ss:$16 sps:$4 sm:$0xff]   ;;  %v6666_v10 = vld [vmem:[%s10369_s2 + $0x500] ss:$16 sps:$4 sm:$0xff]  }
 0x1e3   : > { %3989 = vmatprep.subr.bf16.mxu1 %v6622_v36  ;;  %v6665_v36 = vld [vmem:[%s10369_s2 + $0x300] ss:$16 sps:$4 sm:$0xff]  }
 0x1e5   : > { %4015 = vmatpush1.bf16.msra.mxu0 %v6623_v12  ;;  %v6668_v12 = vld [vmem:[%s10369_s2 + $0x3ec] ss:$16 sps:$4 sm:$0xff]  }
 0x1e6   : > { %3990 = vmatpush2.bf16.msra.mxu1 %v6620_v11  ;;  %4016 = vmatprep.subr.bf16.mxu0 %v6631_v16  ;;  %v6667_v11 = vld [vmem:[%s10369_s2 + $0x4e4] ss:$16 sps:$4 sm:$0xff]   ;;  %v6669_v16 = vld [vmem:[%s10369_s2 + $0x4e0] ss:$16 sps:$4 sm:$0xff]  }
 0x1e7   : > { %3991 = vmatprep.subr.bf16.mxu1 %v6628_v15 }
 0x1e9   : > { %4017 = vmatpush1.bf16.msra.mxu0 %v6629_v41 }
 0x1ea   : > { %3992 = vmatpush2.bf16.msra.mxu1 %v6626_v17  ;;  %4047 = vmatprep.subr.bf16.mxu0 %v6635_v48  ;;  %v6670_v17 = vld [vmem:[%s10369_s2 + $0x3e8] ss:$16 sps:$4 sm:$0xff]   ;;  %v6671_v48 = vld [vmem:[%s10369_s2 + $0x4c4] ss:$16 sps:$4 sm:$0xff]  }
 0x1eb   : > { %4088 = vmatprep.subr.bf16.mxu1 %v6636_v20  ;;  %v6672_v20 = vld [vmem:[%s10369_s2 + $0x3cc] ss:$16 sps:$4 sm:$0xff]  }
 0x1ec   : > { %v2500_v23 = vpop.f32.mrf.mxu0  ;;  %4035 = vmatmul.mubr.bf16.vlgmr.msra.gmra.mxu0 %v8553_v46 }
 0x1ed   : > { %v2459_v21 = vpop.f32.mrf.mxu1  ;;  %3994 = vmatmul.mubr.bf16.vlgmr.msra.gmra.mxu1 %v8659_v31  ;;  %4048 = vmatpush1.bf16.msra.mxu0 %v6637_v24 }
 0x1ee   : > { %v2501_v25 = vadd.f32 %v2500_v23, %v2459_v21  ;;  %4089 = vmatpush1.bf16.msra.mxu1 %v6638_v54  ;;  %v2502_v27 = vpop.f32.mrf.mxu0  ;;  %4049 = vmatprep.subr.bf16.mxu0 %v6639_v29  ;;  %v6673_v23 = vld [vmem:[%s10369_s2 + $0x4c0] ss:$16 sps:$4 sm:$0xff]   ;;  %v6675_v54 = vld [vmem:[%s10369_s2 + $0x4a4] ss:$16 sps:$4 sm:$0xff]  }
 0x1ef   : > { %v2461_v26 = vpop.f32.mrf.mxu1  ;;  %4090 = vmatprep.subr.bf16.mxu1 %v6640_v30  ;;  %4120 = vmatprep.mubr.bf16.mxu1 %v7124_v2  ;;  %v6679_v29 = vld [vmem:[%s10369_s2 + $0x484] ss:$16 sps:$4 sm:$0xff]   ;;  %v6680_v30 = vld [vmem:[%s10369_s2 + $0x38c] ss:$16 sps:$4 sm:$0xff]  }
 0x1f0   : > { %v8782_v47 = vadd.f32 %v2501_v25, %v8473_v8  ;;  %v2503_v6 = vadd.f32 %v2502_v27, %v2461_v26  ;;  %4079 = vmatprep.mubr.bf16.mxu0 %v7810_v28  ;;  %v2504_v33 = vpop.f32.mrf.mxu0  ;;  %v6642_v8 = vld [vmem:[%s10369_s2 + $0x5c0] ss:$16 sps:$4 sm:$0xff]   ;;  %v6674_v25 = vld [vmem:[%s10369_s2 + $0x3c8] ss:$16 sps:$4 sm:$0xff]  }
 0x1f1   : > { %v2463_v13 = vpop.f32.mrf.mxu1  ;;  %4050 = vmatpush1.bf16.msra.mxu0 %v6641_v37  ;;  %v6677_v26 = vld [vmem:[%s10369_s2 + $0x4a0] ss:$16 sps:$4 sm:$0xff]   ;;  %v6678_v27 = vld [vmem:[%s10369_s2 + $0x3a8] ss:$16 sps:$4 sm:$0xff]   ;;  %v6683_v33 = vld [vmem:[%s10369_s2 + $0x464] ss:$16 sps:$4 sm:$0xff]  }
 0x1f2   : > { %v8787_v34 = vadd.f32 %v2503_v6, %v8478_v14  ;;  %4091 = vmatpush1.bf16.msra.mxu1 %v6642_v8  ;;  %v2505_v39 = vpop.f32.mrf.mxu0  ;;  %4051 = vmatprep.subr.bf16.mxu0 %v6643_v40  ;;  %v6644_v14 = vld [vmem:[%s10369_s2 + $0x5a4] ss:$16 sps:$4 sm:$0xff]   ;;  %v6681_v6 = vld [vmem:[%s10369_s2 + $0x480] ss:$16 sps:$4 sm:$0xff]   ;;  %v6682_v13 = vld [vmem:[%s10369_s2 + $0x388] ss:$16 sps:$4 sm:$0xff]  }
 0x1f3   : > { %v2464_v38 = vpop.f32.mrf.mxu1  ;;  %4092 = vmatprep.subr.bf16.mxu1 %v6644_v14  ;;  %v6684_v37 = vld [vmem:[%s10369_s2 + $0x36c] ss:$16 sps:$4 sm:$0xff]   ;;  %v6685_v8 = vld [vmem:[%s10369_s2 + $0x460] ss:$16 sps:$4 sm:$0xff]   ;;  %v6687_v39 = vld [vmem:[%s10369_s2 + $0x444] ss:$16 sps:$4 sm:$0xff]  }
 0x1f4   : > { %v6686_v38 = vld [vmem:[%s10369_s2 + $0x368] ss:$16 sps:$4 sm:$0xff]   ;;  %v6688_v40 = vld [vmem:[%s10369_s2 + $0x34c] ss:$16 sps:$4 sm:$0xff]   ;;  %v6689_v14 = vld [vmem:[%s10369_s2 + $0x440] ss:$16 sps:$4 sm:$0xff]  }
 0x1f5   : > { %4052 = vmatpush1.bf16.msra.mxu0 %v6645_v43  ;;  %v6690_v43 = vld [vmem:[%s10369_s2 + $0x348] ss:$16 sps:$4 sm:$0xff]  }
 0x1f6   : > { %4093 = vmatpush1.bf16.msra.mxu1 %v6646_v44  ;;  %4053 = vmatprep.subr.bf16.mxu0 %v6647_v45  ;;  %v6691_v44 = vld [vmem:[%s10369_s2 + $0x424] ss:$16 sps:$4 sm:$0xff]   ;;  %v6692_v45 = vld [vmem:[%s10369_s2 + $0x32c] ss:$16 sps:$4 sm:$0xff]  }
 0x1f7   : > { %4094 = vmatprep.subr.bf16.mxu1 %v6648_v49  ;;  %v6693_v49 = vld [vmem:[%s10369_s2 + $0x420] ss:$16 sps:$4 sm:$0xff]  }
 0x1f9   : > { %4054 = vmatpush1.bf16.msra.mxu0 %v6649_v50  ;;  %v6694_v50 = vld [vmem:[%s10369_s2 + $0x328] ss:$16 sps:$4 sm:$0xff]  }
 0x1fa   : > { %4095 = vmatpush1.bf16.msra.mxu1 %v6650_v9  ;;  %4055 = vmatprep.subr.bf16.mxu0 %v6651_v53  ;;  %v6695_v9 = vld [vmem:[%s10369_s2 + $0x404] ss:$16 sps:$4 sm:$0xff]   ;;  %v6696_v53 = vld [vmem:[%s10369_s2 + $0x30c] ss:$16 sps:$4 sm:$0xff]  }
 0x1fb   : > { %4096 = vmatprep.subr.bf16.mxu1 %v6652_v18  ;;  %v6697_v18 = vld [vmem:[%s10369_s2 + $0x400] ss:$16 sps:$4 sm:$0xff]  }
 0x1fd   : > { %4056 = vmatpush1.bf16.msra.mxu0 %v6653_v55  ;;  %v6698_v55 = vld [vmem:[%s10369_s2 + $0x308] ss:$16 sps:$4 sm:$0xff]  }
 0x1fe   : > { %4097 = vmatpush1.bf16.msra.mxu1 %v6654_v22  ;;  %4057 = vmatprep.subr.bf16.mxu0 %v6655_v56  ;;  %v6699_v22 = vld [vmem:[%s10369_s2 + $0x4ec] ss:$16 sps:$4 sm:$0xff]  }
 0x1ff   : > { %4098 = vmatprep.subr.bf16.mxu1 %v6656_v57  ;;  %v6700_v56 = vld [vmem:[%s10369_s2 + $0x5ec] ss:$16 sps:$4 sm:$0xff]  }
 0x201   : > { %4058 = vmatpush1.bf16.msra.mxu0 %v6657_v59 }
 0x202   : > { %4099 = vmatpush1.bf16.msra.mxu1 %v6658_v60  ;;  %4059 = vmatprep.subr.bf16.mxu0 %v6659_v61  ;;  %v6701_v60 = vld [vmem:[%s10369_s2 + $0x4e8] ss:$16 sps:$4 sm:$0xff]  }
 0x203   : > { %4100 = vmatprep.subr.bf16.mxu1 %v6660_v63  ;;  %v6702_v61 = vld [vmem:[%s10369_s2 + $0x5e8] ss:$16 sps:$4 sm:$0xff]  }
 0x205   : > { %4060 = vmatpush1.bf16.msra.mxu0 %v6661_v0  ;;  %v6703_v0 = vld [vmem:[%s10369_s2 + $0x4cc] ss:$16 sps:$4 sm:$0xff]  }
 0x206   : > { %4101 = vmatpush1.bf16.msra.mxu1 %v6662_v1  ;;  %4061 = vmatprep.subr.bf16.mxu0 %v6663_v4  ;;  %v6704_v1 = vld [vmem:[%s10369_s2 + $0x5cc] ss:$16 sps:$4 sm:$0xff]  }
 0x207   : > { %4102 = vmatprep.subr.bf16.mxu1 %v6664_v5 }
 0x209   : > { %4062 = vmatpush1.bf16.msra.mxu0 %v6665_v36 }
 0x20a   : > { %4103 = vmatpush1.bf16.msra.mxu1 %v6666_v10  ;;  %4063 = vmatprep.subr.bf16.mxu0 %v6667_v11  ;;  %v6705_v11 = vld [vmem:[%s10369_s2 + $0x4c8] ss:$16 sps:$4 sm:$0xff]  }
 0x20b   : > { %4129 = vmatprep.subr.bf16.mxu1 %v6668_v12  ;;  %v6706_v12 = vld [vmem:[%s10369_s2 + $0x5c8] ss:$16 sps:$4 sm:$0xff]  }
 0x20d   : > { %v8873_v15 = vpop.f32.mrf.mxu1  ;;  %4121 = vmatmul.mubr.bf16.vlgmr.msra.gmra.mxu1 %v7904_v62  ;;  %4064 = vmatpush2.bf16.msra.mxu0 %v6669_v16  ;;  %v6709_v16 = vld [vmem:[%s10369_s2 + $0x4a8] ss:$16 sps:$4 sm:$0xff]  }
 0x20e   : > { %4130 = vmatpush1.bf16.msra.mxu1 %v6670_v17  ;;  %4065 = vmatprep.subr.bf16.mxu0 %v6671_v48  ;;  %v6710_v17 = vld [vmem:[%s10369_s2 + $0x5a8] ss:$16 sps:$4 sm:$0xff]   ;;  %v6712_v48 = vld [vmem:[%s10369_s2 + $0x58c] ss:$16 sps:$4 sm:$0xff]  }
 0x20f   : > { %v8882_v41 = vpop.f32.mrf.mxu1  ;;  %4131 = vmatprep.subr.bf16.mxu1 %v6672_v20  ;;  %4161 = vmatprep.mubr.bf16.mxu1 %v7810_v28  ;;  %v6676_v28 = vld [vmem:[%s10369_s2 + $0x3ac] ss:$16 sps:$4 sm:$0xff]   ;;  %v6713_v20 = vld [vmem:[%s10369_s2 + $0x488] ss:$16 sps:$4 sm:$0xff]  }
 0x211   : > { %v3199_v21 = vpop.f32.mrf.mxu1  ;;  %4066 = vmatpush2.bf16.msra.mxu0 %v6673_v23  ;;  %v6715_v23 = vld [vmem:[%s10369_s2 + $0x46c] ss:$16 sps:$4 sm:$0xff]  }
 0x212   : > { %4132 = vmatpush1.bf16.msra.mxu1 %v6674_v25  ;;  %4067 = vmatprep.subr.bf16.mxu0 %v6675_v54  ;;  %v6714_v21 = vld [vmem:[%s10369_s2 + $0x588] ss:$16 sps:$4 sm:$0xff]   ;;  %v6716_v25 = vld [vmem:[%s10369_s2 + $0x56c] ss:$16 sps:$4 sm:$0xff]  }
 0x213   : > { %v3200_v24 = vpop.f32.mrf.mxu1  ;;  %4133 = vmatprep.subr.bf16.mxu1 %v6676_v28  ;;  %v6718_v54 = vld [vmem:[%s10369_s2 + $0x568] ss:$16 sps:$4 sm:$0xff]   ;;  %v6719_v28 = vld [vmem:[%s10369_s2 + $0x44c] ss:$16 sps:$4 sm:$0xff]  }
 0x214   : > { %v6717_v24 = vld [vmem:[%s10369_s2 + $0x468] ss:$16 sps:$4 sm:$0xff]  }
 0x215   : > { %4068 = vmatpush2.bf16.msra.mxu0 %v6677_v26  ;;  %v6720_v26 = vld [vmem:[%s10369_s2 + $0x54c] ss:$16 sps:$4 sm:$0xff]  }
 0x216   : > { %4134 = vmatpush1.bf16.msra.mxu1 %v6678_v27  ;;  %4069 = vmatprep.subr.bf16.mxu0 %v6679_v29  ;;  %v6721_v27 = vld [vmem:[%s10369_s2 + $0x448] ss:$16 sps:$4 sm:$0xff]  }
 0x217   : > { %4135 = vmatprep.subr.bf16.mxu1 %v6680_v30  ;;  %v6722_v29 = vld [vmem:[%s10369_s2 + $0x548] ss:$16 sps:$4 sm:$0xff]   ;;  %v6723_v30 = vld [vmem:[%s10369_s2 + $0x42c] ss:$16 sps:$4 sm:$0xff]  }
 0x219   : > { %4070 = vmatpush2.bf16.msra.mxu0 %v6681_v6  ;;  %v6724_v6 = vld [vmem:[%s10369_s2 + $0x52c] ss:$16 sps:$4 sm:$0xff]  }
 0x21a   : > { %4136 = vmatpush1.bf16.msra.mxu1 %v6682_v13  ;;  %4071 = vmatprep.subr.bf16.mxu0 %v6683_v33  ;;  %v6725_v13 = vld [vmem:[%s10369_s2 + $0x428] ss:$16 sps:$4 sm:$0xff]  }
 0x21b   : > { %4137 = vmatprep.subr.bf16.mxu1 %v6684_v37  ;;  %v6726_v33 = vld [vmem:[%s10369_s2 + $0x528] ss:$16 sps:$4 sm:$0xff]   ;;  %v6727_v37 = vld [vmem:[%s10369_s2 + $0x40c] ss:$16 sps:$4 sm:$0xff]  }
 0x21d   : > { %4072 = vmatpush2.bf16.msra.mxu0 %v6685_v8  ;;  %v6728_v8 = vld [vmem:[%s10369_s2 + $0x50c] ss:$16 sps:$4 sm:$0xff]  }
 0x21e   : > { %4138 = vmatpush1.bf16.msra.mxu1 %v6686_v38  ;;  %4073 = vmatprep.subr.bf16.mxu0 %v6687_v39  ;;  %v6729_v38 = vld [vmem:[%s10369_s2 + $0x408] ss:$16 sps:$4 sm:$0xff]  }
 0x21f   : > { %4139 = vmatprep.subr.bf16.mxu1 %v6688_v40  ;;  %v6730_v39 = vld [vmem:[%s10369_s2 + $0x508] ss:$16 sps:$4 sm:$0xff]   ;;  %v6731_v40 = vld [vmem:[%s10369_s2 + $0xe4] ss:$16 sps:$4 sm:$0xff]  }
 0x221   : > { %4074 = vmatpush2.bf16.msra.mxu0 %v6689_v14  ;;  %v6732_v14 = vld [vmem:[%s10369_s2 + $0x2e4] ss:$16 sps:$4 sm:$0xff]  }
 0x222   : > { %4140 = vmatpush1.bf16.msra.mxu1 %v6690_v43  ;;  %4075 = vmatprep.subr.bf16.mxu0 %v6691_v44 }
 0x223   : > { %4141 = vmatprep.subr.bf16.mxu1 %v6692_v45 }
 0x225   : > { %4076 = vmatpush2.bf16.msra.mxu0 %v6693_v49  ;;  %v6733_v49 = vld [vmem:[%s10369_s2 + $0xe0] ss:$16 sps:$4 sm:$0xff]  }
 0x226   : > { %4142 = vmatpush1.bf16.msra.mxu1 %v6694_v50  ;;  %4077 = vmatprep.subr.bf16.mxu0 %v6695_v9  ;;  %v6734_v50 = vld [vmem:[%s10369_s2 + $0x2e0] ss:$16 sps:$4 sm:$0xff]  }
 0x227   : > { %4143 = vmatprep.subr.bf16.mxu1 %v6696_v53 }
 0x229   : > { %4078 = vmatpush2.bf16.msra.mxu0 %v6697_v18  ;;  %v6735_v18 = vld [vmem:[%s10369_s2 + $0xc4] ss:$16 sps:$4 sm:$0xff]  }
 0x22a   : > { %4144 = vmatpush1.bf16.msra.mxu1 %v6698_v55  ;;  %4170 = vmatprep.subr.bf16.mxu0 %v6700_v56 }
 0x22b   : > { %4145 = vmatprep.subr.bf16.mxu1 %v6699_v22 }
 0x22c   : > { %v3154_v57 = vpop.f32.mrf.mxu0  ;;  %4080 = vmatmul.mubr.bf16.vlgmr.msra.gmra.mxu0 %v8007_v42 }
 0x22d   : > { %v3196_v59 = vadd.f32 %v8873_v15, %v3154_v57  ;;  %4171 = vmatpush1.bf16.msra.mxu0 %v6702_v61  ;;  %4202 = vmatprep.mubr.bf16.mxu0 %v7124_v2  ;;  %v6707_v15 = vld [vmem:[%s10369_s2 + $0x4ac] ss:$16 sps:$4 sm:$0xff]  }
 0x22e   : > { %4146 = vmatpush2.bf16.msra.mxu1 %v6701_v60  ;;  %v3156_v63 = vpop.f32.mrf.mxu0  ;;  %4172 = vmatprep.subr.bf16.mxu0 %v6704_v1  ;;  %v6742_v1 = vld [vmem:[%s10369_s2 + $0x2a0] ss:$16 sps:$4 sm:$0xff]  }
 0x22f   : > { %4147 = vmatprep.subr.bf16.mxu1 %v6703_v0  ;;  %v8990_v4 = vadd.f32 %v3196_v59, %v8688_v35  ;;  %v3198_v5 = vadd.f32 %v8882_v41, %v3156_v63  ;;  %v6711_v41 = vld [vmem:[%s10369_s2 + $0x48c] ss:$16 sps:$4 sm:$0xff]   ;;  %v6737_v59 = vld [vmem:[%s10369_s2 + $0xc0] ss:$16 sps:$4 sm:$0xff]   ;;  %v6739_v63 = vld [vmem:[%s10369_s2 + $0xa4] ss:$16 sps:$4 sm:$0xff]  }
 0x230   : > { %v3158_v36 = vpop.f32.mrf.mxu0  ;;  %v6741_v0 = vld [vmem:[%s10369_s2 + $0xa0] ss:$16 sps:$4 sm:$0xff]  }
 0x231   : > { %v8995_v10 = vadd.f32 %v3198_v5, %v8693_v51  ;;  %4173 = vmatpush1.bf16.msra.mxu0 %v6706_v12  ;;  %v6708_v51 = vld [vmem:[%s10369_s2 + $0x5ac] ss:$16 sps:$4 sm:$0xff]   ;;  %v6743_v5 = vld [vmem:[%s10369_s2 + $0x84] ss:$16 sps:$4 sm:$0xff]   ;;  %v6746_v12 = vld [vmem:[%s10369_s2 + $0x280] ss:$16 sps:$4 sm:$0xff]  }
 0x232   : > { %4148 = vmatpush2.bf16.msra.mxu1 %v6705_v11  ;;  %v3159_v35 = vpop.f32.mrf.mxu0  ;;  %4174 = vmatprep.subr.bf16.mxu0 %v6708_v51  ;;  %v6744_v36 = vld [vmem:[%s10369_s2 + $0x284] ss:$16 sps:$4 sm:$0xff]   ;;  %v6745_v11 = vld [vmem:[%s10369_s2 + $0x80] ss:$16 sps:$4 sm:$0xff]  }
 0x233   : > { %4149 = vmatprep.subr.bf16.mxu1 %v6707_v15  ;;  %v6747_v35 = vld [vmem:[%s10369_s2 + $0x64] ss:$16 sps:$4 sm:$0xff]   ;;  %v6749_v51 = vld [vmem:[%s10369_s2 + $0x60] ss:$16 sps:$4 sm:$0xff]  }
 0x234   : > { %v6748_v15 = vld [vmem:[%s10369_s2 + $0x264] ss:$16 sps:$4 sm:$0xff]  }
 0x235   : > { %4175 = vmatpush1.bf16.msra.mxu0 %v6710_v17  ;;  %v6751_v17 = vld [vmem:[%s10369_s2 + $0x44] ss:$16 sps:$4 sm:$0xff]  }
 0x236   : > { %4150 = vmatpush2.bf16.msra.mxu1 %v6709_v16  ;;  %4176 = vmatprep.subr.bf16.mxu0 %v6712_v48  ;;  %v6750_v16 = vld [vmem:[%s10369_s2 + $0x260] ss:$16 sps:$4 sm:$0xff]  }
 0x237   : > { %4151 = vmatprep.subr.bf16.mxu1 %v6711_v41  ;;  %v6752_v41 = vld [vmem:[%s10369_s2 + $0x244] ss:$16 sps:$4 sm:$0xff]   ;;  %v6753_v48 = vld [vmem:[%s10369_s2 + $0x40] ss:$16 sps:$4 sm:$0xff]  }
 0x239   : > { %4177 = vmatpush1.bf16.msra.mxu0 %v6714_v21  ;;  %v6755_v21 = vld [vmem:[%s10369_s2 + $0x24] ss:$16 sps:$4 sm:$0xff]  }
 0x23a   : > { %4152 = vmatpush2.bf16.msra.mxu1 %v6713_v20  ;;  %4178 = vmatprep.subr.bf16.mxu0 %v6716_v25  ;;  %v6754_v20 = vld [vmem:[%s10369_s2 + $0x240] ss:$16 sps:$4 sm:$0xff]  }
 0x23b   : > { %4153 = vmatprep.subr.bf16.mxu1 %v6715_v23  ;;  %v6756_v23 = vld [vmem:[%s10369_s2 + $0x224] ss:$16 sps:$4 sm:$0xff]   ;;  %v6757_v25 = vld [vmem:[%s10369_s2 + $0x20] ss:$16 sps:$4 sm:$0xff]  }
 0x23d   : > { %4179 = vmatpush1.bf16.msra.mxu0 %v6718_v54  ;;  %v6759_v54 = vld [vmem:[%s10369_s2 + $0x4] ss:$16 sps:$4 sm:$0xff]  }
 0x23e   : > { %4154 = vmatpush2.bf16.msra.mxu1 %v6717_v24  ;;  %4180 = vmatprep.subr.bf16.mxu0 %v6720_v26  ;;  %v6758_v24 = vld [vmem:[%s10369_s2 + $0x220] ss:$16 sps:$4 sm:$0xff]  }
 0x23f   : > { %4155 = vmatprep.subr.bf16.mxu1 %v6719_v28  ;;  %v6760_v28 = vld [vmem:[%s10369_s2 + $0x204] ss:$16 sps:$4 sm:$0xff]   ;;  %v6761_v26 = vld [vmem:[%s10369_s2] ss:$16 sps:$4 sm:$0xff]  }
 0x241   : > { %4181 = vmatpush1.bf16.msra.mxu0 %v6722_v29  ;;  %v6763_v29 = vld [vmem:[%s10369_s2 + $0x1e4] ss:$16 sps:$4 sm:$0xff]  }
 0x242   : > { %4156 = vmatpush2.bf16.msra.mxu1 %v6721_v27  ;;  %4182 = vmatprep.subr.bf16.mxu0 %v6724_v6  ;;  %v6762_v27 = vld [vmem:[%s10369_s2 + $0x200] ss:$16 sps:$4 sm:$0xff]  }
 0x243   : > { %4157 = vmatprep.subr.bf16.mxu1 %v6723_v30  ;;  %v6764_v30 = vld [vmem:[%s10369_s2 + $0xec] ss:$16 sps:$4 sm:$0xff]  }
 0x245   : > { %4183 = vmatpush1.bf16.msra.mxu0 %v6726_v33  ;;  %v6766_v33 = vld [vmem:[%s10369_s2 + $0x1e0] ss:$16 sps:$4 sm:$0xff]  }
 0x246   : > { %4158 = vmatpush2.bf16.msra.mxu1 %v6725_v13  ;;  %4184 = vmatprep.subr.bf16.mxu0 %v6728_v8  ;;  %v9190_v13 = vld [vmem:[%s7249_s24 + $0x8] ss:$0 sps:$4 sm:$0x77]  }
 0x247   : > { %4159 = vmatprep.subr.bf16.mxu1 %v6727_v37  ;;  %v6767_v37 = vld [vmem:[%s10369_s2 + $0xe8] ss:$16 sps:$4 sm:$0xff]  }
 0x249   : > { %4185 = vmatpush1.bf16.msra.mxu0 %v6730_v39  ;;  %v6769_v39 = vld [vmem:[%s10369_s2 + $0xcc] ss:$16 sps:$4 sm:$0xff]  }
 0x24a   : > { %4160 = vmatpush2.bf16.msra.mxu1 %v6729_v38  ;;  %4211 = vmatprep.subr.bf16.mxu0 %v6731_v40  ;;  %v6768_v38 = vld [vmem:[%s10369_s2 + $0x1c4] ss:$16 sps:$4 sm:$0xff]  }
 0x24b   : > { %4252 = vmatprep.subr.bf16.mxu1 %v6732_v14  ;;  %v6770_v14 = vld [vmem:[%s10369_s2 + $0x1c0] ss:$16 sps:$4 sm:$0xff]  }
 0x24c   : > { %v3277_v44 = vpop.f32.mrf.mxu0  ;;  %4203 = vmatmul.mubr.bf16.vlgmr.msra.gmra.mxu0 %v7904_v62  ;;  %v6736_v62 = vld [vmem:[%s10369_s2 + $0x2c4] ss:$16 sps:$4 sm:$0xff]  }
 0x24d   : > { %v3236_v43 = vpop.f32.mrf.mxu1  ;;  %4162 = vmatmul.mubr.bf16.vlgmr.msra.gmra.mxu1 %v8007_v42  ;;  %4212 = vmatpush1.bf16.msra.mxu0 %v6733_v49  ;;  %v6774_v49 = vld [vmem:[%s10369_s2 + $0x1a0] ss:$16 sps:$4 sm:$0xff]  }
 0x24e   : > { %v3278_v45 = vadd.f32 %v3277_v44, %v3236_v43  ;;  %4253 = vmatpush1.bf16.msra.mxu1 %v6734_v50  ;;  %v3279_v53 = vpop.f32.mrf.mxu0  ;;  %4213 = vmatprep.subr.bf16.mxu0 %v6735_v18  ;;  %v6771_v43 = vld [vmem:[%s10369_s2 + $0xc8] ss:$16 sps:$4 sm:$0xff]   ;;  %v6778_v18 = vld [vmem:[%s10369_s2 + $0x180] ss:$16 sps:$4 sm:$0xff]  }
 0x24f   : > { %v3238_v9 = vpop.f32.mrf.mxu1  ;;  %4254 = vmatprep.subr.bf16.mxu1 %v6736_v62  ;;  %4284 = vmatprep.mubr.bf16.mxu1 %v7124_v2  ;;  %v6775_v50 = vld [vmem:[%s10369_s2 + $0xa8] ss:$16 sps:$4 sm:$0xff]  }
 0x250   : > { %v9096_v42 = vadd.f32 %v3278_v45, %v8782_v47  ;;  %v3280_v55 = vadd.f32 %v3279_v53, %v3238_v9  ;;  %4243 = vmatprep.mubr.bf16.mxu0 %v7325_v52  ;;  %v3281_v56 = vpop.f32.mrf.mxu0  ;;  %v6738_v47 = vld [vmem:[%s10369_s2 + $0x2c0] ss:$16 sps:$4 sm:$0xff]   ;;  %v6772_v45 = vld [vmem:[%s10369_s2 + $0x1a4] ss:$16 sps:$4 sm:$0xff]   ;;  %v6777_v53 = vld [vmem:[%s10369_s2 + $0x8c] ss:$16 sps:$4 sm:$0xff]  }
 0x251   : > { %v3240_v22 = vpop.f32.mrf.mxu1  ;;  %4214 = vmatpush1.bf16.msra.mxu0 %v6737_v59  ;;  %v6776_v9 = vld [vmem:[%s10369_s2 + $0x184] ss:$16 sps:$4 sm:$0xff]   ;;  %v6779_v62 = vld [vmem:[%s10369_s2 + $0x88] ss:$16 sps:$4 sm:$0xff]   ;;  %v6782_v56 = vld [vmem:[%s10369_s2 + $0x160] ss:$16 sps:$4 sm:$0xff]  }
 0x252   : > { %v9101_v57 = vadd.f32 %v3280_v55, %v8787_v34  ;;  %4255 = vmatpush1.bf16.msra.mxu1 %v6738_v47  ;;  %v3282_v61 = vpop.f32.mrf.mxu0  ;;  %4215 = vmatprep.subr.bf16.mxu0 %v6739_v63  ;;  %v6740_v34 = vld [vmem:[%s10369_s2 + $0x2a4] ss:$16 sps:$4 sm:$0xff]   ;;  %v6781_v22 = vld [vmem:[%s10369_s2 + $0x6c] ss:$16 sps:$4 sm:$0xff]   ;;  %v6783_v59 = vld [vmem:[%s10369_s2 + $0x68] ss:$16 sps:$4 sm:$0xff]  }
 0x253   : > { %v3241_v60 = vpop.f32.mrf.mxu1  ;;  %4256 = vmatprep.subr.bf16.mxu1 %v6740_v34  ;;  %v6780_v55 = vld [vmem:[%s10369_s2 + $0x164] ss:$16 sps:$4 sm:$0xff]   ;;  %v6786_v61 = vld [vmem:[%s10369_s2 + $0x140] ss:$16 sps:$4 sm:$0xff]   ;;  %v6787_v63 = vld [vmem:[%s10369_s2 + $0x48] ss:$16 sps:$4 sm:$0xff]  }
 0x254   : > { %v6784_v47 = vld [vmem:[%s10369_s2 + $0x144] ss:$16 sps:$4 sm:$0xff]   ;;  %v6785_v60 = vld [vmem:[%s10369_s2 + $0x4c] ss:$16 sps:$4 sm:$0xff]  }
 0x255   : > { %4216 = vmatpush1.bf16.msra.mxu0 %v6741_v0  ;;  %v6788_v34 = vld [vmem:[%s10369_s2 + $0x124] ss:$16 sps:$4 sm:$0xff]   ;;  %v6789_v0 = vld [vmem:[%s10369_s2 + $0x2c] ss:$16 sps:$4 sm:$0xff]  }
 0x256   : > { %4257 = vmatpush1.bf16.msra.mxu1 %v6742_v1  ;;  %4217 = vmatprep.subr.bf16.mxu0 %v6743_v5  ;;  %v6790_v1 = vld [vmem:[%s10369_s2 + $0x120] ss:$16 sps:$4 sm:$0xff]   ;;  %v6791_v5 = vld [vmem:[%s10369_s2 + $0x28] ss:$16 sps:$4 sm:$0xff]  }
 0x257   : > { %4258 = vmatprep.subr.bf16.mxu1 %v6744_v36  ;;  %v6792_v36 = vld [vmem:[%s10369_s2 + $0x104] ss:$16 sps:$4 sm:$0xff]  }
 0x259   : > { %4218 = vmatpush1.bf16.msra.mxu0 %v6745_v11  ;;  %v6793_v11 = vld [vmem:[%s10369_s2 + $0xc] ss:$16 sps:$4 sm:$0xff]  }
 0x25a   : > { %4259 = vmatpush1.bf16.msra.mxu1 %v6746_v12  ;;  %4219 = vmatprep.subr.bf16.mxu0 %v6747_v35  ;;  %v6794_v12 = vld [vmem:[%s10369_s2 + $0x100] ss:$16 sps:$4 sm:$0xff]   ;;  %v6795_v35 = vld [vmem:[%s10369_s2 + $0x8] ss:$16 sps:$4 sm:$0xff]  }
 0x25b   : > { %4260 = vmatprep.subr.bf16.mxu1 %v6748_v15  ;;  %v6796_v15 = vld [vmem:[%s10369_s2 + $0x1ec] ss:$16 sps:$4 sm:$0xff]  }
 0x25d   : > { %4220 = vmatpush1.bf16.msra.mxu0 %v6749_v51  ;;  %v6797_v51 = vld [vmem:[%s10369_s2 + $0x2ec] ss:$16 sps:$4 sm:$0xff]  }
 0x25e   : > { %4261 = vmatpush1.bf16.msra.mxu1 %v6750_v16  ;;  %4221 = vmatprep.subr.bf16.mxu0 %v6751_v17 }
 0x25f   : > { %4262 = vmatprep.subr.bf16.mxu1 %v6752_v41  ;;  %v6798_v41 = vld [vmem:[%s10369_s2 + $0x1e8] ss:$16 sps:$4 sm:$0xff]  }
 0x261   : > { %4222 = vmatpush1.bf16.msra.mxu0 %v6753_v48  ;;  %v6799_v48 = vld [vmem:[%s10369_s2 + $0x2e8] ss:$16 sps:$4 sm:$0xff]  }
 0x262   : > { %4263 = vmatpush1.bf16.msra.mxu1 %v6754_v20  ;;  %4223 = vmatprep.subr.bf16.mxu0 %v6755_v21  ;;  %v6800_v21 = vld [vmem:[%s10369_s2 + $0x1cc] ss:$16 sps:$4 sm:$0xff]  }
 0x263   : > { %4264 = vmatprep.subr.bf16.mxu1 %v6756_v23  ;;  %v6801_v23 = vld [vmem:[%s10369_s2 + $0x2cc] ss:$16 sps:$4 sm:$0xff]  }
 0x265   : > { %4224 = vmatpush1.bf16.msra.mxu0 %v6757_v25 }
 0x266   : > { %4265 = vmatpush1.bf16.msra.mxu1 %v6758_v24  ;;  %4225 = vmatprep.subr.bf16.mxu0 %v6759_v54 }
 0x267   : > { %4266 = vmatprep.subr.bf16.mxu1 %v6760_v28 }
 0x269   : > { %4226 = vmatpush1.bf16.msra.mxu0 %v6761_v26  ;;  %v6802_v26 = vld [vmem:[%s10369_s2 + $0x1c8] ss:$16 sps:$4 sm:$0xff]  }
 0x26a   : > { %4267 = vmatpush1.bf16.msra.mxu1 %v6762_v27  ;;  %4227 = vmatprep.subr.bf16.mxu0 %v6763_v29  ;;  %v6803_v27 = vld [vmem:[%s10369_s2 + $0x2c8] ss:$16 sps:$4 sm:$0xff]   ;;  %v6804_v29 = vld [vmem:[%s10369_s2 + $0x1ac] ss:$16 sps:$4 sm:$0xff]  }
 0x26b   : > { %4293 = vmatprep.subr.bf16.mxu1 %v6764_v30  ;;  %v6806_v30 = vld [vmem:[%s10369_s2 + $0x1a8] ss:$16 sps:$4 sm:$0xff]  }
 0x26d   : > { %v9187_v6 = vpop.f32.mrf.mxu1  ;;  %4285 = vmatmul.mubr.bf16.vlgmr.msra.gmra.mxu1 %v9190_v13  ;;  %4228 = vmatpush2.bf16.msra.mxu0 %v6766_v33  ;;  %v6808_v33 = vld [vmem:[%s10369_s2 + $0x18c] ss:$16 sps:$4 sm:$0xff]  }
 0x26e   : > { %4294 = vmatpush1.bf16.msra.mxu1 %v6767_v37  ;;  %4229 = vmatprep.subr.bf16.mxu0 %v6768_v38  ;;  %v6809_v37 = vld [vmem:[%s10369_s2 + $0x28c] ss:$16 sps:$4 sm:$0xff]   ;;  %v6811_v38 = vld [vmem:[%s10369_s2 + $0x288] ss:$16 sps:$4 sm:$0xff]  }
 0x26f   : > { %v9199_v8 = vpop.f32.mrf.mxu1  ;;  %4295 = vmatprep.subr.bf16.mxu1 %v6769_v39  ;;  %4325 = vmatprep.mubr.bf16.mxu1 %v7325_v52  ;;  %v6773_v52 = vld [vmem:[%s10369_s2 + $0xac] ss:$16 sps:$4 sm:$0xff]  }
 0x270   : > { %v6812_v39 = vld [vmem:[%s10369_s2 + $0x16c] ss:$16 sps:$4 sm:$0xff]  }
 0x271   : > { %v3958_v40 = vpop.f32.mrf.mxu1  ;;  %4230 = vmatpush2.bf16.msra.mxu0 %v6770_v14  ;;  %v6814_v14 = vld [vmem:[%s10369_s2 + $0x168] ss:$16 sps:$4 sm:$0xff]  }
 0x272   : > { %4296 = vmatpush1.bf16.msra.mxu1 %v6771_v43  ;;  %4231 = vmatprep.subr.bf16.mxu0 %v6772_v45  ;;  %v6813_v40 = vld [vmem:[%s10369_s2 + $0x26c] ss:$16 sps:$4 sm:$0xff]   ;;  %v6815_v43 = vld [vmem:[%s10369_s2 + $0x268] ss:$16 sps:$4 sm:$0xff]  }
 0x273   : > { %v3959_v44 = vpop.f32.mrf.mxu1  ;;  %4297 = vmatprep.subr.bf16.mxu1 %v6773_v52  ;;  %v6817_v45 = vld [vmem:[%s10369_s2 + $0x24c] ss:$16 sps:$4 sm:$0xff]   ;;  %v6818_v52 = vld [vmem:[%s10369_s2 + $0x148] ss:$16 sps:$4 sm:$0xff]  }
 0x274   : > { %v6816_v44 = vld [vmem:[%s10369_s2 + $0x14c] ss:$16 sps:$4 sm:$0xff]  }
 0x275   : > { %4232 = vmatpush2.bf16.msra.mxu0 %v6774_v49  ;;  %v6819_v49 = vld [vmem:[%s10369_s2 + $0x248] ss:$16 sps:$4 sm:$0xff]  }
 0x276   : > { %4298 = vmatpush1.bf16.msra.mxu1 %v6775_v50  ;;  %4233 = vmatprep.subr.bf16.mxu0 %v6776_v9  ;;  %v6820_v50 = vld [vmem:[%s10369_s2 + $0x12c] ss:$16 sps:$4 sm:$0xff]  }
 0x277   : > { %4299 = vmatprep.subr.bf16.mxu1 %v6777_v53  ;;  %v6821_v9 = vld [vmem:[%s10369_s2 + $0x22c] ss:$16 sps:$4 sm:$0xff]   ;;  %v6822_v53 = vld [vmem:[%s10369_s2 + $0x128] ss:$16 sps:$4 sm:$0xff]  }
 0x279   : > { %4234 = vmatpush2.bf16.msra.mxu0 %v6778_v18  ;;  %v6823_v18 = vld [vmem:[%s10369_s2 + $0x228] ss:$16 sps:$4 sm:$0xff]  }
 0x27a   : > { %4300 = vmatpush1.bf16.msra.mxu1 %v6779_v62  ;;  %4235 = vmatprep.subr.bf16.mxu0 %v6780_v55  ;;  %v6824_v62 = vld [vmem:[%s10369_s2 + $0x10c] ss:$16 sps:$4 sm:$0xff]  }
 0x27b   : > { %4301 = vmatprep.subr.bf16.mxu1 %v6781_v22  ;;  %v6825_v55 = vld [vmem:[%s10369_s2 + $0x20c] ss:$16 sps:$4 sm:$0xff]   ;;  %v6826_v22 = vld [vmem:[%s10369_s2 + $0x108] ss:$16 sps:$4 sm:$0xff]  }
 0x27d   : > { %4236 = vmatpush2.bf16.msra.mxu0 %v6782_v56  ;;  %v6827_v56 = vld [vmem:[%s10369_s2 + $0x208] ss:$16 sps:$4 sm:$0xff]  }
 0x27e   : > { %4302 = vmatpush1.bf16.msra.mxu1 %v6783_v59  ;;  %4237 = vmatprep.subr.bf16.mxu0 %v6784_v47  ;;  %v6828_v59 = vld [vmem:[%s10369_s2 + $0x6e4] ss:$16 sps:$4 sm:$0xff]  }
 0x27f   : > { %4303 = vmatprep.subr.bf16.mxu1 %v6785_v60  ;;  %v6829_v47 = vld [vmem:[%s10369_s2 + $0x8e4] ss:$16 sps:$4 sm:$0xff]  }
 0x281   : > { %4238 = vmatpush2.bf16.msra.mxu0 %v6786_v61 }
 0x282   : > { %4304 = vmatpush1.bf16.msra.mxu1 %v6787_v63  ;;  %4239 = vmatprep.subr.bf16.mxu0 %v6788_v34  ;;  %v6830_v34 = vld [vmem:[%s10369_s2 + $0x6e0] ss:$16 sps:$4 sm:$0xff]  }
 0x283   : > { %4305 = vmatprep.subr.bf16.mxu1 %v6789_v0  ;;  %v6831_v0 = vld [vmem:[%s10369_s2 + $0x8e0] ss:$16 sps:$4 sm:$0xff]  }
 0x285   : > { %4240 = vmatpush2.bf16.msra.mxu0 %v6790_v1 }
 0x286   : > { %4306 = vmatpush1.bf16.msra.mxu1 %v6791_v5  ;;  %4241 = vmatprep.subr.bf16.mxu0 %v6792_v36  ;;  %v6832_v36 = vld [vmem:[%s10369_s2 + $0x6c4] ss:$16 sps:$4 sm:$0xff]  }
 0x287   : > { %4307 = vmatprep.subr.bf16.mxu1 %v6793_v11 }
 0x289   : > { %4242 = vmatpush2.bf16.msra.mxu0 %v6794_v12 }
 0x28a   : > { %4308 = vmatpush1.bf16.msra.mxu1 %v6795_v35  ;;  %4334 = vmatprep.subr.bf16.mxu0 %v6797_v51  ;;  %v6834_v51 = vld [vmem:[%s10369_s2 + $0x6c0] ss:$16 sps:$4 sm:$0xff]  }
 0x28b   : > { %4309 = vmatprep.subr.bf16.mxu1 %v6796_v15 }
 0x28c   : > { %v3913_v16 = vpop.f32.mrf.mxu0  ;;  %4244 = vmatmul.mubr.bf16.vlgmr.msra.gmra.mxu0 %v7380_v7 }
 0x28d   : > { %v3955_v17 = vadd.f32 %v9187_v6, %v3913_v16  ;;  %4335 = vmatpush1.bf16.msra.mxu0 %v6799_v48  ;;  %4366 = vmatprep.mubr.bf16.mxu0 %v7124_v2  ;;  %v6807_v6 = vld [vmem:[%s10369_s2 + $0x2a8] ss:$16 sps:$4 sm:$0xff]   ;;  %v6838_v48 = vld [vmem:[%s10369_s2 + $0x6a0] ss:$16 sps:$4 sm:$0xff]  }
 0x28e   : > { %4310 = vmatpush2.bf16.msra.mxu1 %v6798_v41  ;;  %v3915_v20 = vpop.f32.mrf.mxu0  ;;  %4336 = vmatprep.subr.bf16.mxu0 %v6801_v23  ;;  %v6836_v41 = vld [vmem:[%s10369_s2 + $0x6a4] ss:$16 sps:$4 sm:$0xff]  }
 0x28f   : > { %4311 = vmatprep.subr.bf16.mxu1 %v6800_v21  ;;  %v9307_v25 = vadd.f32 %v3955_v17, %v8990_v4  ;;  %v3957_v24 = vadd.f32 %v9199_v8, %v3915_v20  ;;  %v6810_v8 = vld [vmem:[%s10369_s2 + $0x188] ss:$16 sps:$4 sm:$0xff]   ;;  %v6839_v20 = vld [vmem:[%s10369_s2 + $0x8a0] ss:$16 sps:$4 sm:$0xff]   ;;  %v6840_v21 = vld [vmem:[%s10369_s2 + $0x684] ss:$16 sps:$4 sm:$0xff]  }
 0x290   : > { %v3917_v54 = vpop.f32.mrf.mxu0  ;;  %v6841_v23 = vld [vmem:[%s10369_s2 + $0x884] ss:$16 sps:$4 sm:$0xff]  }
 0x291   : > { %v9312_v28 = vadd.f32 %v3957_v24, %v8995_v10  ;;  %4337 = vmatpush1.bf16.msra.mxu0 %v6803_v27  ;;  %v6805_v10 = vld [vmem:[%s10369_s2 + $0x2ac] ss:$16 sps:$4 sm:$0xff]   ;;  %v6842_v24 = vld [vmem:[%s10369_s2 + $0x680] ss:$16 sps:$4 sm:$0xff]   ;;  %v6845_v27 = vld [vmem:[%s10369_s2 + $0x864] ss:$16 sps:$4 sm:$0xff]  }
 0x292   : > { %4312 = vmatpush2.bf16.msra.mxu1 %v6802_v26  ;;  %v3918_v4 = vpop.f32.mrf.mxu0  ;;  %4338 = vmatprep.subr.bf16.mxu0 %v6805_v10  ;;  %v6843_v54 = vld [vmem:[%s10369_s2 + $0x880] ss:$16 sps:$4 sm:$0xff]   ;;  %v6844_v26 = vld [vmem:[%s10369_s2 + $0x664] ss:$16 sps:$4 sm:$0xff]  }
 0x293   : > { %4313 = vmatprep.subr.bf16.mxu1 %v6804_v29  ;;  %v6846_v4 = vld [vmem:[%s10369_s2 + $0x660] ss:$16 sps:$4 sm:$0xff]   ;;  %v6848_v10 = vld [vmem:[%s10369_s2 + $0x644] ss:$16 sps:$4 sm:$0xff]  }
 0x294   : > { %v6847_v29 = vld [vmem:[%s10369_s2 + $0x860] ss:$16 sps:$4 sm:$0xff]  }
 0x295   : > { %4339 = vmatpush1.bf16.msra.mxu0 %v6807_v6  ;;  %v6850_v6 = vld [vmem:[%s10369_s2 + $0x640] ss:$16 sps:$4 sm:$0xff]  }
 0x296   : > { %4314 = vmatpush2.bf16.msra.mxu1 %v6806_v30  ;;  %4340 = vmatprep.subr.bf16.mxu0 %v6809_v37  ;;  %v6849_v30 = vld [vmem:[%s10369_s2 + $0x844] ss:$16 sps:$4 sm:$0xff]  }
 0x297   : > { %4315 = vmatprep.subr.bf16.mxu1 %v6808_v33  ;;  %v6851_v33 = vld [vmem:[%s10369_s2 + $0x840] ss:$16 sps:$4 sm:$0xff]   ;;  %v6852_v37 = vld [vmem:[%s10369_s2 + $0x624] ss:$16 sps:$4 sm:$0xff]  }
 0x299   : > { %4341 = vmatpush1.bf16.msra.mxu0 %v6811_v38  ;;  %v6854_v38 = vld [vmem:[%s10369_s2 + $0x620] ss:$16 sps:$4 sm:$0xff]  }
 0x29a   : > { %4316 = vmatpush2.bf16.msra.mxu1 %v6810_v8  ;;  %4342 = vmatprep.subr.bf16.mxu0 %v6813_v40  ;;  %v6853_v8 = vld [vmem:[%s10369_s2 + $0x824] ss:$16 sps:$4 sm:$0xff]  }
 0x29b   : > { %4317 = vmatprep.subr.bf16.mxu1 %v6812_v39  ;;  %v6855_v39 = vld [vmem:[%s10369_s2 + $0x820] ss:$16 sps:$4 sm:$0xff]   ;;  %v6856_v40 = vld [vmem:[%s10369_s2 + $0x604] ss:$16 sps:$4 sm:$0xff]  }
 0x29d   : > { %4343 = vmatpush1.bf16.msra.mxu0 %v6815_v43  ;;  %v6858_v43 = vld [vmem:[%s10369_s2 + $0x600] ss:$16 sps:$4 sm:$0xff]  }
 0x29e   : > { %4318 = vmatpush2.bf16.msra.mxu1 %v6814_v14  ;;  %4344 = vmatprep.subr.bf16.mxu0 %v6817_v45  ;;  %v6857_v14 = vld [vmem:[%s10369_s2 + $0x804] ss:$16 sps:$4 sm:$0xff]  }
 0x29f   : > { %4319 = vmatprep.subr.bf16.mxu1 %v6816_v44  ;;  %v6859_v44 = vld [vmem:[%s10369_s2 + $0x800] ss:$16 sps:$4 sm:$0xff]   ;;  %v6860_v45 = vld [vmem:[%s10369_s2 + $0x7e4] ss:$16 sps:$4 sm:$0xff]  }
 0x2a1   : > { %4345 = vmatpush1.bf16.msra.mxu0 %v6819_v49 }
 0x2a2   : > { %4320 = vmatpush2.bf16.msra.mxu1 %v6818_v52  ;;  %4346 = vmatprep.subr.bf16.mxu0 %v6821_v9  ;;  %v6861_v52 = vld [vmem:[%s10369_s2 + $0x6ec] ss:$16 sps:$4 sm:$0xff]   ;;  %v6863_v9 = vld [vmem:[%s10369_s2 + $0x6e8] ss:$16 sps:$4 sm:$0xff]  }
 0x2a3   : > { %4321 = vmatprep.subr.bf16.mxu1 %v6820_v50  ;;  %v6862_v50 = vld [vmem:[%s10369_s2 + $0x7e0] ss:$16 sps:$4 sm:$0xff]  }
 0x2a5   : > { %4347 = vmatpush1.bf16.msra.mxu0 %v6823_v18  ;;  %v6864_v18 = vld [vmem:[%s10369_s2 + $0x7c4] ss:$16 sps:$4 sm:$0xff]  }
 0x2a6   : > { %4322 = vmatpush2.bf16.msra.mxu1 %v6822_v53  ;;  %4348 = vmatprep.subr.bf16.mxu0 %v6825_v55 }
 0x2a7   : > { %4323 = vmatprep.subr.bf16.mxu1 %v6824_v62  ;;  %v6865_v62 = vld [vmem:[%s10369_s2 + $0x6cc] ss:$16 sps:$4 sm:$0xff]  }
 0x2a9   : > { %4349 = vmatpush1.bf16.msra.mxu0 %v6827_v56  ;;  %v6867_v56 = vld [vmem:[%s10369_s2 + $0x6c8] ss:$16 sps:$4 sm:$0xff]  }
 0x2aa   : > { %4324 = vmatpush2.bf16.msra.mxu1 %v6826_v22  ;;  %4375 = vmatprep.subr.bf16.mxu0 %v6828_v59  ;;  %v6866_v22 = vld [vmem:[%s10369_s2 + $0x7c0] ss:$16 sps:$4 sm:$0xff]  }
 0x2ab   : > { %4416 = vmatprep.subr.bf16.mxu1 %v6829_v47  ;;  %v6868_v47 = vld [vmem:[%s10369_s2 + $0x7a4] ss:$16 sps:$4 sm:$0xff]  }
 0x2ac   : > { %v4036_v61 = vpop.f32.mrf.mxu0  ;;  %4367 = vmatmul.mubr.bf16.vlgmr.msra.gmra.mxu0 %v9190_v13 }
 0x2ad   : > { %v3995_v60 = vpop.f32.mrf.mxu1  ;;  %4326 = vmatmul.mubr.bf16.vlgmr.msra.gmra.mxu1 %v7380_v7  ;;  %4376 = vmatpush1.bf16.msra.mxu0 %v6830_v34  ;;  %v6833_v7 = vld [vmem:[%s10369_s2 + $0x8c4] ss:$16 sps:$4 sm:$0xff]   ;;  %v6873_v34 = vld [vmem:[%s10369_s2 + $0x68c] ss:$16 sps:$4 sm:$0xff]  }
 0x2ae   : > { %v4037_v63 = vadd.f32 %v4036_v61, %v3995_v60  ;;  %4417 = vmatpush1.bf16.msra.mxu1 %v6831_v0  ;;  %v4038_v5 = vpop.f32.mrf.mxu0  ;;  %4377 = vmatprep.subr.bf16.mxu0 %v6832_v36  ;;  %v6870_v60 = vld [vmem:[%s10369_s2 + $0x7a0] ss:$16 sps:$4 sm:$0xff]   ;;  %v6871_v61 = vld [vmem:[%s10369_s2 + $0x6a8] ss:$16 sps:$4 sm:$0xff]   ;;  %v6877_v36 = vld [vmem:[%s10369_s2 + $0x66c] ss:$16 sps:$4 sm:$0xff]  }
 0x2af   : > { %v3997_v1 = vpop.f32.mrf.mxu1  ;;  %4418 = vmatprep.subr.bf16.mxu1 %v6833_v7  ;;  %4448 = vmatprep.mubr.bf16.mxu1 %v7124_v2  ;;  %v6874_v0 = vld [vmem:[%s10369_s2 + $0x780] ss:$16 sps:$4 sm:$0xff]  }
 0x2b0   : > { %v9413_v13 = vadd.f32 %v4037_v63, %v9096_v42  ;;  %v4039_v11 = vadd.f32 %v4038_v5, %v3997_v1  ;;  %4407 = vmatprep.mubr.bf16.mxu0 %v8136_v32  ;;  %v4040_v35 = vpop.f32.mrf.mxu0  ;;  %v6835_v42 = vld [vmem:[%s10369_s2 + $0x8c0] ss:$16 sps:$4 sm:$0xff]   ;;  %v6872_v63 = vld [vmem:[%s10369_s2 + $0x784] ss:$16 sps:$4 sm:$0xff]   ;;  %v6875_v1 = vld [vmem:[%s10369_s2 + $0x688] ss:$16 sps:$4 sm:$0xff]  }
 0x2b1   : > { %v3999_v12 = vpop.f32.mrf.mxu1  ;;  %4378 = vmatpush1.bf16.msra.mxu0 %v6834_v51  ;;  %v6876_v5 = vld [vmem:[%s10369_s2 + $0x764] ss:$16 sps:$4 sm:$0xff]   ;;  %v6878_v7 = vld [vmem:[%s10369_s2 + $0x760] ss:$16 sps:$4 sm:$0xff]   ;;  %v6881_v35 = vld [vmem:[%s10369_s2 + $0x64c] ss:$16 sps:$4 sm:$0xff]  }
 0x2b2   : > { %v9418_v15 = vadd.f32 %v4039_v11, %v9101_v57  ;;  %4419 = vmatpush1.bf16.msra.mxu1 %v6835_v42  ;;  %v4041_v17 = vpop.f32.mrf.mxu0  ;;  %4379 = vmatprep.subr.bf16.mxu0 %v6836_v41  ;;  %v6837_v57 = vld [vmem:[%s10369_s2 + $0x8a4] ss:$16 sps:$4 sm:$0xff]   ;;  %v6879_v11 = vld [vmem:[%s10369_s2 + $0x668] ss:$16 sps:$4 sm:$0xff]   ;;  %v6882_v51 = vld [vmem:[%s10369_s2 + $0x740] ss:$16 sps:$4 sm:$0xff]  }
 0x2b3   : > { %v4000_v16 = vpop.f32.mrf.mxu1  ;;  %4420 = vmatprep.subr.bf16.mxu1 %v6837_v57  ;;  %v6880_v12 = vld [vmem:[%s10369_s2 + $0x744] ss:$16 sps:$4 sm:$0xff]   ;;  %v6883_v42 = vld [vmem:[%s10369_s2 + $0x648] ss:$16 sps:$4 sm:$0xff]   ;;  %v6885_v17 = vld [vmem:[%s10369_s2 + $0x62c] ss:$16 sps:$4 sm:$0xff]  }
 0x2b4   : > { %v6884_v16 = vld [vmem:[%s10369_s2 + $0x724] ss:$16 sps:$4 sm:$0xff]   ;;  %v6886_v41 = vld [vmem:[%s10369_s2 + $0x720] ss:$16 sps:$4 sm:$0xff]   ;;  %v6887_v57 = vld [vmem:[%s10369_s2 + $0x628] ss:$16 sps:$4 sm:$0xff]  }
 0x2b5   : > { %4380 = vmatpush1.bf16.msra.mxu0 %v6838_v48  ;;  %v6888_v48 = vld [vmem:[%s10369_s2 + $0x704] ss:$16 sps:$4 sm:$0xff]  }
 0x2b6   : > { %4421 = vmatpush1.bf16.msra.mxu1 %v6839_v20  ;;  %4381 = vmatprep.subr.bf16.mxu0 %v6840_v21  ;;  %v6889_v20 = vld [vmem:[%s10369_s2 + $0x60c] ss:$16 sps:$4 sm:$0xff]   ;;  %v6890_v21 = vld [vmem:[%s10369_s2 + $0x700] ss:$16 sps:$4 sm:$0xff]  }
 0x2b7   : > { %4422 = vmatprep.subr.bf16.mxu1 %v6841_v23  ;;  %v6891_v23 = vld [vmem:[%s10369_s2 + $0x608] ss:$16 sps:$4 sm:$0xff]  }
 0x2b9   : > { %4382 = vmatpush1.bf16.msra.mxu0 %v6842_v24  ;;  %v6892_v24 = vld [vmem:[%s10369_s2 + $0x7ec] ss:$16 sps:$4 sm:$0xff]  }
 0x2ba   : > { %4423 = vmatpush1.bf16.msra.mxu1 %v6843_v54  ;;  %4383 = vmatprep.subr.bf16.mxu0 %v6844_v26  ;;  %v6893_v54 = vld [vmem:[%s10369_s2 + $0x8ec] ss:$16 sps:$4 sm:$0xff]  }
 0x2bb   : > { %4424 = vmatprep.subr.bf16.mxu1 %v6845_v27 }
 0x2bd   : > { %4384 = vmatpush1.bf16.msra.mxu0 %v6846_v4  ;;  %v6894_v4 = vld [vmem:[%s10369_s2 + $0x7e8] ss:$16 sps:$4 sm:$0xff]  }
 0x2be   : > { %4425 = vmatpush1.bf16.msra.mxu1 %v6847_v29  ;;  %4385 = vmatprep.subr.bf16.mxu0 %v6848_v10  ;;  %v6895_v29 = vld [vmem:[%s10369_s2 + $0x8e8] ss:$16 sps:$4 sm:$0xff]  }
 0x2bf   : > { %4426 = vmatprep.subr.bf16.mxu1 %v6849_v30  ;;  %v6896_v30 = vld [vmem:[%s10369_s2 + $0x7cc] ss:$16 sps:$4 sm:$0xff]  }
 0x2c1   : > { %4386 = vmatpush1.bf16.msra.mxu0 %v6850_v6  ;;  %v6897_v6 = vld [vmem:[%s10369_s2 + $0x8cc] ss:$16 sps:$4 sm:$0xff]  }
 0x2c2   : > { %4427 = vmatpush1.bf16.msra.mxu1 %v6851_v33  ;;  %4387 = vmatprep.subr.bf16.mxu0 %v6852_v37 }
 0x2c3   : > { %4428 = vmatprep.subr.bf16.mxu1 %v6853_v8  ;;  %v6898_v8 = vld [vmem:[%s10369_s2 + $0x7c8] ss:$16 sps:$4 sm:$0xff]  }
 0x2c5   : > { %4388 = vmatpush1.bf16.msra.mxu0 %v6854_v38  ;;  %v6899_v38 = vld [vmem:[%s10369_s2 + $0x8c8] ss:$16 sps:$4 sm:$0xff]  }
 0x2c6   : > { %4429 = vmatpush1.bf16.msra.mxu1 %v6855_v39  ;;  %4389 = vmatprep.subr.bf16.mxu0 %v6856_v40  ;;  %v6900_v40 = vld [vmem:[%s10369_s2 + $0x7ac] ss:$16 sps:$4 sm:$0xff]  }
 0x2c7   : > { %4430 = vmatprep.subr.bf16.mxu1 %v6857_v14  ;;  %v6901_v14 = vld [vmem:[%s10369_s2 + $0x8ac] ss:$16 sps:$4 sm:$0xff]  }
 0x2c9   : > { %4390 = vmatpush1.bf16.msra.mxu0 %v6858_v43  ;;  %v6902_v43 = vld [vmem:[%s10369_s2 + $0x7a8] ss:$16 sps:$4 sm:$0xff]  }
 0x2ca   : > { %4431 = vmatpush1.bf16.msra.mxu1 %v6859_v44  ;;  %4391 = vmatprep.subr.bf16.mxu0 %v6860_v45  ;;  %v6903_v44 = vld [vmem:[%s10369_s2 + $0x8a8] ss:$16 sps:$4 sm:$0xff]   ;;  %v6904_v45 = vld [vmem:[%s10369_s2 + $0x78c] ss:$16 sps:$4 sm:$0xff]  }
 0x2cb   : > { %4457 = vmatprep.subr.bf16.mxu1 %v6861_v52  ;;  %v6905_v52 = vld [vmem:[%s10369_s2 + $0x88c] ss:$16 sps:$4 sm:$0xff]  }
 0x2cd   : > { %v9504_v49 = vpop.f32.mrf.mxu1  ;;  %4449 = vmatmul.mubr.bf16.vlgmr.msra.gmra.mxu1 %v8225_v19  ;;  %4392 = vmatpush2.bf16.msra.mxu0 %v6862_v50  ;;  %v6907_v50 = vld [vmem:[%s10369_s2 + $0x888] ss:$16 sps:$4 sm:$0xff]  }
 0x2ce   : > { %4458 = vmatpush1.bf16.msra.mxu1 %v6863_v9  ;;  %4393 = vmatprep.subr.bf16.mxu0 %v6864_v18  ;;  %v6908_v9 = vld [vmem:[%s10369_s2 + $0x76c] ss:$16 sps:$4 sm:$0xff]   ;;  %v6910_v18 = vld [vmem:[%s10369_s2 + $0x768] ss:$16 sps:$4 sm:$0xff]  }
 0x2cf   : > { %v9513_v53 = vpop.f32.mrf.mxu1  ;;  %4459 = vmatprep.subr.bf16.mxu1 %v6865_v62  ;;  %4489 = vmatprep.mubr.bf16.mxu1 %v8136_v32  ;;  %v6869_v32 = vld [vmem:[%s10369_s2 + $0x6ac] ss:$16 sps:$4 sm:$0xff]   ;;  %v6911_v62 = vld [vmem:[%s10369_s2 + $0x868] ss:$16 sps:$4 sm:$0xff]  }
 0x2d1   : > { %v4126_v55 = vpop.f32.mrf.mxu1  ;;  %4394 = vmatpush2.bf16.msra.mxu0 %v6866_v22  ;;  %v6913_v22 = vld [vmem:[%s10369_s2 + $0x84c] ss:$16 sps:$4 sm:$0xff]  }
 0x2d2   : > { %4460 = vmatpush1.bf16.msra.mxu1 %v6867_v56  ;;  %4395 = vmatprep.subr.bf16.mxu0 %v6868_v47  ;;  %v6912_v55 = vld [vmem:[%s10369_s2 + $0x74c] ss:$16 sps:$4 sm:$0xff]   ;;  %v6914_v56 = vld [vmem:[%s10369_s2 + $0x748] ss:$16 sps:$4 sm:$0xff]  }
 0x2d3   : > { %v4127_v59 = vpop.f32.mrf.mxu1  ;;  %4461 = vmatprep.subr.bf16.mxu1 %v6869_v32  ;;  %v6916_v47 = vld [vmem:[%s10369_s2 + $0x72c] ss:$16 sps:$4 sm:$0xff]  }
 0x2d4   : > { %v6915_v59 = vld [vmem:[%s10369_s2 + $0x848] ss:$16 sps:$4 sm:$0xff]   ;;  %v6917_v32 = vld [vmem:[%s10369_s2 + $0x82c] ss:$16 sps:$4 sm:$0xff]  }
 0x2d5   : > { %4396 = vmatpush2.bf16.msra.mxu0 %v6870_v60  ;;  %v6918_v60 = vld [vmem:[%s10369_s2 + $0x728] ss:$16 sps:$4 sm:$0xff]  }
 0x2d6   : > { %4462 = vmatpush1.bf16.msra.mxu1 %v6871_v61  ;;  %4397 = vmatprep.subr.bf16.mxu0 %v6872_v63  ;;  %v6919_v61 = vld [vmem:[%s10369_s2 + $0x828] ss:$16 sps:$4 sm:$0xff]   ;;  %v6920_v63 = vld [vmem:[%s10369_s2 + $0x70c] ss:$16 sps:$4 sm:$0xff]  }
 0x2d7   : > { %4463 = vmatprep.subr.bf16.mxu1 %v6873_v34  ;;  %v6921_v34 = vld [vmem:[%s10369_s2 + $0x80c] ss:$16 sps:$4 sm:$0xff]  }
 0x2d9   : > { %4398 = vmatpush2.bf16.msra.mxu0 %v6874_v0  ;;  %v6922_v0 = vld [vmem:[%s10369_s2 + $0x708] ss:$16 sps:$4 sm:$0xff]  }
 0x2da   : > { %4464 = vmatpush1.bf16.msra.mxu1 %v6875_v1  ;;  %4399 = vmatprep.subr.bf16.mxu0 %v6876_v5  ;;  %v6923_v1 = vld [vmem:[%s10369_s2 + $0x808] ss:$16 sps:$4 sm:$0xff]   ;;  %v6924_v5 = vld [vmem:[%s10369_s2 + $0x9e4] ss:$16 sps:$4 sm:$0xff]  }
 0x2db   : > { %4465 = vmatprep.subr.bf16.mxu1 %v6877_v36  ;;  %v6925_v36 = vld [vmem:[%s10369_s2 + $0xbe4] ss:$16 sps:$4 sm:$0xff]  }
 0x2dd   : > { %4400 = vmatpush2.bf16.msra.mxu0 %v6878_v7 }
 0x2de   : > { %4466 = vmatpush1.bf16.msra.mxu1 %v6879_v11  ;;  %4401 = vmatprep.subr.bf16.mxu0 %v6880_v12 }
 0x2df   : > { %4467 = vmatprep.subr.bf16.mxu1 %v6881_v35  ;;  %v6926_v35 = vld [vmem:[%s10369_s2 + $0x9e0] ss:$16 sps:$4 sm:$0xff]  }
 0x2e1   : > { %4402 = vmatpush2.bf16.msra.mxu0 %v6882_v51  ;;  %v6927_v51 = vld [vmem:[%s10369_s2 + $0xbe0] ss:$16 sps:$4 sm:$0xff]  }
 0x2e2   : > { %4468 = vmatpush1.bf16.msra.mxu1 %v6883_v42  ;;  %4403 = vmatprep.subr.bf16.mxu0 %v6884_v16 }
 0x2e3   : > { %4469 = vmatprep.subr.bf16.mxu1 %v6885_v17 }
 0x2e5   : > { %4404 = vmatpush2.bf16.msra.mxu0 %v6886_v41 }
 0x2e6   : > { %4470 = vmatpush1.bf16.msra.mxu1 %v6887_v57  ;;  %4405 = vmatprep.subr.bf16.mxu0 %v6888_v48  ;;  %v6930_v48 = vld [vmem:[%s10369_s2 + $0x9c0] ss:$16 sps:$4 sm:$0xff]  }
 0x2e7   : > { %4471 = vmatprep.subr.bf16.mxu1 %v6889_v20  ;;  %v6931_v20 = vld [vmem:[%s10369_s2 + $0xbc0] ss:$16 sps:$4 sm:$0xff]  }
 0x2e9   : > { %4406 = vmatpush2.bf16.msra.mxu0 %v6890_v21 }
 0x2ea   : > { %4472 = vmatpush1.bf16.msra.mxu1 %v6891_v23  ;;  %4498 = vmatprep.subr.bf16.mxu0 %v6893_v54  ;;  %v6933_v54 = vld [vmem:[%s10369_s2 + $0xba4] ss:$16 sps:$4 sm:$0xff]  }
 0x2eb   : > { %4473 = vmatprep.subr.bf16.mxu1 %v6892_v24  ;;  %v6932_v24 = vld [vmem:[%s10369_s2 + $0x9a4] ss:$16 sps:$4 sm:$0xff]  }
 0x2ec   : > { %v4081_v26 = vpop.f32.mrf.mxu0  ;;  %4408 = vmatmul.mubr.bf16.vlgmr.msra.gmra.mxu0 %v8331_v3 }
 0x2ed   : > { %v9608_v27 = vadd.f32 %v9504_v49, %v4081_v26  ;;  %4499 = vmatpush1.bf16.msra.mxu0 %v6895_v29  ;;  %4530 = vmatprep.mubr.bf16.mxu0 %v7124_v2  ;;  %v6906_v49 = vld [vmem:[%s10369_s2 + $0x788] ss:$16 sps:$4 sm:$0xff]   ;;  %v6934_v26 = vld [vmem:[%s10369_s2 + $0x9a0] ss:$16 sps:$4 sm:$0xff]   ;;  %v6936_v29 = vld [vmem:[%s10369_s2 + $0x984] ss:$16 sps:$4 sm:$0xff]  }
 0x2ee   : > { %4474 = vmatpush2.bf16.msra.mxu1 %v6894_v4  ;;  %v4083_v10 = vpop.f32.mrf.mxu0  ;;  %4500 = vmatprep.subr.bf16.mxu0 %v6897_v6  ;;  %v6935_v4 = vld [vmem:[%s10369_s2 + $0xba0] ss:$16 sps:$4 sm:$0xff]  }
 0x2ef   : > { %4475 = vmatprep.subr.bf16.mxu1 %v6896_v30  ;;  %v9623_v33 = vadd.f32 %v9513_v53, %v4083_v10  ;;  %v6909_v53 = vld [vmem:[%s10369_s2 + $0x86c] ss:$16 sps:$4 sm:$0xff]   ;;  %v6937_v10 = vld [vmem:[%s10369_s2 + $0xb84] ss:$16 sps:$4 sm:$0xff]   ;;  %v6938_v30 = vld [vmem:[%s10369_s2 + $0x980] ss:$16 sps:$4 sm:$0xff]  }
 0x2f0   : > { %v4085_v37 = vpop.f32.mrf.mxu0  ;;  %v6939_v6 = vld [vmem:[%s10369_s2 + $0xb80] ss:$16 sps:$4 sm:$0xff]  }
 0x2f1   : > { %4501 = vmatpush1.bf16.msra.mxu0 %v6899_v38  ;;  %v6940_v37 = vld [vmem:[%s10369_s2 + $0x964] ss:$16 sps:$4 sm:$0xff]   ;;  %v6942_v38 = vld [vmem:[%s10369_s2 + $0x960] ss:$16 sps:$4 sm:$0xff]  }
 0x2f2   : > { %4476 = vmatpush2.bf16.msra.mxu1 %v6898_v8  ;;  %v4086_v39 = vpop.f32.mrf.mxu0  ;;  %4502 = vmatprep.subr.bf16.mxu0 %v6901_v14  ;;  %v6941_v8 = vld [vmem:[%s10369_s2 + $0xb64] ss:$16 sps:$4 sm:$0xff]  }
 0x2f3   : > { %4477 = vmatprep.subr.bf16.mxu1 %v6900_v40  ;;  %v6943_v39 = vld [vmem:[%s10369_s2 + $0xb60] ss:$16 sps:$4 sm:$0xff]   ;;  %v6944_v40 = vld [vmem:[%s10369_s2 + $0x944] ss:$16 sps:$4 sm:$0xff]  }
 0x2f4   : > { %v6945_v14 = vld [vmem:[%s10369_s2 + $0xb44] ss:$16 sps:$4 sm:$0xff]  }
 0x2f5   : > { %4503 = vmatpush1.bf16.msra.mxu0 %v6903_v44  ;;  %v6947_v44 = vld [vmem:[%s10369_s2 + $0xb40] ss:$16 sps:$4 sm:$0xff]  }
 0x2f6   : > { %4478 = vmatpush2.bf16.msra.mxu1 %v6902_v43  ;;  %4504 = vmatprep.subr.bf16.mxu0 %v6905_v52  ;;  %v6946_v43 = vld [vmem:[%s10369_s2 + $0x940] ss:$16 sps:$4 sm:$0xff]   ;;  %v6949_v52 = vld [vmem:[%s10369_s2 + $0xb24] ss:$16 sps:$4 sm:$0xff]  }
 0x2f7   : > { %4479 = vmatprep.subr.bf16.mxu1 %v6904_v45  ;;  %v6948_v45 = vld [vmem:[%s10369_s2 + $0x924] ss:$16 sps:$4 sm:$0xff]  }
 0x2f9   : > { %4505 = vmatpush1.bf16.msra.mxu0 %v6907_v50  ;;  %v6951_v50 = vld [vmem:[%s10369_s2 + $0xb20] ss:$16 sps:$4 sm:$0xff]  }
 0x2fa   : > { %4480 = vmatpush2.bf16.msra.mxu1 %v6906_v49  ;;  %4506 = vmatprep.subr.bf16.mxu0 %v6909_v53  ;;  %v6950_v49 = vld [vmem:[%s10369_s2 + $0x920] ss:$16 sps:$4 sm:$0xff]   ;;  %v6953_v53 = vld [vmem:[%s10369_s2 + $0xb04] ss:$16 sps:$4 sm:$0xff]  }
 0x2fb   : > { %4481 = vmatprep.subr.bf16.mxu1 %v6908_v9  ;;  %v6952_v9 = vld [vmem:[%s10369_s2 + $0x904] ss:$16 sps:$4 sm:$0xff]  }
 0x2fd   : > { %4507 = vmatpush1.bf16.msra.mxu0 %v6911_v62  ;;  %v6955_v62 = vld [vmem:[%s10369_s2 + $0xb00] ss:$16 sps:$4 sm:$0xff]  }
 0x2fe   : > { %4482 = vmatpush2.bf16.msra.mxu1 %v6910_v18  ;;  %4508 = vmatprep.subr.bf16.mxu0 %v6913_v22  ;;  %v6954_v18 = vld [vmem:[%s10369_s2 + $0x900] ss:$16 sps:$4 sm:$0xff]   ;;  %v6957_v22 = vld [vmem:[%s10369_s2 + $0x9ec] ss:$16 sps:$4 sm:$0xff]  }
 0x2ff   : > { %4483 = vmatprep.subr.bf16.mxu1 %v6912_v55  ;;  %v6956_v55 = vld [vmem:[%s10369_s2 + $0xae4] ss:$16 sps:$4 sm:$0xff]  }
 0x301   : > { %4509 = vmatpush1.bf16.msra.mxu0 %v6915_v59  ;;  %v6958_v59 = vld [vmem:[%s10369_s2 + $0xae0] ss:$16 sps:$4 sm:$0xff]  }
 0x302   : > { %4484 = vmatpush2.bf16.msra.mxu1 %v6914_v56  ;;  %4510 = vmatprep.subr.bf16.mxu0 %v6917_v32 }
 0x303   : > { %4485 = vmatprep.subr.bf16.mxu1 %v6916_v47  ;;  %v6959_v47 = vld [vmem:[%s10369_s2 + $0x9e8] ss:$16 sps:$4 sm:$0xff]  }
 0x305   : > { %4511 = vmatpush1.bf16.msra.mxu0 %v6919_v61  ;;  %v6961_v61 = vld [vmem:[%s10369_s2 + $0x9cc] ss:$16 sps:$4 sm:$0xff]  }
 0x306   : > { %4486 = vmatpush2.bf16.msra.mxu1 %v6918_v60  ;;  %4512 = vmatprep.subr.bf16.mxu0 %v6921_v34  ;;  %v6960_v60 = vld [vmem:[%s10369_s2 + $0xac4] ss:$16 sps:$4 sm:$0xff]   ;;  %v6962_v34 = vld [vmem:[%s10369_s2 + $0xac0] ss:$16 sps:$4 sm:$0xff]  }
 0x307   : > { %4487 = vmatprep.subr.bf16.mxu1 %v6920_v63 }
 0x309   : > { %4513 = vmatpush1.bf16.msra.mxu0 %v6923_v1 }
 0x30a   : > { %4488 = vmatpush2.bf16.msra.mxu1 %v6922_v0  ;;  %4543 = vmatprep.subr.bf16.mxu0 %v6924_v5  ;;  %v6963_v0 = vld [vmem:[%s10369_s2 + $0x9c8] ss:$16 sps:$4 sm:$0xff]   ;;  %v6964_v5 = vld [vmem:[%s10369_s2 + $0xaa4] ss:$16 sps:$4 sm:$0xff]  }
 0x30b   : > { %4584 = vmatprep.subr.bf16.mxu1 %v6925_v36  ;;  %v6966_v36 = vld [vmem:[%s10369_s2 + $0xaa0] ss:$16 sps:$4 sm:$0xff]  }
 0x30c   : > { %v4204_v11 = vpop.f32.mrf.mxu0  ;;  %4531 = vmatmul.mubr.bf16.vlgmr.msra.gmra.mxu0 %v8225_v19  ;;  %v6929_v19 = vld [vmem:[%s10369_s2 + $0xbc4] ss:$16 sps:$4 sm:$0xff]  }
 0x30d   : > { %v4163_v7 = vpop.f32.mrf.mxu1  ;;  %4490 = vmatmul.mubr.bf16.vlgmr.msra.gmra.mxu1 %v8331_v3  ;;  %4544 = vmatpush1.bf16.msra.mxu0 %v6926_v35  ;;  %v6928_v3 = vld [vmem:[%s10369_s2 + $0x9c4] ss:$16 sps:$4 sm:$0xff]   ;;  %v6969_v35 = vld [vmem:[%s10369_s2 + $0x98c] ss:$16 sps:$4 sm:$0xff]  }
 0x30e   : > { %v9712_v12 = vadd.f32 %v4204_v11, %v4163_v7  ;;  %4585 = vmatpush1.bf16.msra.mxu1 %v6927_v51  ;;  %v4206_v16 = vpop.f32.mrf.mxu0  ;;  %4545 = vmatprep.subr.bf16.mxu0 %v6928_v3  ;;  %v6967_v7 = vld [vmem:[%s10369_s2 + $0x9a8] ss:$16 sps:$4 sm:$0xff]   ;;  %v6968_v11 = vld [vmem:[%s10369_s2 + $0xa84] ss:$16 sps:$4 sm:$0xff]   ;;  %v6970_v51 = vld [vmem:[%s10369_s2 + $0xa80] ss:$16 sps:$4 sm:$0xff]  }
 0x30f   : > { %v4165_v42 = vpop.f32.mrf.mxu1  ;;  %4586 = vmatprep.subr.bf16.mxu1 %v6929_v19  ;;  %4616 = vmatprep.mubr.bf16.mxu1 %v7124_v2  ;;  %v6973_v3 = vld [vmem:[%s10369_s2 + $0x96c] ss:$16 sps:$4 sm:$0xff]   ;;  %v6974_v19 = vld [vmem:[%s10369_s2 + $0xa60] ss:$16 sps:$4 sm:$0xff]  }
 0x310   : > { %v9726_v17 = vadd.f32 %v4206_v16, %v4165_v42  ;;  %4575 = vmatprep.mubr.bf16.mxu0 %v8456_v58  ;;  %v4208_v57 = vpop.f32.mrf.mxu0  ;;  %v6971_v42 = vld [vmem:[%s10369_s2 + $0x988] ss:$16 sps:$4 sm:$0xff]   ;;  %v6972_v16 = vld [vmem:[%s10369_s2 + $0xa64] ss:$16 sps:$4 sm:$0xff]  }
 0x311   : > { %v4167_v41 = vpop.f32.mrf.mxu1  ;;  %4546 = vmatpush1.bf16.msra.mxu0 %v6930_v48  ;;  %v6976_v57 = vld [vmem:[%s10369_s2 + $0xa44] ss:$16 sps:$4 sm:$0xff]   ;;  %v6977_v48 = vld [vmem:[%s10369_s2 + $0x94c] ss:$16 sps:$4 sm:$0xff]  }
 0x312   : > { %4587 = vmatpush1.bf16.msra.mxu1 %v6931_v20  ;;  %v4209_v23 = vpop.f32.mrf.mxu0  ;;  %4547 = vmatprep.subr.bf16.mxu0 %v6932_v24  ;;  %v6975_v41 = vld [vmem:[%s10369_s2 + $0x968] ss:$16 sps:$4 sm:$0xff]   ;;  %v6978_v20 = vld [vmem:[%s10369_s2 + $0xa40] ss:$16 sps:$4 sm:$0xff]   ;;  %v6981_v24 = vld [vmem:[%s10369_s2 + $0x92c] ss:$16 sps:$4 sm:$0xff]  }
 0x313   : > { %v4168_v21 = vpop.f32.mrf.mxu1  ;;  %4588 = vmatprep.subr.bf16.mxu1 %v6933_v54  ;;  %v6980_v23 = vld [vmem:[%s10369_s2 + $0xa24] ss:$16 sps:$4 sm:$0xff]   ;;  %v6982_v54 = vld [vmem:[%s10369_s2 + $0xa20] ss:$16 sps:$4 sm:$0xff]  }
 0x314   : > { %v6979_v21 = vld [vmem:[%s10369_s2 + $0x948] ss:$16 sps:$4 sm:$0xff]  }
 0x315   : > { %4548 = vmatpush1.bf16.msra.mxu0 %v6934_v26  ;;  %v6983_v26 = vld [vmem:[%s10369_s2 + $0x928] ss:$16 sps:$4 sm:$0xff]  }
 0x316   : > { %4589 = vmatpush1.bf16.msra.mxu1 %v6935_v4  ;;  %4549 = vmatprep.subr.bf16.mxu0 %v6936_v29  ;;  %v6984_v4 = vld [vmem:[%s10369_s2 + $0xa04] ss:$16 sps:$4 sm:$0xff]   ;;  %v6985_v29 = vld [vmem:[%s10369_s2 + $0x90c] ss:$16 sps:$4 sm:$0xff]  }
 0x317   : > { %4590 = vmatprep.subr.bf16.mxu1 %v6937_v10  ;;  %v6986_v10 = vld [vmem:[%s10369_s2 + $0xa00] ss:$16 sps:$4 sm:$0xff]  }
 0x319   : > { %4550 = vmatpush1.bf16.msra.mxu0 %v6938_v30  ;;  %v6987_v30 = vld [vmem:[%s10369_s2 + $0x908] ss:$16 sps:$4 sm:$0xff]  }
 0x31a   : > { %4591 = vmatpush1.bf16.msra.mxu1 %v6939_v6  ;;  %4551 = vmatprep.subr.bf16.mxu0 %v6940_v37  ;;  %v6988_v6 = vld [vmem:[%s10369_s2 + $0xaec] ss:$16 sps:$4 sm:$0xff]  }
 0x31b   : > { %4592 = vmatprep.subr.bf16.mxu1 %v6941_v8  ;;  %v6989_v37 = vld [vmem:[%s10369_s2 + $0xbec] ss:$16 sps:$4 sm:$0xff]  }
 0x31d   : > { %4552 = vmatpush1.bf16.msra.mxu0 %v6942_v38 }
 0x31e   : > { %4593 = vmatpush1.bf16.msra.mxu1 %v6943_v39  ;;  %4553 = vmatprep.subr.bf16.mxu0 %v6944_v40  ;;  %v6990_v39 = vld [vmem:[%s10369_s2 + $0xae8] ss:$16 sps:$4 sm:$0xff]  }
 0x31f   : > { %4594 = vmatprep.subr.bf16.mxu1 %v6945_v14  ;;  %v6991_v40 = vld [vmem:[%s10369_s2 + $0xbe8] ss:$16 sps:$4 sm:$0xff]  }
 0x321   : > { %4554 = vmatpush1.bf16.msra.mxu0 %v6946_v43  ;;  %v6992_v43 = vld [vmem:[%s10369_s2 + $0xacc] ss:$16 sps:$4 sm:$0xff]  }
 0x322   : > { %4595 = vmatpush1.bf16.msra.mxu1 %v6947_v44  ;;  %4555 = vmatprep.subr.bf16.mxu0 %v6948_v45 }
 0x323   : > { %4596 = vmatprep.subr.bf16.mxu1 %v6949_v52 }
 0x325   : > { %4556 = vmatpush1.bf16.msra.mxu0 %v6950_v49 }
 0x326   : > { %4597 = vmatpush1.bf16.msra.mxu1 %v6951_v50  ;;  %4557 = vmatprep.subr.bf16.mxu0 %v6952_v9  ;;  %v6994_v50 = vld [vmem:[%s10369_s2 + $0xac8] ss:$16 sps:$4 sm:$0xff]  }
 0x327   : > { %4598 = vmatprep.subr.bf16.mxu1 %v6953_v53  ;;  %v6995_v9 = vld [vmem:[%s10369_s2 + $0xbc8] ss:$16 sps:$4 sm:$0xff]  }
 0x329   : > { %4558 = vmatpush1.bf16.msra.mxu0 %v6954_v18  ;;  %v6997_v18 = vld [vmem:[%s10369_s2 + $0xbac] ss:$16 sps:$4 sm:$0xff]  }
 0x32a   : > { %4599 = vmatpush1.bf16.msra.mxu1 %v6955_v62  ;;  %4559 = vmatprep.subr.bf16.mxu0 %v6956_v55  ;;  %v6998_v62 = vld [vmem:[%s10369_s2 + $0xaa8] ss:$16 sps:$4 sm:$0xff]  }
 0x32b   : > { %4625 = vmatprep.subr.bf16.mxu1 %v6957_v22  ;;  %v6999_v55 = vld [vmem:[%s10369_s2 + $0xba8] ss:$16 sps:$4 sm:$0xff]   ;;  %v7000_v22 = vld [vmem:[%s10369_s2 + $0xa8c] ss:$16 sps:$4 sm:$0xff]  }
 0x32d   : > { %v9814_v56 = vpop.f32.mrf.mxu1  ;;  %4617 = vmatmul.mubr.bf16.vlgmr.msra.gmra.mxu1 %v8553_v46  ;;  %4560 = vmatpush2.bf16.msra.mxu0 %v6958_v59  ;;  %v7002_v59 = vld [vmem:[%s10369_s2 + $0xa88] ss:$16 sps:$4 sm:$0xff]  }
 0x32e   : > { %4626 = vmatpush1.bf16.msra.mxu1 %v6959_v47  ;;  %4561 = vmatprep.subr.bf16.mxu0 %v6960_v60  ;;  %v7003_v47 = vld [vmem:[%s10369_s2 + $0xb88] ss:$16 sps:$4 sm:$0xff]   ;;  %v7005_v60 = vld [vmem:[%s10369_s2 + $0xb6c] ss:$16 sps:$4 sm:$0xff]  }
 0x32f   : > { %v9823_v32 = vpop.f32.mrf.mxu1  ;;  %4627 = vmatprep.subr.bf16.mxu1 %v6961_v61  ;;  %4657 = vmatprep.mubr.bf16.mxu1 %v8456_v58  ;;  %v6965_v58 = vld [vmem:[%s10369_s2 + $0x9ac] ss:$16 sps:$4 sm:$0xff]   ;;  %v7006_v61 = vld [vmem:[%s10369_s2 + $0xa68] ss:$16 sps:$4 sm:$0xff]  }
 0x331   : > { %v4290_v63 = vpop.f32.mrf.mxu1  ;;  %4562 = vmatpush2.bf16.msra.mxu0 %v6962_v34  ;;  %v7008_v34 = vld [vmem:[%s10369_s2 + $0xa4c] ss:$16 sps:$4 sm:$0xff]  }
 0x332   : > { %4628 = vmatpush1.bf16.msra.mxu1 %v6963_v0  ;;  %4563 = vmatprep.subr.bf16.mxu0 %v6964_v5  ;;  %v7007_v63 = vld [vmem:[%s10369_s2 + $0xb68] ss:$16 sps:$4 sm:$0xff]   ;;  %v7009_v0 = vld [vmem:[%s10369_s2 + $0xb4c] ss:$16 sps:$4 sm:$0xff]  }
 0x333   : > { %v4291_v1 = vpop.f32.mrf.mxu1  ;;  %4629 = vmatprep.subr.bf16.mxu1 %v6965_v58  ;;  %v7011_v5 = vld [vmem:[%s10369_s2 + $0xb48] ss:$16 sps:$4 sm:$0xff]   ;;  %v7012_v58 = vld [vmem:[%s10369_s2 + $0xa2c] ss:$16 sps:$4 sm:$0xff]  }
 0x334   : > { %v7010_v1 = vld [vmem:[%s10369_s2 + $0xa48] ss:$16 sps:$4 sm:$0xff]  }
 0x335   : > { %4564 = vmatpush2.bf16.msra.mxu0 %v6966_v36  ;;  %v7013_v36 = vld [vmem:[%s10369_s2 + $0xb2c] ss:$16 sps:$4 sm:$0xff]  }
 0x336   : > { %4630 = vmatpush1.bf16.msra.mxu1 %v6967_v7  ;;  %4565 = vmatprep.subr.bf16.mxu0 %v6968_v11  ;;  %v9999_v7 = vld [vmem:[%s7249_s24] sm:$0xee]  ;;  %v7014_v11 = vld [vmem:[%s10369_s2 + $0xa28] ss:$16 sps:$4 sm:$0xff]  }
 0x337   : > { %4631 = vmatprep.subr.bf16.mxu1 %v6969_v35  ;;  %v7015_v35 = vld [vmem:[%s10369_s2 + $0xb28] ss:$16 sps:$4 sm:$0xff]  }
 0x339   : > { %4566 = vmatpush2.bf16.msra.mxu0 %v6970_v51  ;;  %v7016_v51 = vld [vmem:[%s10369_s2 + $0xa0c] ss:$16 sps:$4 sm:$0xff]  }
 0x33a   : > { %4632 = vmatpush1.bf16.msra.mxu1 %v6971_v42  ;;  %4567 = vmatprep.subr.bf16.mxu0 %v6972_v16  ;;  %v7017_v42 = vld [vmem:[%s10369_s2 + $0xb0c] ss:$16 sps:$4 sm:$0xff]   ;;  %v5880_v16 = vcombine.high %v9999_v7, %v9999_v7 }
 0x33b   : > { %4633 = vmatprep.subr.bf16.mxu1 %v6973_v3  ;;  %v7018_v3 = vld [vmem:[%s10369_s2 + $0xa08] ss:$16 sps:$4 sm:$0xff]  }
 0x33d   : > { %4568 = vmatpush2.bf16.msra.mxu0 %v6974_v19  ;;  %v7019_v19 = vld [vmem:[%s10369_s2 + $0xb08] ss:$16 sps:$4 sm:$0xff]  }
 0x33e   : > { %4634 = vmatpush1.bf16.msra.mxu1 %v6975_v41  ;;  %4569 = vmatprep.subr.bf16.mxu0 %v6976_v57  ;;  %v7020_v41 = vld [vmem:[%s10369_s2 + $0xce4] ss:$16 sps:$4 sm:$0xff]  }
 0x33f   : > { %4635 = vmatprep.subr.bf16.mxu1 %v6977_v48  ;;  %v7021_v57 = vld [vmem:[%s10369_s2 + $0xee4] ss:$16 sps:$4 sm:$0xff]   ;;  %v10027_v48 = vrot.slane %v5880_v16, 1 }
 0x340   : > { %v7056_v16 = vld [vmem:[%s10369_s2 + $0xdc4] ss:$16 sps:$4 sm:$0xff]  }
 0x341   : > { %4570 = vmatpush2.bf16.msra.mxu0 %v6978_v20 }
 0x342   : > { %4636 = vmatpush1.bf16.msra.mxu1 %v6979_v21  ;;  %4571 = vmatprep.subr.bf16.mxu0 %v6980_v23 }
 0x343   : > { %4637 = vmatprep.subr.bf16.mxu1 %v6981_v24  ;;  %v7022_v24 = vld [vmem:[%s10369_s2 + $0xce0] ss:$16 sps:$4 sm:$0xff]  }
 0x345   : > { %4572 = vmatpush2.bf16.msra.mxu0 %v6982_v54  ;;  %v7023_v54 = vld [vmem:[%s10369_s2 + $0xee0] ss:$16 sps:$4 sm:$0xff]  }
 0x346   : > { %4638 = vmatpush1.bf16.msra.mxu1 %v6983_v26  ;;  %4573 = vmatprep.subr.bf16.mxu0 %v6984_v4 }
 0x347   : > { %4639 = vmatprep.subr.bf16.mxu1 %v6985_v29 }
 0x349   : > { %4574 = vmatpush2.bf16.msra.mxu0 %v6986_v10 }
 0x34a   : > { %4640 = vmatpush1.bf16.msra.mxu1 %v6987_v30  ;;  %4666 = vmatprep.subr.bf16.mxu0 %v6989_v37  ;;  %v7026_v37 = vld [vmem:[%s10369_s2 + $0xcc0] ss:$16 sps:$4 sm:$0xff]  }
 0x34b   : > { %4641 = vmatprep.subr.bf16.mxu1 %v6988_v6 }
 0x34c   : > { %v4245_v8 = vpop.f32.mrf.mxu0  ;;  %4576 = vmatmul.mubr.bf16.vlgmr.msra.gmra.mxu0 %v8659_v31 }
 0x34d   : > { %v4246_v38 = vadd.f32 %v4245_v8, %v9608_v27  ;;  %4667 = vmatpush1.bf16.msra.mxu0 %v6991_v40  ;;  %v6993_v27 = vld [vmem:[%s10369_s2 + $0xbcc] ss:$16 sps:$4 sm:$0xff]   ;;  %4698 = vmatprep.mubr.bf16.mxu0 %v7124_v2  ;;  %v7027_v8 = vld [vmem:[%s10369_s2 + $0xec0] ss:$16 sps:$4 sm:$0xff]   ;;  %v7029_v40 = vld [vmem:[%s10369_s2 + $0xea4] ss:$16 sps:$4 sm:$0xff]  }
 0x34e   : > { %4642 = vmatpush2.bf16.msra.mxu1 %v6990_v39  ;;  %v4247_v14 = vpop.f32.mrf.mxu0  ;;  %4668 = vmatprep.subr.bf16.mxu0 %v6993_v27  ;;  %v7028_v39 = vld [vmem:[%s10369_s2 + $0xca4] ss:$16 sps:$4 sm:$0xff]  }
 0x34f   : > { %4643 = vmatprep.subr.bf16.mxu1 %v6992_v43  ;;  %v9931_v44 = vadd.f32 %v9814_v56, %v4246_v38  ;;  %v4248_v45 = vadd.f32 %v4247_v14, %v9623_v33  ;;  %v6996_v33 = vld [vmem:[%s10369_s2 + $0xaac] ss:$16 sps:$4 sm:$0xff]   ;;  %v7030_v14 = vld [vmem:[%s10369_s2 + $0xca0] ss:$16 sps:$4 sm:$0xff]   ;;  %v7032_v27 = vld [vmem:[%s10369_s2 + $0xc84] ss:$16 sps:$4 sm:$0xff]  }
 0x350   : > { %v4249_v52 = vpop.f32.mrf.mxu0  ;;  %v7001_v56 = vld [vmem:[%s10369_s2 + $0xb8c] ss:$16 sps:$4 sm:$0xff]   ;;  %v7031_v43 = vld [vmem:[%s10369_s2 + $0xea0] ss:$16 sps:$4 sm:$0xff]  }
 0x351   : > { %v9936_v49 = vadd.f32 %v9823_v32, %v4248_v45  ;;  %4669 = vmatpush1.bf16.msra.mxu0 %v6995_v9  ;;  %v7004_v32 = vld [vmem:[%s10369_s2 + $0xa6c] ss:$16 sps:$4 sm:$0xff]   ;;  %v7033_v45 = vld [vmem:[%s10369_s2 + $0xe84] ss:$16 sps:$4 sm:$0xff]   ;;  %v7034_v52 = vld [vmem:[%s10369_s2 + $0xc80] ss:$16 sps:$4 sm:$0xff]  }
 0x352   : > { %4644 = vmatpush2.bf16.msra.mxu1 %v6994_v50  ;;  %v4250_v53 = vpop.f32.mrf.mxu0  ;;  %4670 = vmatprep.subr.bf16.mxu0 %v6997_v18  ;;  %v7035_v50 = vld [vmem:[%s10369_s2 + $0xe80] ss:$16 sps:$4 sm:$0xff]   ;;  %v7036_v9 = vld [vmem:[%s10369_s2 + $0xc64] ss:$16 sps:$4 sm:$0xff]  }
 0x353   : > { %4645 = vmatprep.subr.bf16.mxu1 %v6996_v33  ;;  %v7037_v53 = vld [vmem:[%s10369_s2 + $0xe64] ss:$16 sps:$4 sm:$0xff]   ;;  %v7038_v33 = vld [vmem:[%s10369_s2 + $0xc60] ss:$16 sps:$4 sm:$0xff]  }
 0x354   : > { %v7039_v18 = vld [vmem:[%s10369_s2 + $0xe60] ss:$16 sps:$4 sm:$0xff]  }
 0x355   : > { %4671 = vmatpush1.bf16.msra.mxu0 %v6999_v55  ;;  %v7041_v55 = vld [vmem:[%s10369_s2 + $0xe44] ss:$16 sps:$4 sm:$0xff]  }
 0x356   : > { %4646 = vmatpush2.bf16.msra.mxu1 %v6998_v62  ;;  %4672 = vmatprep.subr.bf16.mxu0 %v7001_v56  ;;  %v7040_v62 = vld [vmem:[%s10369_s2 + $0xc44] ss:$16 sps:$4 sm:$0xff]   ;;  %v7043_v56 = vld [vmem:[%s10369_s2 + $0xe40] ss:$16 sps:$4 sm:$0xff]  }
 0x357   : > { %4647 = vmatprep.subr.bf16.mxu1 %v7000_v22  ;;  %v7042_v22 = vld [vmem:[%s10369_s2 + $0xc40] ss:$16 sps:$4 sm:$0xff]  }
 0x359   : > { %4673 = vmatpush1.bf16.msra.mxu0 %v7003_v47  ;;  %v7045_v47 = vld [vmem:[%s10369_s2 + $0xe24] ss:$16 sps:$4 sm:$0xff]  }
 0x35a   : > { %4648 = vmatpush2.bf16.msra.mxu1 %v7002_v59  ;;  %4674 = vmatprep.subr.bf16.mxu0 %v7005_v60  ;;  %v7044_v59 = vld [vmem:[%s10369_s2 + $0xc24] ss:$16 sps:$4 sm:$0xff]   ;;  %v7046_v60 = vld [vmem:[%s10369_s2 + $0xc20] ss:$16 sps:$4 sm:$0xff]  }
 0x35b   : > { %4649 = vmatprep.subr.bf16.mxu1 %v7004_v32  ;;  %v10112_v32 = vld [vmem:[%s7249_s24 + $0x8] ss:$0 sps:$4 sm:$0xee]  }
 0x35d   : > { %4675 = vmatpush1.bf16.msra.mxu0 %v7007_v63  ;;  %v7048_v63 = vld [vmem:[%s10369_s2 + $0xc04] ss:$16 sps:$4 sm:$0xff]  }
 0x35e   : > { %4650 = vmatpush2.bf16.msra.mxu1 %v7006_v61  ;;  %4676 = vmatprep.subr.bf16.mxu0 %v7009_v0  ;;  %v7047_v61 = vld [vmem:[%s10369_s2 + $0xe20] ss:$16 sps:$4 sm:$0xff]   ;;  %v4721_v0 = vrot.slane %v10112_v32, 1 }
 0x35f   : > { %4651 = vmatprep.subr.bf16.mxu1 %v7008_v34  ;;  %v7049_v34 = vld [vmem:[%s10369_s2 + $0xe04] ss:$16 sps:$4 sm:$0xff]  }
 0x361   : > { %4677 = vmatpush1.bf16.msra.mxu0 %v7011_v5  ;;  %v7051_v5 = vld [vmem:[%s10369_s2 + $0xe00] ss:$16 sps:$4 sm:$0xff]  }
 0x362   : > { %4652 = vmatpush2.bf16.msra.mxu1 %v7010_v1  ;;  %4678 = vmatprep.subr.bf16.mxu0 %v7013_v36  ;;  %v7050_v1 = vld [vmem:[%s10369_s2 + $0xc00] ss:$16 sps:$4 sm:$0xff]   ;;  %v7053_v36 = vld [vmem:[%s10369_s2 + $0xcec] ss:$16 sps:$4 sm:$0xff]  }
 0x363   : > { %4653 = vmatprep.subr.bf16.mxu1 %v7012_v58  ;;  %v7052_v58 = vld [vmem:[%s10369_s2 + $0xde4] ss:$16 sps:$4 sm:$0xff]  }
 0x365   : > { %4679 = vmatpush1.bf16.msra.mxu0 %v7015_v35  ;;  %v7054_v35 = vld [vmem:[%s10369_s2 + $0xde0] ss:$16 sps:$4 sm:$0xff]  }
 0x366   : > { %4654 = vmatpush2.bf16.msra.mxu1 %v7014_v11  ;;  %4680 = vmatprep.subr.bf16.mxu0 %v7017_v42 }
 0x367   : > { %4655 = vmatprep.subr.bf16.mxu1 %v7016_v51  ;;  %v7055_v51 = vld [vmem:[%s10369_s2 + $0xce8] ss:$16 sps:$4 sm:$0xff]  }
 0x369   : > { %4681 = vmatpush1.bf16.msra.mxu0 %v7019_v19 }
 0x36a   : > { %4656 = vmatpush2.bf16.msra.mxu1 %v7018_v3  ;;  %4725 = vmatprep.subr.bf16.mxu0 %v7020_v41  ;;  %v7057_v3 = vld [vmem:[%s10369_s2 + $0xccc] ss:$16 sps:$4 sm:$0xff]   ;;  %v7058_v41 = vld [vmem:[%s10369_s2 + $0xdc0] ss:$16 sps:$4 sm:$0xff]  }
 0x36b   : > { %4766 = vmatprep.subr.bf16.mxu1 %v7021_v57  ;;  %v7059_v57 = vld [vmem:[%s10369_s2 + $0xcc8] ss:$16 sps:$4 sm:$0xff]  }
 0x36c   : > { %v4368_v21 = vpop.f32.mrf.mxu0  ;;  %4699 = vmatmul.mubr.bf16.vlgmr.msra.gmra.mxu0 %v8553_v46  ;;  %v7025_v46 = vld [vmem:[%s10369_s2 + $0xec4] ss:$16 sps:$4 sm:$0xff]  }
 0x36d   : > { %v4327_v20 = vpop.f32.mrf.mxu1  ;;  %4658 = vmatmul.mubr.bf16.vlgmr.msra.gmra.mxu1 %v8659_v31  ;;  %4726 = vmatpush1.bf16.msra.mxu0 %v7022_v24  ;;  %v7024_v31 = vld [vmem:[%s10369_s2 + $0xcc4] ss:$16 sps:$4 sm:$0xff]   ;;  %v7063_v24 = vld [vmem:[%s10369_s2 + $0xca8] ss:$16 sps:$4 sm:$0xff]  }
 0x36e   : > { %v4328_v23 = vadd.f32 %v4327_v20, %v9712_v12  ;;  %4767 = vmatpush1.bf16.msra.mxu1 %v7023_v54  ;;  %v4370_v4 = vpop.f32.mrf.mxu0  ;;  %4727 = vmatprep.subr.bf16.mxu0 %v7024_v31  ;;  %v7064_v54 = vld [vmem:[%s10369_s2 + $0xd84] ss:$16 sps:$4 sm:$0xff]   ;;  %v7067_v31 = vld [vmem:[%s10369_s2 + $0xc88] ss:$16 sps:$4 sm:$0xff]  }
 0x36f   : > { %v4329_v26 = vpop.f32.mrf.mxu1  ;;  %4768 = vmatprep.subr.bf16.mxu1 %v7025_v46  ;;  %4798 = vmatprep.mubr.bf16.mxu1 %v7124_v2  ;;  %v7068_v46 = vld [vmem:[%s10369_s2 + $0xd64] ss:$16 sps:$4 sm:$0xff]  }
 0x370   : > { %v10044_v12 = vadd.f32 %v4368_v21, %v4328_v23  ;;  %v4330_v29 = vadd.f32 %v4329_v26, %v9726_v17  ;;  %4757 = vmatprep.mubr.bf16.mxu0 %v10027_v48  ;;  %v4372_v30 = vpop.f32.mrf.mxu0  ;;  %v7060_v21 = vld [vmem:[%s10369_s2 + $0xda4] ss:$16 sps:$4 sm:$0xff]   ;;  %v7062_v23 = vld [vmem:[%s10369_s2 + $0xda0] ss:$16 sps:$4 sm:$0xff]   ;;  %v7065_v26 = vld [vmem:[%s10369_s2 + $0xc8c] ss:$16 sps:$4 sm:$0xff]  }
 0x371   : > { %v4331_v10 = vpop.f32.mrf.mxu1  ;;  %4728 = vmatpush1.bf16.msra.mxu0 %v7026_v37  ;;  %v7071_v30 = vld [vmem:[%s10369_s2 + $0xc68] ss:$16 sps:$4 sm:$0xff]   ;;  %v7072_v37 = vld [vmem:[%s10369_s2 + $0xd44] ss:$16 sps:$4 sm:$0xff]  }
 0x372   : > { %v10049_v6 = vadd.f32 %v4370_v4, %v4330_v29  ;;  %4769 = vmatpush1.bf16.msra.mxu1 %v7027_v8  ;;  %v4373_v17 = vpop.f32.mrf.mxu0  ;;  %4729 = vmatprep.subr.bf16.mxu0 %v7028_v39  ;;  %v7066_v4 = vld [vmem:[%s10369_s2 + $0xd80] ss:$16 sps:$4 sm:$0xff]   ;;  %v7069_v29 = vld [vmem:[%s10369_s2 + $0xc6c] ss:$16 sps:$4 sm:$0xff]   ;;  %v7076_v39 = vld [vmem:[%s10369_s2 + $0xd24] ss:$16 sps:$4 sm:$0xff]  }
 0x373   : > { %v4332_v38 = vpop.f32.mrf.mxu1  ;;  %4770 = vmatprep.subr.bf16.mxu1 %v7029_v40  ;;  %v7070_v10 = vld [vmem:[%s10369_s2 + $0xd60] ss:$16 sps:$4 sm:$0xff]   ;;  %v7073_v8 = vld [vmem:[%s10369_s2 + $0xc4c] ss:$16 sps:$4 sm:$0xff]   ;;  %v7075_v17 = vld [vmem:[%s10369_s2 + $0xc48] ss:$16 sps:$4 sm:$0xff]  }
 0x374   : > { %v7074_v38 = vld [vmem:[%s10369_s2 + $0xd40] ss:$16 sps:$4 sm:$0xff]   ;;  %v7077_v40 = vld [vmem:[%s10369_s2 + $0xc2c] ss:$16 sps:$4 sm:$0xff]  }
 0x375   : > { %4730 = vmatpush1.bf16.msra.mxu0 %v7030_v14  ;;  %v5879_v14 = vcombine.low %v9999_v7, %v9999_v7 }
 0x376   : > { %4771 = vmatpush1.bf16.msra.mxu1 %v7031_v43  ;;  %4731 = vmatprep.subr.bf16.mxu0 %v7032_v27  ;;  %v7078_v43 = vld [vmem:[%s10369_s2 + $0xd20] ss:$16 sps:$4 sm:$0xff]   ;;  %v7079_v27 = vld [vmem:[%s10369_s2 + $0xc28] ss:$16 sps:$4 sm:$0xff]  }
 0x377   : > { %4772 = vmatprep.subr.bf16.mxu1 %v7033_v45  ;;  %v7080_v45 = vld [vmem:[%s10369_s2 + $0xd04] ss:$16 sps:$4 sm:$0xff]   ;;  %v10232_v7 = vrot.slane %v5879_v14, 1 }
 0x379   : > { %4732 = vmatpush1.bf16.msra.mxu0 %v7034_v52  ;;  %v7081_v52 = vld [vmem:[%s10369_s2 + $0xc0c] ss:$16 sps:$4 sm:$0xff]  }
 0x37a   : > { %4773 = vmatpush1.bf16.msra.mxu1 %v7035_v50  ;;  %4733 = vmatprep.subr.bf16.mxu0 %v7036_v9  ;;  %v7082_v50 = vld [vmem:[%s10369_s2 + $0xd00] ss:$16 sps:$4 sm:$0xff]   ;;  %v7083_v9 = vld [vmem:[%s10369_s2 + $0xc08] ss:$16 sps:$4 sm:$0xff]  }
 0x37b   : > { %4774 = vmatprep.subr.bf16.mxu1 %v7037_v53  ;;  %v7084_v53 = vld [vmem:[%s10369_s2 + $0xdec] ss:$16 sps:$4 sm:$0xff]  }
 0x37d   : > { %4734 = vmatpush1.bf16.msra.mxu0 %v7038_v33  ;;  %v7085_v33 = vld [vmem:[%s10369_s2 + $0xeec] ss:$16 sps:$4 sm:$0xff]  }
 0x37e   : > { %4775 = vmatpush1.bf16.msra.mxu1 %v7039_v18  ;;  %4735 = vmatprep.subr.bf16.mxu0 %v7040_v62 }
 0x37f   : > { %4776 = vmatprep.subr.bf16.mxu1 %v7041_v55  ;;  %v7086_v55 = vld [vmem:[%s10369_s2 + $0xde8] ss:$16 sps:$4 sm:$0xff]  }
 0x381   : > { %4736 = vmatpush1.bf16.msra.mxu0 %v7042_v22  ;;  %v7087_v22 = vld [vmem:[%s10369_s2 + $0xee8] ss:$16 sps:$4 sm:$0xff]  }
 0x382   : > { %4777 = vmatpush1.bf16.msra.mxu1 %v7043_v56  ;;  %4737 = vmatprep.subr.bf16.mxu0 %v7044_v59  ;;  %v7088_v59 = vld [vmem:[%s10369_s2 + $0xdcc] ss:$16 sps:$4 sm:$0xff]  }
 0x383   : > { %4778 = vmatprep.subr.bf16.mxu1 %v7045_v47  ;;  %v7089_v47 = vld [vmem:[%s10369_s2 + $0xecc] ss:$16 sps:$4 sm:$0xff]  }
 0x385   : > { %4738 = vmatpush1.bf16.msra.mxu0 %v7046_v60 }
 0x386   : > { %4779 = vmatpush1.bf16.msra.mxu1 %v7047_v61  ;;  %4739 = vmatprep.subr.bf16.mxu0 %v7048_v63 }
 0x387   : > { %4780 = vmatprep.subr.bf16.mxu1 %v7049_v34 }
 0x389   : > { %4740 = vmatpush1.bf16.msra.mxu0 %v7050_v1  ;;  %v7090_v1 = vld [vmem:[%s10369_s2 + $0xdc8] ss:$16 sps:$4 sm:$0xff]  }
 0x38a   : > { %4781 = vmatpush1.bf16.msra.mxu1 %v7051_v5  ;;  %4741 = vmatprep.subr.bf16.mxu0 %v7052_v58  ;;  %v7091_v5 = vld [vmem:[%s10369_s2 + $0xec8] ss:$16 sps:$4 sm:$0xff]   ;;  %v7092_v58 = vld [vmem:[%s10369_s2 + $0xdac] ss:$16 sps:$4 sm:$0xff]  }
 0x38b   : > { %4807 = vmatprep.subr.bf16.mxu1 %v7053_v36  ;;  %v7095_v36 = vld [vmem:[%s10369_s2 + $0xea8] ss:$16 sps:$4 sm:$0xff]  }
 0x38d   : > { %v10139_v11 = vpop.f32.mrf.mxu1  ;;  %4799 = vmatmul.mubr.bf16.vlgmr.msra.gmra.mxu1 %v4721_v0  ;;  %4742 = vmatpush2.bf16.msra.mxu0 %v7054_v35  ;;  %v7097_v35 = vld [vmem:[%s10369_s2 + $0xe8c] ss:$16 sps:$4 sm:$0xff]  }
 0x38e   : > { %4808 = vmatpush1.bf16.msra.mxu1 %v7055_v51  ;;  %4743 = vmatprep.subr.bf16.mxu0 %v7056_v16  ;;  %v7098_v51 = vld [vmem:[%s10369_s2 + $0xd88] ss:$16 sps:$4 sm:$0xff]   ;;  %v7100_v16 = vld [vmem:[%s10369_s2 + $0xd6c] ss:$16 sps:$4 sm:$0xff]  }
 0x38f   : > { %v10149_v42 = vpop.f32.mrf.mxu1  ;;  %4809 = vmatprep.subr.bf16.mxu1 %v7057_v3  ;;  %4839 = vmatprep.mubr.bf16.mxu1 %v10027_v48  ;;  %v7061_v48 = vld [vmem:[%s10369_s2 + $0xcac] ss:$16 sps:$4 sm:$0xff]  }
 0x390   : > { %v7101_v3 = vld [vmem:[%s10369_s2 + $0xe6c] ss:$16 sps:$4 sm:$0xff]  }
 0x391   : > { %v4454_v19 = vpop.f32.mrf.mxu1  ;;  %4744 = vmatpush2.bf16.msra.mxu0 %v7058_v41  ;;  %v7103_v41 = vld [vmem:[%s10369_s2 + $0xe68] ss:$16 sps:$4 sm:$0xff]  }
 0x392   : > { %4810 = vmatpush1.bf16.msra.mxu1 %v7059_v57  ;;  %4745 = vmatprep.subr.bf16.mxu0 %v7060_v21  ;;  %v7102_v19 = vld [vmem:[%s10369_s2 + $0xd68] ss:$16 sps:$4 sm:$0xff]   ;;  %v7104_v57 = vld [vmem:[%s10369_s2 + $0xd4c] ss:$16 sps:$4 sm:$0xff]  }
 0x393   : > { %v4455_v20 = vpop.f32.mrf.mxu1  ;;  %4811 = vmatprep.subr.bf16.mxu1 %v7061_v48  ;;  %v7106_v21 = vld [vmem:[%s10369_s2 + $0xd48] ss:$16 sps:$4 sm:$0xff]  }
 0x394   : > { %v7105_v20 = vld [vmem:[%s10369_s2 + $0xe4c] ss:$16 sps:$4 sm:$0xff]   ;;  %v7107_v48 = vld [vmem:[%s10369_s2 + $0xe48] ss:$16 sps:$4 sm:$0xff]  }
 0x395   : > { %4746 = vmatpush2.bf16.msra.mxu0 %v7062_v23  ;;  %v7108_v23 = vld [vmem:[%s10369_s2 + $0xd2c] ss:$16 sps:$4 sm:$0xff]  }
 0x396   : > { %4812 = vmatpush1.bf16.msra.mxu1 %v7063_v24  ;;  %4747 = vmatprep.subr.bf16.mxu0 %v7064_v54  ;;  %v7109_v24 = vld [vmem:[%s10369_s2 + $0xe2c] ss:$16 sps:$4 sm:$0xff]   ;;  %v7110_v54 = vld [vmem:[%s10369_s2 + $0xd28] ss:$16 sps:$4 sm:$0xff]  }
 0x397   : > { %4813 = vmatprep.subr.bf16.mxu1 %v7065_v26  ;;  %v7111_v26 = vld [vmem:[%s10369_s2 + $0xe28] ss:$16 sps:$4 sm:$0xff]  }
 0x399   : > { %4748 = vmatpush2.bf16.msra.mxu0 %v7066_v4  ;;  %v7112_v4 = vld [vmem:[%s10369_s2 + $0xd0c] ss:$16 sps:$4 sm:$0xff]  }
 0x39a   : > { %4814 = vmatpush1.bf16.msra.mxu1 %v7067_v31  ;;  %4749 = vmatprep.subr.bf16.mxu0 %v7068_v46  ;;  %v7113_v31 = vld [vmem:[%s10369_s2 + $0xe0c] ss:$16 sps:$4 sm:$0xff]   ;;  %v7114_v46 = vld [vmem:[%s10369_s2 + $0xd08] ss:$16 sps:$4 sm:$0xff]  }
 0x39b   : > { %4815 = vmatprep.subr.bf16.mxu1 %v7069_v29  ;;  %v7115_v29 = vld [vmem:[%s10369_s2 + $0xe08] ss:$16 sps:$4 sm:$0xff]  }
 0x39d   : > { %4750 = vmatpush2.bf16.msra.mxu0 %v7070_v10 }
 0x39e   : > { %4816 = vmatpush1.bf16.msra.mxu1 %v7071_v30  ;;  %4751 = vmatprep.subr.bf16.mxu0 %v7072_v37 }
 0x39f   : > { %4817 = vmatprep.subr.bf16.mxu1 %v7073_v8 }
 0x3a1   : > { %4752 = vmatpush2.bf16.msra.mxu0 %v7074_v38 }
 0x3a2   : > { %4818 = vmatpush1.bf16.msra.mxu1 %v7075_v17  ;;  %4753 = vmatprep.subr.bf16.mxu0 %v7076_v39 }
 0x3a3   : > { %4819 = vmatprep.subr.bf16.mxu1 %v7077_v40 }
 0x3a5   : > { %4754 = vmatpush2.bf16.msra.mxu0 %v7078_v43 }
 0x3a6   : > { %4820 = vmatpush1.bf16.msra.mxu1 %v7079_v27  ;;  %4755 = vmatprep.subr.bf16.mxu0 %v7080_v45 }
 0x3a7   : > { %4821 = vmatprep.subr.bf16.mxu1 %v7081_v52 }
 0x3a9   : > { %4756 = vmatpush2.bf16.msra.mxu0 %v7082_v50 }
 0x3aa   : > { %4822 = vmatpush1.bf16.msra.mxu1 %v7083_v9  ;;  %4848 = vmatprep.subr.bf16.mxu0 %v7085_v33 }
 0x3ab   : > { %4823 = vmatprep.subr.bf16.mxu1 %v7084_v53 }
 0x3ac   : > { %v4409_v18 = vpop.f32.mrf.mxu0  ;;  %4758 = vmatmul.mubr.bf16.vlgmr.msra.gmra.mxu0 %v10232_v7 }
 0x3ad   : > { %v4451_v62 = vadd.f32 %v10139_v11, %v4409_v18  ;;  %4849 = vmatpush1.bf16.msra.mxu0 %v7087_v22  ;;  %4880 = vmatprep.mubr.bf16.mxu0 %v7124_v2  ;;  %v7093_v2 = vld [vmem:[%s10369_s2 + $0xeac] ss:$16 sps:$4 sm:$0xff]  }
 0x3ae   : > { %4824 = vmatpush2.bf16.msra.mxu1 %v7086_v55  ;;  %v4411_v56 = vpop.f32.mrf.mxu0  ;;  %4850 = vmatprep.subr.bf16.mxu0 %v7089_v47  ;;  %v7096_v11 = vld [vmem:[%s10369_s2 + $0xd8c] ss:$16 sps:$4 sm:$0xff]  }
 0x3af   : > { %4825 = vmatprep.subr.bf16.mxu1 %v7088_v59  ;;  %v10261_v60 = vadd.f32 %v4451_v62, %v9931_v44  ;;  %v4453_v61 = vadd.f32 %v10149_v42, %v4411_v56  ;;  %v7099_v42 = vld [vmem:[%s10369_s2 + $0xe88] ss:$16 sps:$4 sm:$0xff]  }
 0x3b0   : > { %v4413_v63 = vpop.f32.mrf.mxu0 }
 0x3b1   : > { %v10266_v34 = vadd.f32 %v4453_v61, %v9936_v49  ;;  %4851 = vmatpush1.bf16.msra.mxu0 %v7091_v5  ;;  %v7094_v49 = vld [vmem:[%s10369_s2 + $0xda8] ss:$16 sps:$4 sm:$0xff]  }
 0x3b2   : > { %4826 = vmatpush2.bf16.msra.mxu1 %v7090_v1  ;;  %v4414_v44 = vpop.f32.mrf.mxu0  ;;  %4852 = vmatprep.subr.bf16.mxu0 %v7093_v2 }
 0x3b3   : > { %4827 = vmatprep.subr.bf16.mxu1 %v7092_v58 }
 0x3b5   : > { %4853 = vmatpush1.bf16.msra.mxu0 %v7095_v36 }
 0x3b6   : > { %4828 = vmatpush2.bf16.msra.mxu1 %v7094_v49  ;;  %4854 = vmatprep.subr.bf16.mxu0 %v7097_v35 }
 0x3b7   : > { %4829 = vmatprep.subr.bf16.mxu1 %v7096_v11 }
 0x3b9   : > { %4855 = vmatpush1.bf16.msra.mxu0 %v7099_v42 }
 0x3ba   : > { %4830 = vmatpush2.bf16.msra.mxu1 %v7098_v51  ;;  %4856 = vmatprep.subr.bf16.mxu0 %v7101_v3 }
 0x3bb   : > { %4831 = vmatprep.subr.bf16.mxu1 %v7100_v16 }
 0x3bd   : > { %4857 = vmatpush1.bf16.msra.mxu0 %v7103_v41 }
 0x3be   : > { %4832 = vmatpush2.bf16.msra.mxu1 %v7102_v19  ;;  %4858 = vmatprep.subr.bf16.mxu0 %v7105_v20 }
 0x3bf   : > { %4833 = vmatprep.subr.bf16.mxu1 %v7104_v57 }
 0x3c1   : > { %4859 = vmatpush1.bf16.msra.mxu0 %v7107_v48 }
 0x3c2   : > { %4834 = vmatpush2.bf16.msra.mxu1 %v7106_v21  ;;  %4860 = vmatprep.subr.bf16.mxu0 %v7109_v24  ;;  %v4901_v21 = vlaneseq }
 0x3c3   : > { %4835 = vmatprep.subr.bf16.mxu1 %v7108_v23 }
 0x3c4   : > { %v4902_v48 = vshrl.u32 %v4901_v21, 7 }
 0x3c5   : > { %4861 = vmatpush1.bf16.msra.mxu0 %v7111_v26 }
 0x3c6   : > { %4836 = vmatpush2.bf16.msra.mxu1 %v7110_v54  ;;  %4862 = vmatprep.subr.bf16.mxu0 %v7113_v31  ;;  %v4903_v26 = vsub.s32 0, %v4902_v48 }
 0x3c7   : > { %4837 = vmatprep.subr.bf16.mxu1 %v7112_v4  ;;  %v4899_v4 = vld [vmem:[%s10370_s3] sm:$0x3] }
 0x3c9   : > { %4863 = vmatpush1.bf16.msra.mxu0 %v7115_v29 }
 0x3ca   : > { %4838 = vmatpush2.bf16.msra.mxu1 %v7114_v46 }
 0x3cc   : > { %v4532_v30 = vpop.f32.mrf.mxu0  ;;  %4881 = vmatmul.mubr.bf16.vlgmr.msra.gmra.mxu0 %v4721_v0 }
 0x3cd   : > { %v4491_v10 = vpop.f32.mrf.mxu1  ;;  %4840 = vmatmul.mubr.bf16.vlgmr.msra.gmra.mxu1 %v10232_v7 }
 0x3ce   : > { %v4533_v37 = vadd.f32 %v4532_v30, %v4491_v10  ;;  %v4534_v38 = vpop.f32.mrf.mxu0 }
 0x3cf   : > { %v4493_v8 = vpop.f32.mrf.mxu1 }
 0x3d0   : > { %v4541_v17 = vadd.f32 %v4533_v37, %v10044_v12  ;;  %v4535_v39 = vadd.f32 %v4534_v38, %v4493_v8  ;;  %v4536_v14 = vpop.f32.mrf.mxu0  ;;  %v4904_v8 = vrot.slane %v4899_v4, %v4903_v26 }
 0x3d1   : > { %v4495_v40 = vpop.f32.mrf.mxu1 }
 0x3d2   : > { %v4542_v43 = vadd.f32 %v4535_v39, %v10049_v6  ;;  %v4537_v45 = vpop.f32.mrf.mxu0 }
 0x3d3   : > { %v4496_v27 = vpop.f32.mrf.mxu1 }
 0x3ed   : > { %v4618_v52 = vpop.f32.mrf.mxu1 }
 0x3ef   : > { %v4620_v50 = vpop.f32.mrf.mxu1 }
 0x3f1   : > { %v4622_v9 = vpop.f32.mrf.mxu1 }
 0x3f3   : > { %v4623_v53 = vpop.f32.mrf.mxu1 }
 0x40c   : > { %v4577_v7 = vpop.f32.mrf.mxu0 }
 0x40d   : > { %v4619_v33 = vadd.f32 %v4618_v52, %v4577_v7 }
 0x40e   : > { %v4579_v32 = vpop.f32.mrf.mxu0 }
 0x40f   : > { %v4707_v0 = vadd.f32 %v4619_v33, %v10261_v60  ;;  %v4621_v18 = vadd.f32 %v4620_v50, %v4579_v32 }
 0x410   : > { %v4581_v62 = vpop.f32.mrf.mxu0 }
 0x411   : > { %v4708_v12 = vadd.f32 %v4621_v18, %v10266_v34 }
 0x412   : > { %v4582_v55 = vpop.f32.mrf.mxu0 }
 0x42c   : > { %v4700_v56 = vpop.f32.mrf.mxu0 }
 0x42d   : > { %v4659_v22 = vpop.f32.mrf.mxu1 }
 0x42e   : > { %v4701_v59 = vadd.f32 %v4700_v56, %v4659_v22  ;;  %v4702_v47 = vpop.f32.mrf.mxu0 }
 0x42f   : > { %v4661_v6 = vpop.f32.mrf.mxu1 }
 0x430   : > { %v4709_v61 = vadd.f32 %v4701_v59, %v4541_v17  ;;  %v4703_v63 = vadd.f32 %v4702_v47, %v4661_v6  ;;  %v4704_v5 = vpop.f32.mrf.mxu0 }
 0x431   : > { %v4663_v1 = vpop.f32.mrf.mxu1 }
 0x432   : > { %v4710_v44 = vadd.f32 %v4703_v63, %v4542_v43  ;;  %v4705_v2 = vpop.f32.mrf.mxu0 }
 0x433   : > { %v4664_v58 = vpop.f32.mrf.mxu1 }
 0x44d   : > { %v4800_v49 = vpop.f32.mrf.mxu1 }
 0x44f   : > { %v4802_v36 = vpop.f32.mrf.mxu1 }
 0x451   : > { %v4804_v60 = vpop.f32.mrf.mxu1 }
 0x453   : > { %v4805_v11 = vpop.f32.mrf.mxu1 }
 0x46c   : > { %v4759_v35 = vpop.f32.mrf.mxu0 }
 0x46d   : > { %v4801_v51 = vadd.f32 %v4800_v49, %v4759_v35 }
 0x46e   : > { %v4761_v34 = vpop.f32.mrf.mxu0 }
 0x46f   : > { %v4889_v42 = vadd.f32 %v4801_v51, %v4707_v0  ;;  %v4803_v16 = vadd.f32 %v4802_v36, %v4761_v34 }
 0x470   : > { %v4763_v3 = vpop.f32.mrf.mxu0 }
 0x471   : > { %v4893_v19 = vmax.f32 %v9307_v25, %v4889_v42  ;;  %v4890_v41 = vadd.f32 %v4803_v16, %v4708_v12  ;;  %v4907_v25 = vsub.s32 1, %v4902_v48 }
 0x472   : > { %v4764_v57 = vpop.f32.mrf.mxu0 }
 0x473   : > { %v4894_v20 = vmax.f32 %v9312_v28, %v4890_v41  ;;  %v4908_v43 = vrot.slane %v4899_v4, %v4907_v25 }
 0x48c   : > { %v4882_v24 = vpop.f32.mrf.mxu0 }
 0x48d   : > { %v4841_v23 = vpop.f32.mrf.mxu1 }
 0x48e   : > { %v4883_v54 = vadd.f32 %v4882_v24, %v4841_v23  ;;  %v4884_v46 = vpop.f32.mrf.mxu0 }
 0x48f   : > { %v4843_v31 = vpop.f32.mrf.mxu1 }
 0x490   : > { %v4891_v29 = vadd.f32 %v4883_v54, %v4709_v61  ;;  %v4885_v10 = vadd.f32 %v4884_v46, %v4843_v31  ;;  %v4886_v37 = vpop.f32.mrf.mxu0 }
 0x491   : > { %v4845_v30 = vpop.f32.mrf.mxu1 }
 0x492   : > { %v4895_v28 = vmax.f32 %v9413_v13, %v4891_v29  ;;  %v4892_v38 = vadd.f32 %v4885_v10, %v4710_v44  ;;  %v4887_v39 = vpop.f32.mrf.mxu0 }
 0x493   : > { %v4846_v17 = vpop.f32.mrf.mxu1 }
 0x494   : > { %v4897_v40 = vmax.f32 %v4893_v19, %v4895_v28  ;;  %v4896_v14 = vmax.f32 %v9418_v15, %v4892_v38 }
 0x496   : > { %v4911_v27 = vadd.f32 %v4904_v8, %v4897_v40  ;;  %v4898_v45 = vmax.f32 %v4894_v20, %v4896_v14 }
 0x498   : > { %v4912_v52 = vadd.f32 %v4908_v43, %v4898_v45  ;;  %v4913_v50 = vmax.f32 %v4911_v27, 0.0 }
 0x49a   : > { %v4914_v9 = vmax.f32 %v4912_v52, 0.0 }
 0x49c   : > { %v5886_v53 = vpack.c.bf16 %v4914_v9, %v4913_v50 }
 0x49e   : > { %4923 = vst [vmem:[%s217_s19] sm:$0x77] %v5886_v53 }
 0x49f PF: > { %s14_s15 = sadd.s32 1, %s7122_s15  }
 0x4a0   : > { %p11_p4 = scmp.ge.s32.totalorder %s14_s15, 4  }
 0x4a2   :  { %13 = sbr.rel (!%p11_p4) target bundleno = 1 (0x1), region = 73 }

// kernel: cnn_forward.5
= control target key start
LH: loop header
LB: loop body
LE: loop exit
PB: predicated region body
PF: predicated region fallthrough
CT: control target
= control target key end

     0   :  { %v157_v28 = vlaneseq  ;;  %v1027_v36 = vmov 1966171168   ;;  %s1263_s0 = inlined_call_operand.vmem [shape: bf16[2,1024], index: 0, kind: input, shape index: {}]   ;;  %s1264_s1 = inlined_call_operand.vmem [shape: bf16[1024,128], index: 1, kind: input, shape index: {}]   ;;  %s1265_s2 = inlined_call_operand.vmem [shape: f32[1,128], index: 2, kind: input, shape index: {}]   ;;  %s1266_s3 = inlined_call_operand.hbm [shape: f32[2,128], index: 3, kind: output, shape index: {}]  }
   0x1   :  { %v936_v0 = vld [vmem:[%s1264_s1 + $0x78] sm:$0xff]   ;;  %v940_v4 = vld [vmem:[%s1264_s1 + $0x70] sm:$0xff]   ;;  %v944_v8 = vld [vmem:[%s1264_s1 + $0x68] sm:$0xff]   ;;  %v155_v37 = vunpack.c.l.s4 %v1027_v36 }
   0x2   :  { %v937_v1 = vld [vmem:[%s1264_s1 + $0xf8] sm:$0xff]   ;;  %846 = vmatprep.subr.bf16.mxu0 %v936_v0  ;;  %v941_v5 = vld [vmem:[%s1264_s1 + $0xf0] sm:$0xff]   ;;  %v945_v9 = vld [vmem:[%s1264_s1 + $0xe8] sm:$0xff]   ;;  %v158_v33 = vshrl.u32 %v157_v28, 7 }
   0x3   :  { %v938_v2 = vld [vmem:[%s1264_s1 + $0x38] sm:$0xff]   ;;  %868 = vmatprep.subr.bf16.mxu1 %v937_v1  ;;  %v942_v6 = vld [vmem:[%s1264_s1 + $0x30] sm:$0xff]   ;;  %v946_v10 = vld [vmem:[%s1264_s1 + $0x28] sm:$0xff]   ;;  %v156_v40 = vunpack.c.0.s8 %v155_v37 }
   0x4   :  { %v939_v3 = vld [vmem:[%s1264_s1 + $0xb8] sm:$0xff]   ;;  %847 = vmatpush3.bf16.msra.mxu0 %v938_v2  ;;  %v943_v7 = vld [vmem:[%s1264_s1 + $0xb0] sm:$0xff]   ;;  %v947_v11 = vld [vmem:[%s1264_s1 + $0xa8] sm:$0xff]  }
   0x5   :  { %869 = vmatpush3.bf16.msra.mxu1 %v939_v3  ;;  %848 = vmatprep.subr.bf16.mxu0 %v940_v4  ;;  %v948_v12 = vld [vmem:[%s1264_s1 + $0x60] sm:$0xff]   ;;  %v952_v16 = vld [vmem:[%s1264_s1 + $0x58] sm:$0xff]   ;;  %v956_v20 = vld [vmem:[%s1264_s1 + $0x50] sm:$0xff]   ;;  %v1154_v41 = vsub.s32 %v156_v40, %v158_v33 }
   0x6   :  { %870 = vmatprep.subr.bf16.mxu1 %v941_v5  ;;  %v949_v13 = vld [vmem:[%s1264_s1 + $0xe0] sm:$0xff]   ;;  %v953_v17 = vld [vmem:[%s1264_s1 + $0xd8] sm:$0xff]   ;;  %v957_v21 = vld [vmem:[%s1264_s1 + $0xd0] sm:$0xff]  }
   0x7   :  { %v950_v14 = vld [vmem:[%s1264_s1 + $0x20] sm:$0xff]   ;;  %v954_v18 = vld [vmem:[%s1264_s1 + $0x18] sm:$0xff]   ;;  %v958_v22 = vld [vmem:[%s1264_s1 + $0x10] sm:$0xff]  }
   0x8   :  { %849 = vmatpush3.bf16.msra.mxu0 %v942_v6  ;;  %v951_v15 = vld [vmem:[%s1264_s1 + $0xa0] sm:$0xff]   ;;  %v955_v19 = vld [vmem:[%s1264_s1 + $0x98] sm:$0xff]   ;;  %v959_v23 = vld [vmem:[%s1264_s1 + $0x90] sm:$0xff]  }
   0x9   :  { %871 = vmatpush3.bf16.msra.mxu1 %v943_v7  ;;  %850 = vmatprep.subr.bf16.mxu0 %v944_v8  ;;  %v960_v24 = vld [vmem:[%s1264_s1 + $0x48] sm:$0xff]   ;;  %v964_v29 = vld [vmem:[%s1264_s1 + $0x40] sm:$0xff]   ;;  %v969_v35 = vld [vmem:[%s1264_s1 + $0x178] sm:$0xff]  }
   0xa   :  { %872 = vmatprep.subr.bf16.mxu1 %v945_v9  ;;  %v961_v25 = vld [vmem:[%s1264_s1 + $0xc8] sm:$0xff]   ;;  %v965_v30 = vld [vmem:[%s1264_s1 + $0xc0] sm:$0xff]   ;;  %v970_v38 = vld [vmem:[%s1264_s1 + $0x1f8] sm:$0xff]  }
   0xb   :  { %v962_v26 = vld [vmem:[%s1264_s1 + $0x8] sm:$0xff]   ;;  %v966_v31 = vld [vmem:[%s1264_s1] sm:$0xff]   ;;  %v971_v48 = vld [vmem:[%s1264_s1 + $0x138] sm:$0xff]  }
   0xc   :  { %851 = vmatpush3.bf16.msra.mxu0 %v946_v10  ;;  %v963_v27 = vld [vmem:[%s1264_s1 + $0x88] sm:$0xff]   ;;  %v967_v32 = vld [vmem:[%s1264_s1 + $0x80] sm:$0xff]   ;;  %v973_v51 = vld [vmem:[%s1264_s1 + $0x170] sm:$0xff]  }
   0xd   :  { %873 = vmatpush3.bf16.msra.mxu1 %v947_v11  ;;  %852 = vmatprep.subr.bf16.mxu0 %v948_v12  ;;  %v16_v34 = vld [vmem:[%s1263_s0] sm:$0xff]  ;;  %v972_v53 = vld [vmem:[%s1264_s1 + $0x1b8] sm:$0xff]   ;;  %v974_v54 = vld [vmem:[%s1264_s1 + $0x1f0] sm:$0xff]  }
   0xe   :  { %874 = vmatprep.subr.bf16.mxu1 %v949_v13  ;;  %v153_v39 = vcombine.high %v16_v34, %v16_v34  ;;  %v160_v42 = vrot.slane %v16_v34, %v1154_v41  ;;  %v975_v56 = vld [vmem:[%s1264_s1 + $0x130] sm:$0xff]   ;;  %v977_v57 = vld [vmem:[%s1264_s1 + $0x168] sm:$0xff]   ;;  %v981_v61 = vld [vmem:[%s1264_s1 + $0x160] sm:$0xff]  }
   0xf   :  { %v976_v58 = vld [vmem:[%s1264_s1 + $0x1b0] sm:$0xff]   ;;  %v978_v59 = vld [vmem:[%s1264_s1 + $0x1e8] sm:$0xff]   ;;  %v982_v63 = vld [vmem:[%s1264_s1 + $0x1e0] sm:$0xff]  }
  0x10   :  { %853 = vmatpush3.bf16.msra.mxu0 %v950_v14  ;;  %v1158_v43 = vrot.slane %v153_v39, %v1154_v41  ;;  %v168_v44 = vcombine.high %v160_v42, %v160_v42  ;;  %v176_v45 = vrot.slane %v160_v42, %v1154_v41  ;;  %v979_v60 = vld [vmem:[%s1264_s1 + $0x128] sm:$0xff]   ;;  %v983_v0 = vld [vmem:[%s1264_s1 + $0x120] sm:$0xff]   ;;  %v985_v1 = vld [vmem:[%s1264_s1 + $0x158] sm:$0xff]  }
  0x11   :  { %875 = vmatpush3.bf16.msra.mxu1 %v951_v15  ;;  %854 = vmatprep.subr.bf16.mxu0 %v952_v16  ;;  %v980_v62 = vld [vmem:[%s1264_s1 + $0x1a8] sm:$0xff]   ;;  %v984_v2 = vld [vmem:[%s1264_s1 + $0x1a0] sm:$0xff]   ;;  %v986_v3 = vld [vmem:[%s1264_s1 + $0x1d8] sm:$0xff]  }
  0x12   :  { %876 = vmatprep.subr.bf16.mxu1 %v953_v17  ;;  %v169_v46 = vcombine.high %v1158_v43, %v1158_v43  ;;  %v190_v47 = vrot.slane %v168_v44, %v1154_v41  ;;  %v198_v50 = vcombine.high %v176_v45, %v176_v45  ;;  %v987_v4 = vld [vmem:[%s1264_s1 + $0x118] sm:$0xff]   ;;  %v989_v5 = vld [vmem:[%s1264_s1 + $0x150] sm:$0xff]   ;;  %v993_v9 = vld [vmem:[%s1264_s1 + $0x148] sm:$0xff]  }
  0x13   :  { %v988_v6 = vld [vmem:[%s1264_s1 + $0x198] sm:$0xff]   ;;  %v990_v7 = vld [vmem:[%s1264_s1 + $0x1d0] sm:$0xff]  }
  0x14   :  { %855 = vmatpush3.bf16.msra.mxu0 %v954_v18  ;;  %v197_v49 = vrot.slane %v169_v46, %v1154_v41  ;;  %626 = vmatprep.mubr.bf16.mxu0 %v190_v47  ;;  %v200_v52 = vcombine.high %v190_v47, %v190_v47  ;;  %v991_v8 = vld [vmem:[%s1264_s1 + $0x110] sm:$0xff]  }
  0x15   :  { %877 = vmatpush3.bf16.msra.mxu1 %v955_v19  ;;  %856 = vmatprep.subr.bf16.mxu0 %v956_v20 }
  0x16   :  { %878 = vmatprep.subr.bf16.mxu1 %v957_v21  ;;  %v201_v55 = vcombine.high %v197_v49, %v197_v49  ;;  %666 = vmatprep.mubr.bf16.mxu1 %v200_v52 }
  0x18   :  { %857 = vmatpush3.bf16.msra.mxu0 %v958_v22 }
  0x19   :  { %879 = vmatpush3.bf16.msra.mxu1 %v959_v23  ;;  %858 = vmatprep.subr.bf16.mxu0 %v960_v24 }
  0x1a   :  { %880 = vmatprep.subr.bf16.mxu1 %v961_v25 }
  0x1c   :  { %859 = vmatpush3.bf16.msra.mxu0 %v962_v26 }
  0x1d   :  { %881 = vmatpush3.bf16.msra.mxu1 %v963_v27  ;;  %860 = vmatprep.subr.bf16.mxu0 %v964_v29 }
  0x1e   :  { %882 = vmatprep.subr.bf16.mxu1 %v965_v30 }
  0x20   :  { %861 = vmatpush3.bf16.msra.mxu0 %v966_v31 }
  0x21   :  { %883 = vmatpush3.bf16.msra.mxu1 %v967_v32  ;;  %890 = vmatprep.subr.bf16.mxu0 %v969_v35 }
  0x22   :  { %912 = vmatprep.subr.bf16.mxu1 %v970_v38 }
  0x23   :  { %627 = vmatmul.mubr.bf16.vlgmr.msra.gmra.mxu0 %v176_v45 }
  0x24   :  { %891 = vmatpush3.bf16.msra.mxu0 %v971_v48  ;;  %667 = vmatmul.mubr.bf16.vlgmr.msra.gmra.mxu1 %v198_v50 }
  0x25   :  { %892 = vmatprep.subr.bf16.mxu0 %v973_v51  ;;  %913 = vmatpush3.bf16.msra.mxu1 %v972_v53 }
  0x26   :  { %706 = vmatprep.mubr.bf16.mxu0 %v197_v49  ;;  %914 = vmatprep.subr.bf16.mxu1 %v974_v54 }
  0x27   :  { %746 = vmatprep.mubr.bf16.mxu1 %v201_v55 }
  0x28   :  { %893 = vmatpush3.bf16.msra.mxu0 %v975_v56 }
  0x29   :  { %894 = vmatprep.subr.bf16.mxu0 %v977_v57  ;;  %915 = vmatpush3.bf16.msra.mxu1 %v976_v58 }
  0x2a   :  { %916 = vmatprep.subr.bf16.mxu1 %v978_v59 }
  0x2c   :  { %895 = vmatpush3.bf16.msra.mxu0 %v979_v60 }
  0x2d   :  { %896 = vmatprep.subr.bf16.mxu0 %v981_v61  ;;  %917 = vmatpush3.bf16.msra.mxu1 %v980_v62 }
  0x2e   :  { %918 = vmatprep.subr.bf16.mxu1 %v982_v63 }
  0x30   :  { %897 = vmatpush3.bf16.msra.mxu0 %v983_v0 }
  0x31   :  { %898 = vmatprep.subr.bf16.mxu0 %v985_v1  ;;  %919 = vmatpush3.bf16.msra.mxu1 %v984_v2 }
  0x32   :  { %920 = vmatprep.subr.bf16.mxu1 %v986_v3 }
  0x34   :  { %899 = vmatpush3.bf16.msra.mxu0 %v987_v4 }
  0x35   :  { %900 = vmatprep.subr.bf16.mxu0 %v989_v5 }
  0x36   :  { %8 = vsyncpa [#allocation3], 0  ;;  %921 = vmatpush3.bf16.msra.mxu1 %v988_v6  ;;  %v992_v10 = vld [vmem:[%s1264_s1 + $0x190] sm:$0xff]   ;;  %v994_v11 = vld [vmem:[%s1264_s1 + $0x1c8] sm:$0xff]   ;;  %v183_v17 = vrot.slane %v1158_v43, %v1154_v41  ;;  %vm754_vm0 = vcmask 1041408  }
  0x37   :  { %922 = vmatprep.subr.bf16.mxu1 %v990_v7  ;;  %v995_v12 = vld [vmem:[%s1264_s1 + $0x108] sm:$0xff]   ;;  %v997_v13 = vld [vmem:[%s1264_s1 + $0x140] sm:$0xff]  }
  0x38   :  { %901 = vmatpush3.bf16.msra.mxu0 %v991_v8  ;;  %v996_v14 = vld [vmem:[%s1264_s1 + $0x188] sm:$0xff]   ;;  %v998_v15 = vld [vmem:[%s1264_s1 + $0x1c0] sm:$0xff]   ;;  %v199_v19 = vcombine.high %v183_v17, %v183_v17 }
  0x39   :  { %902 = vmatprep.subr.bf16.mxu0 %v993_v9  ;;  %v999_v16 = vld [vmem:[%s1264_s1 + $0x100] sm:$0xff]  }
  0x3a   :  { %923 = vmatpush3.bf16.msra.mxu1 %v992_v10  ;;  %v1000_v18 = vld [vmem:[%s1264_s1 + $0x180] sm:$0xff]   ;;  %s1028_s1 = smov [#allocation2]  }
  0x3b   :  { %924 = vmatprep.subr.bf16.mxu1 %v994_v11  ;;  %v781_v29 = vld [vmem:[%s1265_s2] ss:$0 sm:$0xff]  ;;  %s773_s2 = sshll.u32 %s1028_s1, 4  ;;  %s774_s2 = int_to_ptr.vmem [resolvable:$true] %s773_s2 }
  0x3c   :  { %903 = vmatpush3.bf16.msra.mxu0 %v995_v12  ;;  %s1005_s6 = scalar_lea.vmem %s774_s2, 32  ;;  %p1010_p1 = scmp.lt.s32.totalorder %s774_s2, %s774_s2 }
  0x3d   :  { %904 = vmatprep.subr.bf16.mxu0 %v997_v13  ;;  %p1006_p0 = scmp.ne.s32.totalorder %s774_s2, %s1005_s6  ;;  %p1011_p2 = scmp.lt.s32.totalorder %s1005_s6, %s1005_s6 }
  0x3e   :  { %925 = vmatpush3.bf16.msra.mxu1 %v996_v14 }
  0x3f   :  { %926 = vmatprep.subr.bf16.mxu1 %v998_v15  ;;  %p1012_p3 = por %p1011_p2, %p1010_p1 }
  0x40   :  { %905 = vmatpush3.bf16.msra.mxu0 %v999_v16 }
  0x41   :  { %p1013_p4 = pnand %p1012_p3, %p1006_p0 }
  0x42   :  { %927 = vmatpush3.bf16.msra.mxu1 %v1000_v18 }
  0x43   :  { %707 = vmatmul.mubr.bf16.vlgmr.msra.gmra.mxu0 %v183_v17 }
  0x45   :  { %747 = vmatmul.mubr.bf16.vlgmr.msra.gmra.mxu1 %v199_v19 }
  0xe3   :  { %v862_v20 = vpop.f32.mrf.mxu0 }
  0xe4   :  { %v884_v21 = vpop.f32.mrf.mxu1 }
  0xe5   :  { %v863_v22 = vpop.f32.mrf.mxu0 }
  0xe6   :  { %v885_v23 = vpop.f32.mrf.mxu1  ;;  %v864_v28 = vadd.f32 %v863_v22, %v862_v20 }
  0xe7   :  { %v865_v24 = vpop.f32.mrf.mxu0  ;;  %v886_v31 = vadd.f32 %v885_v23, %v884_v21 }
  0xe8   :  { %v887_v25 = vpop.f32.mrf.mxu1  ;;  %v629_v30 = vadd.f32 %v864_v28, %v781_v29 }
  0xe9   :  { %v866_v26 = vpop.f32.mrf.mxu0 }
  0xea   :  { %v888_v27 = vpop.f32.mrf.mxu1  ;;  %v669_v35 = vadd.f32 %v886_v31, %v629_v30 }
 0x103   :  { %v906_v32 = vpop.f32.mrf.mxu0 }
 0x105   :  { %v928_v33 = vpop.f32.mrf.mxu1  ;;  %v907_v34 = vpop.f32.mrf.mxu0 }
 0x106   :  { %v908_v36 = vadd.f32 %v907_v34, %v906_v32 }
 0x107   :  { %v929_v37 = vpop.f32.mrf.mxu1  ;;  %v909_v38 = vpop.f32.mrf.mxu0 }
 0x108   :  { %v709_v39 = vadd.f32 %v908_v36, %v669_v35  ;;  %v930_v40 = vadd.f32 %v929_v37, %v928_v33 }
 0x109   :  { %v931_v41 = vpop.f32.mrf.mxu1  ;;  %v910_v42 = vpop.f32.mrf.mxu0 }
 0x10a   :  { %v749_v43 = vadd.f32 %v930_v40, %v709_v39 }
 0x10b   :  { %v932_v44 = vpop.f32.mrf.mxu1 }
 0x10c   :  { %v755_v45 = vsel %vm754_vm0, %v749_v43, -inf }
 0x10d   :  { %756 = vmax.xlane.f32.xlu0 %v755_v45 }
 0x196   :  { %v757_v46 = vpop.xlane.xlu0 %756 }
 0x197   :  { %v758_v47 = vsub.f32 %v749_v43, %v757_v46 }
 0x199   :  { %v759_v48 = vmul.f32 1.442695, %v758_v47 }
 0x19b   :  { %1001 = vpow2.f32 %v759_v48 }
 0x1a8   :  { %v1002_v49 = vpop.eup %1001 }
 0x1a9   :  { %v761_v50 = vsel %vm754_vm0, %v1002_v49, 0.0 }
 0x1aa   :  { %762 = vadd.xlane.f32.xlu0 %v761_v50 }
 0x233   :  { %v763_v51 = vpop.xlane.xlu0 %762 }
 0x234   :  { %1003 = vrcp.f32 %v763_v51 }
 0x241   :  { %v1004_v52 = vpop.eup %1003 }
 0x242   :  { %v765_v53 = vmul.f32 %v1004_v52, %v1002_v49 }
 0x244   :  { %766 = vst [vmem:[#allocation2] sm:$0x3] %v765_v53 }
 0x245   :  { %1016 = shalt.err (!%p1013_p4)
}
 0x246   :  { %776 = dma.vmem_to_hbm [thread:$0]  %s774_s2, 32, %s1266_s3, [#allocation3]  }
 0x247   :  { %1025 = dma.done.wait [#allocation3], 32  }
 0x248   :  { %1026 = vsyncadd [#allocation3], 4294967264 }
 0x249   :  { %780 = vsyncpa [#allocation3], 1 }

</bundles_post_ra>
